<compile_context>
chip_gen: v7x
topology: tpu7x:2x2x1
jax: 0.10.0
libtpu: 0.0.40
codegen_flags: <defaults>
</compile_context>

<pallas_src>
import functools

import jax
import jax.numpy as jnp
from jax import lax
from jax.experimental import pallas as pl
from jax.experimental.pallas import tpu as pltpu


# --------------------------------------------------------------------------
# Fused kernel: pooling accumulation over the (B, C-tile) grid + conv stack
# --------------------------------------------------------------------------
def _fused_kernel(w1_ref, b1_ref, w2_ref, b2_ref, fl_ref, fr_ref, out_ref,
                  ssum_l, msum_l, ssum_r, msum_r, mb_l, mb_r,
                  *, B, C, nc, H, W):
    """fl_ref / fr_ref: (tile_c, H*W) lane-dense blocks (batch dim squeezed).

    out_ref : (1, H*W) f32 attention map, written on the last grid step.
    ssum_*  : running sum over (B, C) of the inputs       -> avg pool
    mb_*    : running max over C within the current batch -> max pool
    msum_*  : running sum over B of the per-batch channel max
    """
    HW = H * W
    b = pl.program_id(0)
    c = pl.program_id(1)

    fl = fl_ref[...].astype(jnp.float32)
    fr = fr_ref[...].astype(jnp.float32)

    ts_l = jnp.sum(fl, axis=0, keepdims=True)          # (1, HW)
    tm_l = jnp.max(fl, axis=0, keepdims=True)
    ts_r = jnp.sum(fr, axis=0, keepdims=True)
    tm_r = jnp.max(fr, axis=0, keepdims=True)

    first = (b == 0) & (c == 0)
    last_c = c == nc - 1

    @pl.when(first)
    def _():
        ssum_l[...] = ts_l
        ssum_r[...] = ts_r

    @pl.when(jnp.logical_not(first))
    def _():
        ssum_l[...] = ssum_l[...] + ts_l
        ssum_r[...] = ssum_r[...] + ts_r

    @pl.when(c == 0)
    def _():
        mb_l[...] = tm_l
        mb_r[...] = tm_r

    @pl.when(c != 0)
    def _():
        mb_l[...] = jnp.maximum(mb_l[...], tm_l)
        mb_r[...] = jnp.maximum(mb_r[...], tm_r)

    @pl.when(last_c & (b == 0))
    def _():
        msum_l[...] = mb_l[...]
        msum_r[...] = mb_r[...]

    @pl.when(last_c & (b != 0))
    def _():
        msum_l[...] = msum_l[...] + mb_l[...]
        msum_r[...] = msum_r[...] + mb_r[...]

    # ---- final step: conv1(4->4,3x3)+ReLU -> conv2(4->1,3x3)+sigmoid -------
    @pl.when(last_c & (b == B - 1))
    def _conv():
        inv_bc = 1.0 / (B * C)
        inv_b = 1.0 / B
        planes = (ssum_l[...] * inv_bc, msum_l[...] * inv_b,
                  ssum_r[...] * inv_bc, msum_r[...] * inv_b)

        # Border masks + the shared zero plane, built ONCE (hoisted).
        zeros = jnp.zeros((1, HW), jnp.float32)
        idx = lax.broadcasted_iota(jnp.int32, (1, HW), 1)
        col = idx % W
        my_neg = idx >= W                # row y-1 exists
        my_pos = idx < (H - 1) * W       # row y+1 exists
        mx_neg = col >= 1                # col x-1 exists
        mx_pos = col < (W - 1)           # col x+1 exists

        def rot(p, k):
            # q[i] = p[(i + k) mod HW]  (XLU lane rotate).
            k = (-k) % HW
            return p if k == 0 else pltpu.roll(p, k, axis=1)

        def taps9(p):
            # Zero-padded 3x3 taps of the flat (1, HW) plane, ordered ky*3+kx.
            # Row(y) shifts built once, column(x) shifts derived from them.
            y_m = jnp.where(my_neg, rot(p, -W), zeros)   # ky = 0 (dy = -1)
            y_p = jnp.where(my_pos, rot(p, +W), zeros)   # ky = 2 (dy = +1)
            taps = []
            for yr in (y_m, p, y_p):
                x_m = jnp.where(mx_neg, rot(yr, -1), zeros)   # kx = 0
                x_p = jnp.where(mx_pos, rot(yr, +1), zeros)   # kx = 2
                taps += [x_m, yr, x_p]
            return taps

        # conv1: taps of each input plane shared by all 4 output channels.
        accs = [jnp.full((1, HW), b1_ref[oc], jnp.float32) for oc in range(4)]
        for ic in range(4):
            tps = taps9(planes[ic])
            for t in range(9):
                tap = tps[t]
                for oc in range(4):
                    accs[oc] = accs[oc] + w1_ref[(oc * 4 + ic) * 9 + t] * tap

        # conv2 fused: one ReLU'd hidden plane live at a time.
        acc2 = jnp.full((1, HW), b2_ref[0], jnp.float32)
        for oc in range(4):
            tps = taps9(jnp.maximum(accs[oc], 0.0))
            for t in range(9):
                acc2 = acc2 + w2_ref[oc * 9 + t] * tps[t]

        out_ref[...] = jax.nn.sigmoid(acc2)


# --------------------------------------------------------------------------
# Wrapper
# --------------------------------------------------------------------------
def _tpu_vmem_capacity_bytes():
    try:
        return int(pltpu.get_tpu_info().vmem_capacity_bytes)
    except Exception:                      # conservative (v7x-sized) fallback
        return 64 << 20


def _sublane_granule(itemsize):
    return {4: 8, 2: 16, 1: 32}.get(itemsize, 8)


def _choose_tile_c(C, HW, itemsize, budget_bytes):
    """Full C preferred (one contiguous per-batch slab); otherwise the largest
    divisor of C on the packed-dtype sublane granule that fits the budget."""
    fixed = 7 * HW * 4                     # 6 accumulators + resident output

    def fits(tc):
        return 2 * 2 * tc * HW * itemsize + fixed <= budget_bytes

    if fits(C):
        return C
    granule = _sublane_granule(itemsize)
    divisors = [d for d in range(granule, C, granule) if C % d == 0]
    fitting = [d for d in divisors if fits(d)]
    if fitting:
        return max(fitting)
    if divisors:
        return min(divisors)
    return C


@jax.jit
def bilateral_attention(FLp, FRp, w1, b1, w2, b2):
    B, C, H, W = FLp.shape
    assert FRp.shape == (B, C, H, W)
    HW = H * W

    itemsize = jnp.dtype(FLp.dtype).itemsize
    # Generation-aware budget: ~38 MiB on v7x (64 MiB VMEM), ~77 MiB on v5e/v6e.
    budget = int(_tpu_vmem_capacity_bytes() * 0.6)
    tile_c = _choose_tile_c(C, HW, itemsize, budget)
    nc = C // tile_c

    # Lane-dense, fully contiguous per-step slabs (free reshape of NCHW).
    fl = FLp.reshape(B, C, HW)
    fr = FRp.reshape(B, C, HW)

    per_step = 2 * 2 * tile_c * HW * itemsize        # double-buffered inputs
    resident = 7 * HW * 4 + 24 * HW * 4              # accumulators + conv temps
    vmem_limit = int(min(max(per_step + resident + (2 << 20), 8 << 20), budget))

    smem = pl.BlockSpec(memory_space=pltpu.MemorySpace.SMEM)
    kernel = functools.partial(_fused_kernel, B=B, C=C, nc=nc, H=H, W=W)

    att = pl.pallas_call(
        kernel,
        out_shape=jax.ShapeDtypeStruct((1, HW), jnp.float32),
        grid=(B, nc),                      # both axes are reductions
        in_specs=[smem, smem, smem, smem,
                  pl.BlockSpec((None, tile_c, HW), lambda b, c: (b, c, 0)),
                  pl.BlockSpec((None, tile_c, HW), lambda b, c: (b, c, 0))],
        out_specs=pl.BlockSpec((1, HW), lambda b, c: (0, 0)),
        scratch_shapes=[pltpu.VMEM((1, HW), jnp.float32) for _ in range(6)],
        compiler_params=pltpu.CompilerParams(
            dimension_semantics=("arbitrary", "arbitrary"),
            vmem_limit_bytes=vmem_limit,
        ),
    )(w1.reshape(-1).astype(jnp.float32),
      b1.astype(jnp.float32),
      w2.reshape(-1).astype(jnp.float32),
      b2.astype(jnp.float32),
      fl, fr)

    # NCHW output to match the PyTorch module.
    return att.reshape(1, 1, H, W)


# --------------------------------------------------------------------------
# Pure-JAX reference reproducing the PyTorch forward
# --------------------------------------------------------------------------
def reference(FLp, FRp, w1, b1, w2, b2):
    ap_l = jnp.mean(FLp, axis=1, keepdims=True)
    mp_l = jnp.max(FLp, axis=1, keepdims=True)
    ap_r = jnp.mean(FRp, axis=1, keepdims=True)
    mp_r = jnp.max(FRp, axis=1, keepdims=True)
    if FLp.shape[0] != 1:
        ap_l = jnp.mean(ap_l, axis=0, keepdims=True)
        mp_l = jnp.mean(mp_l, axis=0, keepdims=True)
    if FRp.shape[0] != 1:
        ap_r = jnp.mean(ap_r, axis=0, keepdims=True)
        mp_r = jnp.mean(mp_r, axis=0, keepdims=True)
    concat = jnp.concatenate([ap_l, mp_l, ap_r, mp_r], axis=1)  # (1, 4, H, W)
    dn = ('NCHW', 'OIHW', 'NCHW')
    y = lax.conv_general_dilated(concat, w1, (1, 1), 'SAME',
                                 dimension_numbers=dn) + b1[None, :, None, None]
    y = jnp.maximum(y, 0.0)
    y = lax.conv_general_dilated(y, w2, (1, 1), 'SAME',
                                 dimension_numbers=dn) + b2[None, :, None, None]
    return jax.nn.sigmoid(y)


if __name__ == "__main__":
    key = jax.random.PRNGKey(0)
    k_fl, k_fr, k_w1, k_b1, k_w2, k_b2 = jax.random.split(key, 6)

    B, in_channels, H, W = 2, 4, 16, 16  # C == in_channels (pool kernel depth)

    FLp = jax.random.normal(k_fl, (B, in_channels, H, W), jnp.float32)
    FRp = jax.random.normal(k_fr, (B, in_channels, H, W), jnp.float32)

    # Deterministic Conv2d params (PyTorch-style uniform(-1/sqrt(fan_in), +)).
    fan1 = 4 * 3 * 3
    k1 = 1.0 / jnp.sqrt(fan1)
    w1 = jax.random.uniform(k_w1, (4, 4, 3, 3), jnp.float32, -k1, k1)
    b1 = jax.random.uniform(k_b1, (4,), jnp.float32, -k1, k1)
    fan2 = 4 * 3 * 3
    k2 = 1.0 / jnp.sqrt(fan2)
    w2 = jax.random.uniform(k_w2, (1, 4, 3, 3), jnp.float32, -k2, k2)
    b2 = jax.random.uniform(k_b2, (1,), jnp.float32, -k2, k2)

    out = bilateral_attention(FLp, FRp, w1, b1, w2, b2)
    out = jax.block_until_ready(out)

    ref = reference(FLp, FRp, w1, b1, w2, b2)
    assert out.shape == (1, 1, H, W), out.shape
    assert jnp.allclose(out, ref, rtol=1e-5, atol=1e-5), \
        float(jnp.max(jnp.abs(out - ref)))

    print("KERNEL_OK")
</pallas_src>

<mosaic_0001>
module attributes {stable_mosaic.version = 11 : i64} {
  func.func @_fused_kernel(%arg0: i32, %arg1: i32, %arg2: memref<144xf32, #tpu.memory_space<smem>>, %arg3: memref<4xf32, #tpu.memory_space<smem>>, %arg4: memref<36xf32, #tpu.memory_space<smem>>, %arg5: memref<1xf32, #tpu.memory_space<smem>>, %arg6: memref<1x4x256xf32, #tpu.memory_space<vmem>>, %arg7: memref<1x4x256xf32, #tpu.memory_space<vmem>>, %arg8: memref<1x256xf32, #tpu.memory_space<vmem>>, %arg9: memref<1x256xf32, #tpu.memory_space<vmem>>, %arg10: memref<1x256xf32, #tpu.memory_space<vmem>>, %arg11: memref<1x256xf32, #tpu.memory_space<vmem>>, %arg12: memref<1x256xf32, #tpu.memory_space<vmem>>, %arg13: memref<1x256xf32, #tpu.memory_space<vmem>>, %arg14: memref<1x256xf32, #tpu.memory_space<vmem>>) attributes {dimension_semantics = [#tpu.dimension_semantics<arbitrary>, #tpu.dimension_semantics<arbitrary>], iteration_bounds = array<i64: 2, 1>, scalar_prefetch = 0 : i64, scratch_operands = 6 : i64, tpu.core_type = #tpu.core_type<tc>, window_params = [{transform_indices = @transform_0, window_bounds = array<i64: 144>}, {transform_indices = @transform_1, window_bounds = array<i64: 4>}, {transform_indices = @transform_2, window_bounds = array<i64: 36>}, {transform_indices = @transform_3, window_bounds = array<i64: 1>}, {transform_indices = @transform_4, window_bounds = array<i64: 1, 4, 256>}, {transform_indices = @transform_5, window_bounds = array<i64: 1, 4, 256>}, {pipeline_mode = #tpu.pipeline_mode<synchronous>, transform_indices = @transform_6, window_bounds = array<i64: 1, 256>}]} {
    %c0 = arith.constant 0 : index
    %c0_0 = arith.constant 0 : index
    %c0_1 = arith.constant 0 : index
    %0 = vector.load %arg6[%c0, %c0_0, %c0_1] : memref<1x4x256xf32, #tpu.memory_space<vmem>>, vector<1x4x256xf32>
    %1 = vector.shape_cast %0 : vector<1x4x256xf32> to vector<4x256xf32>
    %c0_2 = arith.constant 0 : index
    %c0_3 = arith.constant 0 : index
    %c0_4 = arith.constant 0 : index
    %2 = vector.load %arg7[%c0_2, %c0_3, %c0_4] : memref<1x4x256xf32, #tpu.memory_space<vmem>>, vector<1x4x256xf32>
    %3 = vector.shape_cast %2 : vector<1x4x256xf32> to vector<4x256xf32>
    %cst = arith.constant dense<0.000000e+00> : vector<256xf32>
    %4 = vector.multi_reduction <add>, %1, %cst [0] : vector<4x256xf32> to vector<256xf32>
    %5 = vector.shape_cast %4 : vector<256xf32> to vector<1x256xf32>
    %cst_5 = arith.constant dense<0xFF800000> : vector<256xf32>
    %6 = vector.multi_reduction <maximumf>, %1, %cst_5 [0] : vector<4x256xf32> to vector<256xf32>
    %7 = vector.shape_cast %6 : vector<256xf32> to vector<1x256xf32>
    %cst_6 = arith.constant dense<0.000000e+00> : vector<256xf32>
    %8 = vector.multi_reduction <add>, %3, %cst_6 [0] : vector<4x256xf32> to vector<256xf32>
    %9 = vector.shape_cast %8 : vector<256xf32> to vector<1x256xf32>
    %cst_7 = arith.constant dense<0xFF800000> : vector<256xf32>
    %10 = vector.multi_reduction <maximumf>, %3, %cst_7 [0] : vector<4x256xf32> to vector<256xf32>
    %11 = vector.shape_cast %10 : vector<256xf32> to vector<1x256xf32>
    %c0_i32 = arith.constant 0 : i32
    %12 = arith.cmpi eq, %arg0, %c0_i32 : i32
    %c0_i32_8 = arith.constant 0 : i32
    %13 = arith.cmpi eq, %arg1, %c0_i32_8 : i32
    %14 = arith.andi %12, %13 : i1
    %c0_i32_9 = arith.constant 0 : i32
    %15 = arith.cmpi eq, %arg1, %c0_i32_9 : i32
    %16 = arith.extui %14 : i1 to i32
    %c0_i32_10 = arith.constant 0 : i32
    %17 = arith.cmpi ne, %16, %c0_i32_10 : i32
    scf.if %17 {
      %c0_21 = arith.constant 0 : index
      %c0_22 = arith.constant 0 : index
      %39 = vector.load %arg9[%c0_21, %c0_22] : memref<1x256xf32, #tpu.memory_space<vmem>>, vector<1x256xf32>
      tpu.vector_store %arg9[%c0_21, %c0_22], %5 {strides = array<i32>} : memref<1x256xf32, #tpu.memory_space<vmem>>, vector<1x256xf32>,
      %c0_23 = arith.constant 0 : index
      %c0_24 = arith.constant 0 : index
      %40 = vector.load %arg11[%c0_23, %c0_24] : memref<1x256xf32, #tpu.memory_space<vmem>>, vector<1x256xf32>
      tpu.vector_store %arg11[%c0_23, %c0_24], %9 {strides = array<i32>} : memref<1x256xf32, #tpu.memory_space<vmem>>, vector<1x256xf32>,
    } else {
    }
    %true = arith.constant true
    %18 = arith.xori %14, %true : i1
    %19 = arith.extui %18 : i1 to i32
    %c0_i32_11 = arith.constant 0 : i32
    %20 = arith.cmpi ne, %19, %c0_i32_11 : i32
    scf.if %20 {
      %c0_21 = arith.constant 0 : index
      %c0_22 = arith.constant 0 : index
      %39 = vector.load %arg9[%c0_21, %c0_22] : memref<1x256xf32, #tpu.memory_space<vmem>>, vector<1x256xf32>
      %40 = arith.addf %39, %5 : vector<1x256xf32>
      %c0_23 = arith.constant 0 : index
      %c0_24 = arith.constant 0 : index
      %41 = vector.load %arg9[%c0_23, %c0_24] : memref<1x256xf32, #tpu.memory_space<vmem>>, vector<1x256xf32>
      tpu.vector_store %arg9[%c0_23, %c0_24], %40 {strides = array<i32>} : memref<1x256xf32, #tpu.memory_space<vmem>>, vector<1x256xf32>,
      %c0_25 = arith.constant 0 : index
      %c0_26 = arith.constant 0 : index
      %42 = vector.load %arg11[%c0_25, %c0_26] : memref<1x256xf32, #tpu.memory_space<vmem>>, vector<1x256xf32>
      %43 = arith.addf %42, %9 : vector<1x256xf32>
      %c0_27 = arith.constant 0 : index
      %c0_28 = arith.constant 0 : index
      %44 = vector.load %arg11[%c0_27, %c0_28] : memref<1x256xf32, #tpu.memory_space<vmem>>, vector<1x256xf32>
      tpu.vector_store %arg11[%c0_27, %c0_28], %43 {strides = array<i32>} : memref<1x256xf32, #tpu.memory_space<vmem>>, vector<1x256xf32>,
    } else {
    }
    %c0_i32_12 = arith.constant 0 : i32
    %21 = arith.cmpi eq, %arg1, %c0_i32_12 : i32
    %22 = arith.extui %21 : i1 to i32
    %c0_i32_13 = arith.constant 0 : i32
    %23 = arith.cmpi ne, %22, %c0_i32_13 : i32
    scf.if %23 {
      %c0_21 = arith.constant 0 : index
      %c0_22 = arith.constant 0 : index
      %39 = vector.load %arg13[%c0_21, %c0_22] : memref<1x256xf32, #tpu.memory_space<vmem>>, vector<1x256xf32>
      tpu.vector_store %arg13[%c0_21, %c0_22], %7 {strides = array<i32>} : memref<1x256xf32, #tpu.memory_space<vmem>>, vector<1x256xf32>,
      %c0_23 = arith.constant 0 : index
      %c0_24 = arith.constant 0 : index
      %40 = vector.load %arg14[%c0_23, %c0_24] : memref<1x256xf32, #tpu.memory_space<vmem>>, vector<1x256xf32>
      tpu.vector_store %arg14[%c0_23, %c0_24], %11 {strides = array<i32>} : memref<1x256xf32, #tpu.memory_space<vmem>>, vector<1x256xf32>,
    } else {
    }
    %c0_i32_14 = arith.constant 0 : i32
    %24 = arith.cmpi ne, %arg1, %c0_i32_14 : i32
    %25 = arith.extui %24 : i1 to i32
    %c0_i32_15 = arith.constant 0 : i32
    %26 = arith.cmpi ne, %25, %c0_i32_15 : i32
    scf.if %26 {
      %c0_21 = arith.constant 0 : index
      %c0_22 = arith.constant 0 : index
      %39 = vector.load %arg13[%c0_21, %c0_22] : memref<1x256xf32, #tpu.memory_space<vmem>>, vector<1x256xf32>
      %40 = arith.maximumf %39, %7 : vector<1x256xf32>
      %c0_23 = arith.constant 0 : index
      %c0_24 = arith.constant 0 : index
      %41 = vector.load %arg13[%c0_23, %c0_24] : memref<1x256xf32, #tpu.memory_space<vmem>>, vector<1x256xf32>
      tpu.vector_store %arg13[%c0_23, %c0_24], %40 {strides = array<i32>} : memref<1x256xf32, #tpu.memory_space<vmem>>, vector<1x256xf32>,
      %c0_25 = arith.constant 0 : index
      %c0_26 = arith.constant 0 : index
      %42 = vector.load %arg14[%c0_25, %c0_26] : memref<1x256xf32, #tpu.memory_space<vmem>>, vector<1x256xf32>
      %43 = arith.maximumf %42, %11 : vector<1x256xf32>
      %c0_27 = arith.constant 0 : index
      %c0_28 = arith.constant 0 : index
      %44 = vector.load %arg14[%c0_27, %c0_28] : memref<1x256xf32, #tpu.memory_space<vmem>>, vector<1x256xf32>
      tpu.vector_store %arg14[%c0_27, %c0_28], %43 {strides = array<i32>} : memref<1x256xf32, #tpu.memory_space<vmem>>, vector<1x256xf32>,
    } else {
    }
    %c0_i32_16 = arith.constant 0 : i32
    %27 = arith.cmpi eq, %arg0, %c0_i32_16 : i32
    %28 = arith.andi %15, %27 : i1
    %29 = arith.extui %28 : i1 to i32
    %c0_i32_17 = arith.constant 0 : i32
    %30 = arith.cmpi ne, %29, %c0_i32_17 : i32
    scf.if %30 {
      %c0_21 = arith.constant 0 : index
      %c0_22 = arith.constant 0 : index
      %39 = vector.load %arg13[%c0_21, %c0_22] : memref<1x256xf32, #tpu.memory_space<vmem>>, vector<1x256xf32>
      %c0_23 = arith.constant 0 : index
      %c0_24 = arith.constant 0 : index
      %40 = vector.load %arg10[%c0_23, %c0_24] : memref<1x256xf32, #tpu.memory_space<vmem>>, vector<1x256xf32>
      tpu.vector_store %arg10[%c0_23, %c0_24], %39 {strides = array<i32>} : memref<1x256xf32, #tpu.memory_space<vmem>>, vector<1x256xf32>,
      %c0_25 = arith.constant 0 : index
      %c0_26 = arith.constant 0 : index
      %41 = vector.load %arg14[%c0_25, %c0_26] : memref<1x256xf32, #tpu.memory_space<vmem>>, vector<1x256xf32>
      %c0_27 = arith.constant 0 : index
      %c0_28 = arith.constant 0 : index
      %42 = vector.load %arg12[%c0_27, %c0_28] : memref<1x256xf32, #tpu.memory_space<vmem>>, vector<1x256xf32>
      tpu.vector_store %arg12[%c0_27, %c0_28], %41 {strides = array<i32>} : memref<1x256xf32, #tpu.memory_space<vmem>>, vector<1x256xf32>,
    } else {
    }
    %c0_i32_18 = arith.constant 0 : i32
    %31 = arith.cmpi ne, %arg0, %c0_i32_18 : i32
    %32 = arith.andi %15, %31 : i1
    %33 = arith.extui %32 : i1 to i32
    %c0_i32_19 = arith.constant 0 : i32
    %34 = arith.cmpi ne, %33, %c0_i32_19 : i32
    scf.if %34 {
      %c0_21 = arith.constant 0 : index
      %c0_22 = arith.constant 0 : index
      %39 = vector.load %arg10[%c0_21, %c0_22] : memref<1x256xf32, #tpu.memory_space<vmem>>, vector<1x256xf32>
      %c0_23 = arith.constant 0 : index
      %c0_24 = arith.constant 0 : index
      %40 = vector.load %arg13[%c0_23, %c0_24] : memref<1x256xf32, #tpu.memory_space<vmem>>, vector<1x256xf32>
      %41 = arith.addf %39, %40 : vector<1x256xf32>
      %c0_25 = arith.constant 0 : index
      %c0_26 = arith.constant 0 : index
      %42 = vector.load %arg10[%c0_25, %c0_26] : memref<1x256xf32, #tpu.memory_space<vmem>>, vector<1x256xf32>
      tpu.vector_store %arg10[%c0_25, %c0_26], %41 {strides = array<i32>} : memref<1x256xf32, #tpu.memory_space<vmem>>, vector<1x256xf32>,
      %c0_27 = arith.constant 0 : index
      %c0_28 = arith.constant 0 : index
      %43 = vector.load %arg12[%c0_27, %c0_28] : memref<1x256xf32, #tpu.memory_space<vmem>>, vector<1x256xf32>
      %c0_29 = arith.constant 0 : index
      %c0_30 = arith.constant 0 : index
      %44 = vector.load %arg14[%c0_29, %c0_30] : memref<1x256xf32, #tpu.memory_space<vmem>>, vector<1x256xf32>
      %45 = arith.addf %43, %44 : vector<1x256xf32>
      %c0_31 = arith.constant 0 : index
      %c0_32 = arith.constant 0 : index
      %46 = vector.load %arg12[%c0_31, %c0_32] : memref<1x256xf32, #tpu.memory_space<vmem>>, vector<1x256xf32>
      tpu.vector_store %arg12[%c0_31, %c0_32], %45 {strides = array<i32>} : memref<1x256xf32, #tpu.memory_space<vmem>>, vector<1x256xf32>,
    } else {
    }
    %c1_i32 = arith.constant 1 : i32
    %35 = arith.cmpi eq, %arg0, %c1_i32 : i32
    %36 = arith.andi %15, %35 : i1
    %37 = arith.extui %36 : i1 to i32
    %c0_i32_20 = arith.constant 0 : i32
    %38 = arith.cmpi ne, %37, %c0_i32_20 : i32
    scf.if %38 {
      %c0_21 = arith.constant 0 : index
      %c0_22 = arith.constant 0 : index
      %39 = vector.load %arg9[%c0_21, %c0_22] : memref<1x256xf32, #tpu.memory_space<vmem>>, vector<1x256xf32>
      %cst_23 = arith.constant 1.250000e-01 : f32
      %40 = vector.broadcast %cst_23 : f32 to vector<1x256xf32>
      %41 = arith.mulf %39, %40 : vector<1x256xf32>
      %c0_24 = arith.constant 0 : index
      %c0_25 = arith.constant 0 : index
      %42 = vector.load %arg10[%c0_24, %c0_25] : memref<1x256xf32, #tpu.memory_space<vmem>>, vector<1x256xf32>
      %cst_26 = arith.constant 5.000000e-01 : f32
      %43 = vector.broadcast %cst_26 : f32 to vector<1x256xf32>
      %44 = arith.mulf %42, %43 : vector<1x256xf32>
      %c0_27 = arith.constant 0 : index
      %c0_28 = arith.constant 0 : index
      %45 = vector.load %arg11[%c0_27, %c0_28] : memref<1x256xf32, #tpu.memory_space<vmem>>, vector<1x256xf32>
      %cst_29 = arith.constant 1.250000e-01 : f32
      %46 = vector.broadcast %cst_29 : f32 to vector<1x256xf32>
      %47 = arith.mulf %45, %46 : vector<1x256xf32>
      %c0_30 = arith.constant 0 : index
      %c0_31 = arith.constant 0 : index
      %48 = vector.load %arg12[%c0_30, %c0_31] : memref<1x256xf32, #tpu.memory_space<vmem>>, vector<1x256xf32>
      %cst_32 = arith.constant 5.000000e-01 : f32
      %49 = vector.broadcast %cst_32 : f32 to vector<1x256xf32>
      %50 = arith.mulf %48, %49 : vector<1x256xf32>
      %cst_33 = arith.constant 0.000000e+00 : f32
      %51 = vector.broadcast %cst_33 : f32 to vector<1x256xf32>
      %52 = tpu.iota {dimensions = array<i32: 1>} : vector<1x256xi32>
      %c16_i32 = arith.constant 16 : i32
      %c0_i32_34 = arith.constant 0 : i32
      %53 = arith.cmpi eq, %c16_i32, %c0_i32_34 : i32
      %c1_i32_35 = arith.constant 1 : i32
      %54 = arith.select %53, %c1_i32_35, %c16_i32 : i32
      %55 = vector.broadcast %54 : i32 to vector<1x256xi32>
      %56 = arith.remsi %52, %55 : vector<1x256xi32>
      %c0_i32_36 = arith.constant 0 : i32
      %57 = vector.broadcast %c0_i32_36 : i32 to vector<1x256xi32>
      %58 = arith.cmpi ne, %56, %57 : vector<1x256xi32>
      %c0_i32_37 = arith.constant 0 : i32
      %59 = vector.broadcast %c0_i32_37 : i32 to vector<1x256xi32>
      %60 = arith.cmpi slt, %56, %59 : vector<1x256xi32>
      %c0_i32_38 = arith.constant 0 : i32
      %61 = arith.cmpi slt, %54, %c0_i32_38 : i32
      %62 = vector.broadcast %61 : i1 to vector<1x256xi1>
      %63 = vector.broadcast %62 : vector<1x256xi1> to vector<1x256xi1>
      %64 = arith.xori %60, %63 : vector<1x256xi1>
      %65 = arith.andi %64, %58 : vector<1x256xi1>
      %66 = vector.broadcast %54 : i32 to vector<1x256xi32>
      %67 = arith.addi %56, %66 : vector<1x256xi32>
      %68 = arith.select %65, %67, %56 : vector<1x256xi1>, vector<1x256xi32>
      %c16_i32_39 = arith.constant 16 : i32
      %69 = vector.broadcast %c16_i32_39 : i32 to vector<1x256xi32>
      %70 = arith.cmpi sge, %52, %69 : vector<1x256xi32>
      %c240_i32 = arith.constant 240 : i32
      %71 = vector.broadcast %c240_i32 : i32 to vector<1x256xi32>
      %72 = arith.cmpi slt, %52, %71 : vector<1x256xi32>
      %c1_i32_40 = arith.constant 1 : i32
      %73 = vector.broadcast %c1_i32_40 : i32 to vector<1x256xi32>
      %74 = arith.cmpi sge, %68, %73 : vector<1x256xi32>
      %c15_i32 = arith.constant 15 : i32
      %75 = vector.broadcast %c15_i32 : i32 to vector<1x256xi32>
      %76 = arith.cmpi slt, %68, %75 : vector<1x256xi32>
      %c0_41 = arith.constant 0 : index
      %77 = memref.load %arg3[%c0_41] : memref<4xf32, #tpu.memory_space<smem>>
      %78 = vector.broadcast %77 : f32 to vector<1x256xf32>
      %c1 = arith.constant 1 : index
      %79 = memref.load %arg3[%c1] : memref<4xf32, #tpu.memory_space<smem>>
      %80 = vector.broadcast %79 : f32 to vector<1x256xf32>
      %c2 = arith.constant 2 : index
      %81 = memref.load %arg3[%c2] : memref<4xf32, #tpu.memory_space<smem>>
      %82 = vector.broadcast %81 : f32 to vector<1x256xf32>
      %c3 = arith.constant 3 : index
      %83 = memref.load %arg3[%c3] : memref<4xf32, #tpu.memory_space<smem>>
      %84 = vector.broadcast %83 : f32 to vector<1x256xf32>
      %c16_i32_42 = arith.constant 16 : i32
      %85 = tpu.dynamic_rotate %41 by %c16_i32_42 dim 1 : vector<1x256xf32>, i32 -> vector<1x256xf32>
      %86 = arith.select %70, %85, %51 : vector<1x256xi1>, vector<1x256xf32>
      %c240_i32_43 = arith.constant 240 : i32
      %87 = tpu.dynamic_rotate %41 by %c240_i32_43 dim 1 : vector<1x256xf32>, i32 -> vector<1x256xf32>
      %88 = arith.select %72, %87, %51 : vector<1x256xi1>, vector<1x256xf32>
      %c1_i32_44 = arith.constant 1 : i32
      %89 = tpu.dynamic_rotate %86 by %c1_i32_44 dim 1 : vector<1x256xf32>, i32 -> vector<1x256xf32>
      %90 = arith.select %74, %89, %51 : vector<1x256xi1>, vector<1x256xf32>
      %c255_i32 = arith.constant 255 : i32
      %91 = tpu.dynamic_rotate %86 by %c255_i32 dim 1 : vector<1x256xf32>, i32 -> vector<1x256xf32>
      %92 = arith.select %76, %91, %51 : vector<1x256xi1>, vector<1x256xf32>
      %c1_i32_45 = arith.constant 1 : i32
      %93 = tpu.dynamic_rotate %41 by %c1_i32_45 dim 1 : vector<1x256xf32>, i32 -> vector<1x256xf32>
      %94 = arith.select %74, %93, %51 : vector<1x256xi1>, vector<1x256xf32>
      %c255_i32_46 = arith.constant 255 : i32
      %95 = tpu.dynamic_rotate %41 by %c255_i32_46 dim 1 : vector<1x256xf32>, i32 -> vector<1x256xf32>
      %96 = arith.select %76, %95, %51 : vector<1x256xi1>, vector<1x256xf32>
      %c1_i32_47 = arith.constant 1 : i32
      %97 = tpu.dynamic_rotate %88 by %c1_i32_47 dim 1 : vector<1x256xf32>, i32 -> vector<1x256xf32>
      %98 = arith.select %74, %97, %51 : vector<1x256xi1>, vector<1x256xf32>
      %c255_i32_48 = arith.constant 255 : i32
      %99 = tpu.dynamic_rotate %88 by %c255_i32_48 dim 1 : vector<1x256xf32>, i32 -> vector<1x256xf32>
      %100 = arith.select %76, %99, %51 : vector<1x256xi1>, vector<1x256xf32>
      %c0_49 = arith.constant 0 : index
      %101 = memref.load %arg2[%c0_49] : memref<144xf32, #tpu.memory_space<smem>>
      %102 = vector.broadcast %101 : f32 to vector<1x256xf32>
      %103 = arith.mulf %102, %90 : vector<1x256xf32>
      %104 = arith.addf %78, %103 : vector<1x256xf32>
      %c36 = arith.constant 36 : index
      %105 = memref.load %arg2[%c36] : memref<144xf32, #tpu.memory_space<smem>>
      %106 = vector.broadcast %105 : f32 to vector<1x256xf32>
      %107 = arith.mulf %106, %90 : vector<1x256xf32>
      %108 = arith.addf %80, %107 : vector<1x256xf32>
      %c72 = arith.constant 72 : index
      %109 = memref.load %arg2[%c72] : memref<144xf32, #tpu.memory_space<smem>>
      %110 = vector.broadcast %109 : f32 to vector<1x256xf32>
      %111 = arith.mulf %110, %90 : vector<1x256xf32>
      %112 = arith.addf %82, %111 : vector<1x256xf32>
      %c108 = arith.constant 108 : index
      %113 = memref.load %arg2[%c108] : memref<144xf32, #tpu.memory_space<smem>>
      %114 = vector.broadcast %113 : f32 to vector<1x256xf32>
      %115 = arith.mulf %114, %90 : vector<1x256xf32>
      %116 = arith.addf %84, %115 : vector<1x256xf32>
      %c1_50 = arith.constant 1 : index
      %117 = memref.load %arg2[%c1_50] : memref<144xf32, #tpu.memory_space<smem>>
      %118 = vector.broadcast %117 : f32 to vector<1x256xf32>
      %119 = arith.mulf %118, %86 : vector<1x256xf32>
      %120 = arith.addf %104, %119 : vector<1x256xf32>
      %c37 = arith.constant 37 : index
      %121 = memref.load %arg2[%c37] : memref<144xf32, #tpu.memory_space<smem>>
      %122 = vector.broadcast %121 : f32 to vector<1x256xf32>
      %123 = arith.mulf %122, %86 : vector<1x256xf32>
      %124 = arith.addf %108, %123 : vector<1x256xf32>
      %c73 = arith.constant 73 : index
      %125 = memref.load %arg2[%c73] : memref<144xf32, #tpu.memory_space<smem>>
      %126 = vector.broadcast %125 : f32 to vector<1x256xf32>
      %127 = arith.mulf %126, %86 : vector<1x256xf32>
      %128 = arith.addf %112, %127 : vector<1x256xf32>
      %c109 = arith.constant 109 : index
      %129 = memref.load %arg2[%c109] : memref<144xf32, #tpu.memory_space<smem>>
      %130 = vector.broadcast %129 : f32 to vector<1x256xf32>
      %131 = arith.mulf %130, %86 : vector<1x256xf32>
      %132 = arith.addf %116, %131 : vector<1x256xf32>
      %c2_51 = arith.constant 2 : index
      %133 = memref.load %arg2[%c2_51] : memref<144xf32, #tpu.memory_space<smem>>
      %134 = vector.broadcast %133 : f32 to vector<1x256xf32>
      %135 = arith.mulf %134, %92 : vector<1x256xf32>
      %136 = arith.addf %120, %135 : vector<1x256xf32>
      %c38 = arith.constant 38 : index
      %137 = memref.load %arg2[%c38] : memref<144xf32, #tpu.memory_space<smem>>
      %138 = vector.broadcast %137 : f32 to vector<1x256xf32>
      %139 = arith.mulf %138, %92 : vector<1x256xf32>
      %140 = arith.addf %124, %139 : vector<1x256xf32>
      %c74 = arith.constant 74 : index
      %141 = memref.load %arg2[%c74] : memref<144xf32, #tpu.memory_space<smem>>
      %142 = vector.broadcast %141 : f32 to vector<1x256xf32>
      %143 = arith.mulf %142, %92 : vector<1x256xf32>
      %144 = arith.addf %128, %143 : vector<1x256xf32>
      %c110 = arith.constant 110 : index
      %145 = memref.load %arg2[%c110] : memref<144xf32, #tpu.memory_space<smem>>
      %146 = vector.broadcast %145 : f32 to vector<1x256xf32>
      %147 = arith.mulf %146, %92 : vector<1x256xf32>
      %148 = arith.addf %132, %147 : vector<1x256xf32>
      %c3_52 = arith.constant 3 : index
      %149 = memref.load %arg2[%c3_52] : memref<144xf32, #tpu.memory_space<smem>>
      %150 = vector.broadcast %149 : f32 to vector<1x256xf32>
      %151 = arith.mulf %150, %94 : vector<1x256xf32>
      %152 = arith.addf %136, %151 : vector<1x256xf32>
      %c39 = arith.constant 39 : index
      %153 = memref.load %arg2[%c39] : memref<144xf32, #tpu.memory_space<smem>>
      %154 = vector.broadcast %153 : f32 to vector<1x256xf32>
      %155 = arith.mulf %154, %94 : vector<1x256xf32>
      %156 = arith.addf %140, %155 : vector<1x256xf32>
      %c75 = arith.constant 75 : index
      %157 = memref.load %arg2[%c75] : memref<144xf32, #tpu.memory_space<smem>>
      %158 = vector.broadcast %157 : f32 to vector<1x256xf32>
      %159 = arith.mulf %158, %94 : vector<1x256xf32>
      %160 = arith.addf %144, %159 : vector<1x256xf32>
      %c111 = arith.constant 111 : index
      %161 = memref.load %arg2[%c111] : memref<144xf32, #tpu.memory_space<smem>>
      %162 = vector.broadcast %161 : f32 to vector<1x256xf32>
      %163 = arith.mulf %162, %94 : vector<1x256xf32>
      %164 = arith.addf %148, %163 : vector<1x256xf32>
      %c4 = arith.constant 4 : index
      %165 = memref.load %arg2[%c4] : memref<144xf32, #tpu.memory_space<smem>>
      %166 = vector.broadcast %165 : f32 to vector<1x256xf32>
      %167 = arith.mulf %166, %41 : vector<1x256xf32>
      %168 = arith.addf %152, %167 : vector<1x256xf32>
      %c40 = arith.constant 40 : index
      %169 = memref.load %arg2[%c40] : memref<144xf32, #tpu.memory_space<smem>>
      %170 = vector.broadcast %169 : f32 to vector<1x256xf32>
      %171 = arith.mulf %170, %41 : vector<1x256xf32>
      %172 = arith.addf %156, %171 : vector<1x256xf32>
      %c76 = arith.constant 76 : index
      %173 = memref.load %arg2[%c76] : memref<144xf32, #tpu.memory_space<smem>>
      %174 = vector.broadcast %173 : f32 to vector<1x256xf32>
      %175 = arith.mulf %174, %41 : vector<1x256xf32>
      %176 = arith.addf %160, %175 : vector<1x256xf32>
      %c112 = arith.constant 112 : index
      %177 = memref.load %arg2[%c112] : memref<144xf32, #tpu.memory_space<smem>>
      %178 = vector.broadcast %177 : f32 to vector<1x256xf32>
      %179 = arith.mulf %178, %41 : vector<1x256xf32>
      %180 = arith.addf %164, %179 : vector<1x256xf32>
      %c5 = arith.constant 5 : index
      %181 = memref.load %arg2[%c5] : memref<144xf32, #tpu.memory_space<smem>>
      %182 = vector.broadcast %181 : f32 to vector<1x256xf32>
      %183 = arith.mulf %182, %96 : vector<1x256xf32>
      %184 = arith.addf %168, %183 : vector<1x256xf32>
      %c41 = arith.constant 41 : index
      %185 = memref.load %arg2[%c41] : memref<144xf32, #tpu.memory_space<smem>>
      %186 = vector.broadcast %185 : f32 to vector<1x256xf32>
      %187 = arith.mulf %186, %96 : vector<1x256xf32>
      %188 = arith.addf %172, %187 : vector<1x256xf32>
      %c77 = arith.constant 77 : index
      %189 = memref.load %arg2[%c77] : memref<144xf32, #tpu.memory_space<smem>>
      %190 = vector.broadcast %189 : f32 to vector<1x256xf32>
      %191 = arith.mulf %190, %96 : vector<1x256xf32>
      %192 = arith.addf %176, %191 : vector<1x256xf32>
      %c113 = arith.constant 113 : index
      %193 = memref.load %arg2[%c113] : memref<144xf32, #tpu.memory_space<smem>>
      %194 = vector.broadcast %193 : f32 to vector<1x256xf32>
      %195 = arith.mulf %194, %96 : vector<1x256xf32>
      %196 = arith.addf %180, %195 : vector<1x256xf32>
      %c6 = arith.constant 6 : index
      %197 = memref.load %arg2[%c6] : memref<144xf32, #tpu.memory_space<smem>>
      %198 = vector.broadcast %197 : f32 to vector<1x256xf32>
      %199 = arith.mulf %198, %98 : vector<1x256xf32>
      %200 = arith.addf %184, %199 : vector<1x256xf32>
      %c42 = arith.constant 42 : index
      %201 = memref.load %arg2[%c42] : memref<144xf32, #tpu.memory_space<smem>>
      %202 = vector.broadcast %201 : f32 to vector<1x256xf32>
      %203 = arith.mulf %202, %98 : vector<1x256xf32>
      %204 = arith.addf %188, %203 : vector<1x256xf32>
      %c78 = arith.constant 78 : index
      %205 = memref.load %arg2[%c78] : memref<144xf32, #tpu.memory_space<smem>>
      %206 = vector.broadcast %205 : f32 to vector<1x256xf32>
      %207 = arith.mulf %206, %98 : vector<1x256xf32>
      %208 = arith.addf %192, %207 : vector<1x256xf32>
      %c114 = arith.constant 114 : index
      %209 = memref.load %arg2[%c114] : memref<144xf32, #tpu.memory_space<smem>>
      %210 = vector.broadcast %209 : f32 to vector<1x256xf32>
      %211 = arith.mulf %210, %98 : vector<1x256xf32>
      %212 = arith.addf %196, %211 : vector<1x256xf32>
      %c7 = arith.constant 7 : index
      %213 = memref.load %arg2[%c7] : memref<144xf32, #tpu.memory_space<smem>>
      %214 = vector.broadcast %213 : f32 to vector<1x256xf32>
      %215 = arith.mulf %214, %88 : vector<1x256xf32>
      %216 = arith.addf %200, %215 : vector<1x256xf32>
      %c43 = arith.constant 43 : index
      %217 = memref.load %arg2[%c43] : memref<144xf32, #tpu.memory_space<smem>>
      %218 = vector.broadcast %217 : f32 to vector<1x256xf32>
      %219 = arith.mulf %218, %88 : vector<1x256xf32>
      %220 = arith.addf %204, %219 : vector<1x256xf32>
      %c79 = arith.constant 79 : index
      %221 = memref.load %arg2[%c79] : memref<144xf32, #tpu.memory_space<smem>>
      %222 = vector.broadcast %221 : f32 to vector<1x256xf32>
      %223 = arith.mulf %222, %88 : vector<1x256xf32>
      %224 = arith.addf %208, %223 : vector<1x256xf32>
      %c115 = arith.constant 115 : index
      %225 = memref.load %arg2[%c115] : memref<144xf32, #tpu.memory_space<smem>>
      %226 = vector.broadcast %225 : f32 to vector<1x256xf32>
      %227 = arith.mulf %226, %88 : vector<1x256xf32>
      %228 = arith.addf %212, %227 : vector<1x256xf32>
      %c8 = arith.constant 8 : index
      %229 = memref.load %arg2[%c8] : memref<144xf32, #tpu.memory_space<smem>>
      %230 = vector.broadcast %229 : f32 to vector<1x256xf32>
      %231 = arith.mulf %230, %100 : vector<1x256xf32>
      %232 = arith.addf %216, %231 : vector<1x256xf32>
      %c44 = arith.constant 44 : index
      %233 = memref.load %arg2[%c44] : memref<144xf32, #tpu.memory_space<smem>>
      %234 = vector.broadcast %233 : f32 to vector<1x256xf32>
      %235 = arith.mulf %234, %100 : vector<1x256xf32>
      %236 = arith.addf %220, %235 : vector<1x256xf32>
      %c80 = arith.constant 80 : index
      %237 = memref.load %arg2[%c80] : memref<144xf32, #tpu.memory_space<smem>>
      %238 = vector.broadcast %237 : f32 to vector<1x256xf32>
      %239 = arith.mulf %238, %100 : vector<1x256xf32>
      %240 = arith.addf %224, %239 : vector<1x256xf32>
      %c116 = arith.constant 116 : index
      %241 = memref.load %arg2[%c116] : memref<144xf32, #tpu.memory_space<smem>>
      %242 = vector.broadcast %241 : f32 to vector<1x256xf32>
      %243 = arith.mulf %242, %100 : vector<1x256xf32>
      %244 = arith.addf %228, %243 : vector<1x256xf32>
      %c16_i32_53 = arith.constant 16 : i32
      %245 = tpu.dynamic_rotate %44 by %c16_i32_53 dim 1 : vector<1x256xf32>, i32 -> vector<1x256xf32>
      %246 = arith.select %70, %245, %51 : vector<1x256xi1>, vector<1x256xf32>
      %c240_i32_54 = arith.constant 240 : i32
      %247 = tpu.dynamic_rotate %44 by %c240_i32_54 dim 1 : vector<1x256xf32>, i32 -> vector<1x256xf32>
      %248 = arith.select %72, %247, %51 : vector<1x256xi1>, vector<1x256xf32>
      %c1_i32_55 = arith.constant 1 : i32
      %249 = tpu.dynamic_rotate %246 by %c1_i32_55 dim 1 : vector<1x256xf32>, i32 -> vector<1x256xf32>
      %250 = arith.select %74, %249, %51 : vector<1x256xi1>, vector<1x256xf32>
      %c255_i32_56 = arith.constant 255 : i32
      %251 = tpu.dynamic_rotate %246 by %c255_i32_56 dim 1 : vector<1x256xf32>, i32 -> vector<1x256xf32>
      %252 = arith.select %76, %251, %51 : vector<1x256xi1>, vector<1x256xf32>
      %c1_i32_57 = arith.constant 1 : i32
      %253 = tpu.dynamic_rotate %44 by %c1_i32_57 dim 1 : vector<1x256xf32>, i32 -> vector<1x256xf32>
      %254 = arith.select %74, %253, %51 : vector<1x256xi1>, vector<1x256xf32>
      %c255_i32_58 = arith.constant 255 : i32
      %255 = tpu.dynamic_rotate %44 by %c255_i32_58 dim 1 : vector<1x256xf32>, i32 -> vector<1x256xf32>
      %256 = arith.select %76, %255, %51 : vector<1x256xi1>, vector<1x256xf32>
      %c1_i32_59 = arith.constant 1 : i32
      %257 = tpu.dynamic_rotate %248 by %c1_i32_59 dim 1 : vector<1x256xf32>, i32 -> vector<1x256xf32>
      %258 = arith.select %74, %257, %51 : vector<1x256xi1>, vector<1x256xf32>
      %c255_i32_60 = arith.constant 255 : i32
      %259 = tpu.dynamic_rotate %248 by %c255_i32_60 dim 1 : vector<1x256xf32>, i32 -> vector<1x256xf32>
      %260 = arith.select %76, %259, %51 : vector<1x256xi1>, vector<1x256xf32>
      %c9 = arith.constant 9 : index
      %261 = memref.load %arg2[%c9] : memref<144xf32, #tpu.memory_space<smem>>
      %262 = vector.broadcast %261 : f32 to vector<1x256xf32>
      %263 = arith.mulf %262, %250 : vector<1x256xf32>
      %264 = arith.addf %232, %263 : vector<1x256xf32>
      %c45 = arith.constant 45 : index
      %265 = memref.load %arg2[%c45] : memref<144xf32, #tpu.memory_space<smem>>
      %266 = vector.broadcast %265 : f32 to vector<1x256xf32>
      %267 = arith.mulf %266, %250 : vector<1x256xf32>
      %268 = arith.addf %236, %267 : vector<1x256xf32>
      %c81 = arith.constant 81 : index
      %269 = memref.load %arg2[%c81] : memref<144xf32, #tpu.memory_space<smem>>
      %270 = vector.broadcast %269 : f32 to vector<1x256xf32>
      %271 = arith.mulf %270, %250 : vector<1x256xf32>
      %272 = arith.addf %240, %271 : vector<1x256xf32>
      %c117 = arith.constant 117 : index
      %273 = memref.load %arg2[%c117] : memref<144xf32, #tpu.memory_space<smem>>
      %274 = vector.broadcast %273 : f32 to vector<1x256xf32>
      %275 = arith.mulf %274, %250 : vector<1x256xf32>
      %276 = arith.addf %244, %275 : vector<1x256xf32>
      %c10 = arith.constant 10 : index
      %277 = memref.load %arg2[%c10] : memref<144xf32, #tpu.memory_space<smem>>
      %278 = vector.broadcast %277 : f32 to vector<1x256xf32>
      %279 = arith.mulf %278, %246 : vector<1x256xf32>
      %280 = arith.addf %264, %279 : vector<1x256xf32>
      %c46 = arith.constant 46 : index
      %281 = memref.load %arg2[%c46] : memref<144xf32, #tpu.memory_space<smem>>
      %282 = vector.broadcast %281 : f32 to vector<1x256xf32>
      %283 = arith.mulf %282, %246 : vector<1x256xf32>
      %284 = arith.addf %268, %283 : vector<1x256xf32>
      %c82 = arith.constant 82 : index
      %285 = memref.load %arg2[%c82] : memref<144xf32, #tpu.memory_space<smem>>
      %286 = vector.broadcast %285 : f32 to vector<1x256xf32>
      %287 = arith.mulf %286, %246 : vector<1x256xf32>
      %288 = arith.addf %272, %287 : vector<1x256xf32>
      %c118 = arith.constant 118 : index
      %289 = memref.load %arg2[%c118] : memref<144xf32, #tpu.memory_space<smem>>
      %290 = vector.broadcast %289 : f32 to vector<1x256xf32>
      %291 = arith.mulf %290, %246 : vector<1x256xf32>
      %292 = arith.addf %276, %291 : vector<1x256xf32>
      %c11 = arith.constant 11 : index
      %293 = memref.load %arg2[%c11] : memref<144xf32, #tpu.memory_space<smem>>
      %294 = vector.broadcast %293 : f32 to vector<1x256xf32>
      %295 = arith.mulf %294, %252 : vector<1x256xf32>
      %296 = arith.addf %280, %295 : vector<1x256xf32>
      %c47 = arith.constant 47 : index
      %297 = memref.load %arg2[%c47] : memref<144xf32, #tpu.memory_space<smem>>
      %298 = vector.broadcast %297 : f32 to vector<1x256xf32>
      %299 = arith.mulf %298, %252 : vector<1x256xf32>
      %300 = arith.addf %284, %299 : vector<1x256xf32>
      %c83 = arith.constant 83 : index
      %301 = memref.load %arg2[%c83] : memref<144xf32, #tpu.memory_space<smem>>
      %302 = vector.broadcast %301 : f32 to vector<1x256xf32>
      %303 = arith.mulf %302, %252 : vector<1x256xf32>
      %304 = arith.addf %288, %303 : vector<1x256xf32>
      %c119 = arith.constant 119 : index
      %305 = memref.load %arg2[%c119] : memref<144xf32, #tpu.memory_space<smem>>
      %306 = vector.broadcast %305 : f32 to vector<1x256xf32>
      %307 = arith.mulf %306, %252 : vector<1x256xf32>
      %308 = arith.addf %292, %307 : vector<1x256xf32>
      %c12 = arith.constant 12 : index
      %309 = memref.load %arg2[%c12] : memref<144xf32, #tpu.memory_space<smem>>
      %310 = vector.broadcast %309 : f32 to vector<1x256xf32>
      %311 = arith.mulf %310, %254 : vector<1x256xf32>
      %312 = arith.addf %296, %311 : vector<1x256xf32>
      %c48 = arith.constant 48 : index
      %313 = memref.load %arg2[%c48] : memref<144xf32, #tpu.memory_space<smem>>
      %314 = vector.broadcast %313 : f32 to vector<1x256xf32>
      %315 = arith.mulf %314, %254 : vector<1x256xf32>
      %316 = arith.addf %300, %315 : vector<1x256xf32>
      %c84 = arith.constant 84 : index
      %317 = memref.load %arg2[%c84] : memref<144xf32, #tpu.memory_space<smem>>
      %318 = vector.broadcast %317 : f32 to vector<1x256xf32>
      %319 = arith.mulf %318, %254 : vector<1x256xf32>
      %320 = arith.addf %304, %319 : vector<1x256xf32>
      %c120 = arith.constant 120 : index
      %321 = memref.load %arg2[%c120] : memref<144xf32, #tpu.memory_space<smem>>
      %322 = vector.broadcast %321 : f32 to vector<1x256xf32>
      %323 = arith.mulf %322, %254 : vector<1x256xf32>
      %324 = arith.addf %308, %323 : vector<1x256xf32>
      %c13 = arith.constant 13 : index
      %325 = memref.load %arg2[%c13] : memref<144xf32, #tpu.memory_space<smem>>
      %326 = vector.broadcast %325 : f32 to vector<1x256xf32>
      %327 = arith.mulf %326, %44 : vector<1x256xf32>
      %328 = arith.addf %312, %327 : vector<1x256xf32>
      %c49 = arith.constant 49 : index
      %329 = memref.load %arg2[%c49] : memref<144xf32, #tpu.memory_space<smem>>
      %330 = vector.broadcast %329 : f32 to vector<1x256xf32>
      %331 = arith.mulf %330, %44 : vector<1x256xf32>
      %332 = arith.addf %316, %331 : vector<1x256xf32>
      %c85 = arith.constant 85 : index
      %333 = memref.load %arg2[%c85] : memref<144xf32, #tpu.memory_space<smem>>
      %334 = vector.broadcast %333 : f32 to vector<1x256xf32>
      %335 = arith.mulf %334, %44 : vector<1x256xf32>
      %336 = arith.addf %320, %335 : vector<1x256xf32>
      %c121 = arith.constant 121 : index
      %337 = memref.load %arg2[%c121] : memref<144xf32, #tpu.memory_space<smem>>
      %338 = vector.broadcast %337 : f32 to vector<1x256xf32>
      %339 = arith.mulf %338, %44 : vector<1x256xf32>
      %340 = arith.addf %324, %339 : vector<1x256xf32>
      %c14 = arith.constant 14 : index
      %341 = memref.load %arg2[%c14] : memref<144xf32, #tpu.memory_space<smem>>
      %342 = vector.broadcast %341 : f32 to vector<1x256xf32>
      %343 = arith.mulf %342, %256 : vector<1x256xf32>
      %344 = arith.addf %328, %343 : vector<1x256xf32>
      %c50 = arith.constant 50 : index
      %345 = memref.load %arg2[%c50] : memref<144xf32, #tpu.memory_space<smem>>
      %346 = vector.broadcast %345 : f32 to vector<1x256xf32>
      %347 = arith.mulf %346, %256 : vector<1x256xf32>
      %348 = arith.addf %332, %347 : vector<1x256xf32>
      %c86 = arith.constant 86 : index
      %349 = memref.load %arg2[%c86] : memref<144xf32, #tpu.memory_space<smem>>
      %350 = vector.broadcast %349 : f32 to vector<1x256xf32>
      %351 = arith.mulf %350, %256 : vector<1x256xf32>
      %352 = arith.addf %336, %351 : vector<1x256xf32>
      %c122 = arith.constant 122 : index
      %353 = memref.load %arg2[%c122] : memref<144xf32, #tpu.memory_space<smem>>
      %354 = vector.broadcast %353 : f32 to vector<1x256xf32>
      %355 = arith.mulf %354, %256 : vector<1x256xf32>
      %356 = arith.addf %340, %355 : vector<1x256xf32>
      %c15 = arith.constant 15 : index
      %357 = memref.load %arg2[%c15] : memref<144xf32, #tpu.memory_space<smem>>
      %358 = vector.broadcast %357 : f32 to vector<1x256xf32>
      %359 = arith.mulf %358, %258 : vector<1x256xf32>
      %360 = arith.addf %344, %359 : vector<1x256xf32>
      %c51 = arith.constant 51 : index
      %361 = memref.load %arg2[%c51] : memref<144xf32, #tpu.memory_space<smem>>
      %362 = vector.broadcast %361 : f32 to vector<1x256xf32>
      %363 = arith.mulf %362, %258 : vector<1x256xf32>
      %364 = arith.addf %348, %363 : vector<1x256xf32>
      %c87 = arith.constant 87 : index
      %365 = memref.load %arg2[%c87] : memref<144xf32, #tpu.memory_space<smem>>
      %366 = vector.broadcast %365 : f32 to vector<1x256xf32>
      %367 = arith.mulf %366, %258 : vector<1x256xf32>
      %368 = arith.addf %352, %367 : vector<1x256xf32>
      %c123 = arith.constant 123 : index
      %369 = memref.load %arg2[%c123] : memref<144xf32, #tpu.memory_space<smem>>
      %370 = vector.broadcast %369 : f32 to vector<1x256xf32>
      %371 = arith.mulf %370, %258 : vector<1x256xf32>
      %372 = arith.addf %356, %371 : vector<1x256xf32>
      %c16 = arith.constant 16 : index
      %373 = memref.load %arg2[%c16] : memref<144xf32, #tpu.memory_space<smem>>
      %374 = vector.broadcast %373 : f32 to vector<1x256xf32>
      %375 = arith.mulf %374, %248 : vector<1x256xf32>
      %376 = arith.addf %360, %375 : vector<1x256xf32>
      %c52 = arith.constant 52 : index
      %377 = memref.load %arg2[%c52] : memref<144xf32, #tpu.memory_space<smem>>
      %378 = vector.broadcast %377 : f32 to vector<1x256xf32>
      %379 = arith.mulf %378, %248 : vector<1x256xf32>
      %380 = arith.addf %364, %379 : vector<1x256xf32>
      %c88 = arith.constant 88 : index
      %381 = memref.load %arg2[%c88] : memref<144xf32, #tpu.memory_space<smem>>
      %382 = vector.broadcast %381 : f32 to vector<1x256xf32>
      %383 = arith.mulf %382, %248 : vector<1x256xf32>
      %384 = arith.addf %368, %383 : vector<1x256xf32>
      %c124 = arith.constant 124 : index
      %385 = memref.load %arg2[%c124] : memref<144xf32, #tpu.memory_space<smem>>
      %386 = vector.broadcast %385 : f32 to vector<1x256xf32>
      %387 = arith.mulf %386, %248 : vector<1x256xf32>
      %388 = arith.addf %372, %387 : vector<1x256xf32>
      %c17 = arith.constant 17 : index
      %389 = memref.load %arg2[%c17] : memref<144xf32, #tpu.memory_space<smem>>
      %390 = vector.broadcast %389 : f32 to vector<1x256xf32>
      %391 = arith.mulf %390, %260 : vector<1x256xf32>
      %392 = arith.addf %376, %391 : vector<1x256xf32>
      %c53 = arith.constant 53 : index
      %393 = memref.load %arg2[%c53] : memref<144xf32, #tpu.memory_space<smem>>
      %394 = vector.broadcast %393 : f32 to vector<1x256xf32>
      %395 = arith.mulf %394, %260 : vector<1x256xf32>
      %396 = arith.addf %380, %395 : vector<1x256xf32>
      %c89 = arith.constant 89 : index
      %397 = memref.load %arg2[%c89] : memref<144xf32, #tpu.memory_space<smem>>
      %398 = vector.broadcast %397 : f32 to vector<1x256xf32>
      %399 = arith.mulf %398, %260 : vector<1x256xf32>
      %400 = arith.addf %384, %399 : vector<1x256xf32>
      %c125 = arith.constant 125 : index
      %401 = memref.load %arg2[%c125] : memref<144xf32, #tpu.memory_space<smem>>
      %402 = vector.broadcast %401 : f32 to vector<1x256xf32>
      %403 = arith.mulf %402, %260 : vector<1x256xf32>
      %404 = arith.addf %388, %403 : vector<1x256xf32>
      %c16_i32_61 = arith.constant 16 : i32
      %405 = tpu.dynamic_rotate %47 by %c16_i32_61 dim 1 : vector<1x256xf32>, i32 -> vector<1x256xf32>
      %406 = arith.select %70, %405, %51 : vector<1x256xi1>, vector<1x256xf32>
      %c240_i32_62 = arith.constant 240 : i32
      %407 = tpu.dynamic_rotate %47 by %c240_i32_62 dim 1 : vector<1x256xf32>, i32 -> vector<1x256xf32>
      %408 = arith.select %72, %407, %51 : vector<1x256xi1>, vector<1x256xf32>
      %c1_i32_63 = arith.constant 1 : i32
      %409 = tpu.dynamic_rotate %406 by %c1_i32_63 dim 1 : vector<1x256xf32>, i32 -> vector<1x256xf32>
      %410 = arith.select %74, %409, %51 : vector<1x256xi1>, vector<1x256xf32>
      %c255_i32_64 = arith.constant 255 : i32
      %411 = tpu.dynamic_rotate %406 by %c255_i32_64 dim 1 : vector<1x256xf32>, i32 -> vector<1x256xf32>
      %412 = arith.select %76, %411, %51 : vector<1x256xi1>, vector<1x256xf32>
      %c1_i32_65 = arith.constant 1 : i32
      %413 = tpu.dynamic_rotate %47 by %c1_i32_65 dim 1 : vector<1x256xf32>, i32 -> vector<1x256xf32>
      %414 = arith.select %74, %413, %51 : vector<1x256xi1>, vector<1x256xf32>
      %c255_i32_66 = arith.constant 255 : i32
      %415 = tpu.dynamic_rotate %47 by %c255_i32_66 dim 1 : vector<1x256xf32>, i32 -> vector<1x256xf32>
      %416 = arith.select %76, %415, %51 : vector<1x256xi1>, vector<1x256xf32>
      %c1_i32_67 = arith.constant 1 : i32
      %417 = tpu.dynamic_rotate %408 by %c1_i32_67 dim 1 : vector<1x256xf32>, i32 -> vector<1x256xf32>
      %418 = arith.select %74, %417, %51 : vector<1x256xi1>, vector<1x256xf32>
      %c255_i32_68 = arith.constant 255 : i32
      %419 = tpu.dynamic_rotate %408 by %c255_i32_68 dim 1 : vector<1x256xf32>, i32 -> vector<1x256xf32>
      %420 = arith.select %76, %419, %51 : vector<1x256xi1>, vector<1x256xf32>
      %c18 = arith.constant 18 : index
      %421 = memref.load %arg2[%c18] : memref<144xf32, #tpu.memory_space<smem>>
      %422 = vector.broadcast %421 : f32 to vector<1x256xf32>
      %423 = arith.mulf %422, %410 : vector<1x256xf32>
      %424 = arith.addf %392, %423 : vector<1x256xf32>
      %c54 = arith.constant 54 : index
      %425 = memref.load %arg2[%c54] : memref<144xf32, #tpu.memory_space<smem>>
      %426 = vector.broadcast %425 : f32 to vector<1x256xf32>
      %427 = arith.mulf %426, %410 : vector<1x256xf32>
      %428 = arith.addf %396, %427 : vector<1x256xf32>
      %c90 = arith.constant 90 : index
      %429 = memref.load %arg2[%c90] : memref<144xf32, #tpu.memory_space<smem>>
      %430 = vector.broadcast %429 : f32 to vector<1x256xf32>
      %431 = arith.mulf %430, %410 : vector<1x256xf32>
      %432 = arith.addf %400, %431 : vector<1x256xf32>
      %c126 = arith.constant 126 : index
      %433 = memref.load %arg2[%c126] : memref<144xf32, #tpu.memory_space<smem>>
      %434 = vector.broadcast %433 : f32 to vector<1x256xf32>
      %435 = arith.mulf %434, %410 : vector<1x256xf32>
      %436 = arith.addf %404, %435 : vector<1x256xf32>
      %c19 = arith.constant 19 : index
      %437 = memref.load %arg2[%c19] : memref<144xf32, #tpu.memory_space<smem>>
      %438 = vector.broadcast %437 : f32 to vector<1x256xf32>
      %439 = arith.mulf %438, %406 : vector<1x256xf32>
      %440 = arith.addf %424, %439 : vector<1x256xf32>
      %c55 = arith.constant 55 : index
      %441 = memref.load %arg2[%c55] : memref<144xf32, #tpu.memory_space<smem>>
      %442 = vector.broadcast %441 : f32 to vector<1x256xf32>
      %443 = arith.mulf %442, %406 : vector<1x256xf32>
      %444 = arith.addf %428, %443 : vector<1x256xf32>
      %c91 = arith.constant 91 : index
      %445 = memref.load %arg2[%c91] : memref<144xf32, #tpu.memory_space<smem>>
      %446 = vector.broadcast %445 : f32 to vector<1x256xf32>
      %447 = arith.mulf %446, %406 : vector<1x256xf32>
      %448 = arith.addf %432, %447 : vector<1x256xf32>
      %c127 = arith.constant 127 : index
      %449 = memref.load %arg2[%c127] : memref<144xf32, #tpu.memory_space<smem>>
      %450 = vector.broadcast %449 : f32 to vector<1x256xf32>
      %451 = arith.mulf %450, %406 : vector<1x256xf32>
      %452 = arith.addf %436, %451 : vector<1x256xf32>
      %c20 = arith.constant 20 : index
      %453 = memref.load %arg2[%c20] : memref<144xf32, #tpu.memory_space<smem>>
      %454 = vector.broadcast %453 : f32 to vector<1x256xf32>
      %455 = arith.mulf %454, %412 : vector<1x256xf32>
      %456 = arith.addf %440, %455 : vector<1x256xf32>
      %c56 = arith.constant 56 : index
      %457 = memref.load %arg2[%c56] : memref<144xf32, #tpu.memory_space<smem>>
      %458 = vector.broadcast %457 : f32 to vector<1x256xf32>
      %459 = arith.mulf %458, %412 : vector<1x256xf32>
      %460 = arith.addf %444, %459 : vector<1x256xf32>
      %c92 = arith.constant 92 : index
      %461 = memref.load %arg2[%c92] : memref<144xf32, #tpu.memory_space<smem>>
      %462 = vector.broadcast %461 : f32 to vector<1x256xf32>
      %463 = arith.mulf %462, %412 : vector<1x256xf32>
      %464 = arith.addf %448, %463 : vector<1x256xf32>
      %c128 = arith.constant 128 : index
      %465 = memref.load %arg2[%c128] : memref<144xf32, #tpu.memory_space<smem>>
      %466 = vector.broadcast %465 : f32 to vector<1x256xf32>
      %467 = arith.mulf %466, %412 : vector<1x256xf32>
      %468 = arith.addf %452, %467 : vector<1x256xf32>
      %c21 = arith.constant 21 : index
      %469 = memref.load %arg2[%c21] : memref<144xf32, #tpu.memory_space<smem>>
      %470 = vector.broadcast %469 : f32 to vector<1x256xf32>
      %471 = arith.mulf %470, %414 : vector<1x256xf32>
      %472 = arith.addf %456, %471 : vector<1x256xf32>
      %c57 = arith.constant 57 : index
      %473 = memref.load %arg2[%c57] : memref<144xf32, #tpu.memory_space<smem>>
      %474 = vector.broadcast %473 : f32 to vector<1x256xf32>
      %475 = arith.mulf %474, %414 : vector<1x256xf32>
      %476 = arith.addf %460, %475 : vector<1x256xf32>
      %c93 = arith.constant 93 : index
      %477 = memref.load %arg2[%c93] : memref<144xf32, #tpu.memory_space<smem>>
      %478 = vector.broadcast %477 : f32 to vector<1x256xf32>
      %479 = arith.mulf %478, %414 : vector<1x256xf32>
      %480 = arith.addf %464, %479 : vector<1x256xf32>
      %c129 = arith.constant 129 : index
      %481 = memref.load %arg2[%c129] : memref<144xf32, #tpu.memory_space<smem>>
      %482 = vector.broadcast %481 : f32 to vector<1x256xf32>
      %483 = arith.mulf %482, %414 : vector<1x256xf32>
      %484 = arith.addf %468, %483 : vector<1x256xf32>
      %c22 = arith.constant 22 : index
      %485 = memref.load %arg2[%c22] : memref<144xf32, #tpu.memory_space<smem>>
      %486 = vector.broadcast %485 : f32 to vector<1x256xf32>
      %487 = arith.mulf %486, %47 : vector<1x256xf32>
      %488 = arith.addf %472, %487 : vector<1x256xf32>
      %c58 = arith.constant 58 : index
      %489 = memref.load %arg2[%c58] : memref<144xf32, #tpu.memory_space<smem>>
      %490 = vector.broadcast %489 : f32 to vector<1x256xf32>
      %491 = arith.mulf %490, %47 : vector<1x256xf32>
      %492 = arith.addf %476, %491 : vector<1x256xf32>
      %c94 = arith.constant 94 : index
      %493 = memref.load %arg2[%c94] : memref<144xf32, #tpu.memory_space<smem>>
      %494 = vector.broadcast %493 : f32 to vector<1x256xf32>
      %495 = arith.mulf %494, %47 : vector<1x256xf32>
      %496 = arith.addf %480, %495 : vector<1x256xf32>
      %c130 = arith.constant 130 : index
      %497 = memref.load %arg2[%c130] : memref<144xf32, #tpu.memory_space<smem>>
      %498 = vector.broadcast %497 : f32 to vector<1x256xf32>
      %499 = arith.mulf %498, %47 : vector<1x256xf32>
      %500 = arith.addf %484, %499 : vector<1x256xf32>
      %c23 = arith.constant 23 : index
      %501 = memref.load %arg2[%c23] : memref<144xf32, #tpu.memory_space<smem>>
      %502 = vector.broadcast %501 : f32 to vector<1x256xf32>
      %503 = arith.mulf %502, %416 : vector<1x256xf32>
      %504 = arith.addf %488, %503 : vector<1x256xf32>
      %c59 = arith.constant 59 : index
      %505 = memref.load %arg2[%c59] : memref<144xf32, #tpu.memory_space<smem>>
      %506 = vector.broadcast %505 : f32 to vector<1x256xf32>
      %507 = arith.mulf %506, %416 : vector<1x256xf32>
      %508 = arith.addf %492, %507 : vector<1x256xf32>
      %c95 = arith.constant 95 : index
      %509 = memref.load %arg2[%c95] : memref<144xf32, #tpu.memory_space<smem>>
      %510 = vector.broadcast %509 : f32 to vector<1x256xf32>
      %511 = arith.mulf %510, %416 : vector<1x256xf32>
      %512 = arith.addf %496, %511 : vector<1x256xf32>
      %c131 = arith.constant 131 : index
      %513 = memref.load %arg2[%c131] : memref<144xf32, #tpu.memory_space<smem>>
      %514 = vector.broadcast %513 : f32 to vector<1x256xf32>
      %515 = arith.mulf %514, %416 : vector<1x256xf32>
      %516 = arith.addf %500, %515 : vector<1x256xf32>
      %c24 = arith.constant 24 : index
      %517 = memref.load %arg2[%c24] : memref<144xf32, #tpu.memory_space<smem>>
      %518 = vector.broadcast %517 : f32 to vector<1x256xf32>
      %519 = arith.mulf %518, %418 : vector<1x256xf32>
      %520 = arith.addf %504, %519 : vector<1x256xf32>
      %c60 = arith.constant 60 : index
      %521 = memref.load %arg2[%c60] : memref<144xf32, #tpu.memory_space<smem>>
      %522 = vector.broadcast %521 : f32 to vector<1x256xf32>
      %523 = arith.mulf %522, %418 : vector<1x256xf32>
      %524 = arith.addf %508, %523 : vector<1x256xf32>
      %c96 = arith.constant 96 : index
      %525 = memref.load %arg2[%c96] : memref<144xf32, #tpu.memory_space<smem>>
      %526 = vector.broadcast %525 : f32 to vector<1x256xf32>
      %527 = arith.mulf %526, %418 : vector<1x256xf32>
      %528 = arith.addf %512, %527 : vector<1x256xf32>
      %c132 = arith.constant 132 : index
      %529 = memref.load %arg2[%c132] : memref<144xf32, #tpu.memory_space<smem>>
      %530 = vector.broadcast %529 : f32 to vector<1x256xf32>
      %531 = arith.mulf %530, %418 : vector<1x256xf32>
      %532 = arith.addf %516, %531 : vector<1x256xf32>
      %c25 = arith.constant 25 : index
      %533 = memref.load %arg2[%c25] : memref<144xf32, #tpu.memory_space<smem>>
      %534 = vector.broadcast %533 : f32 to vector<1x256xf32>
      %535 = arith.mulf %534, %408 : vector<1x256xf32>
      %536 = arith.addf %520, %535 : vector<1x256xf32>
      %c61 = arith.constant 61 : index
      %537 = memref.load %arg2[%c61] : memref<144xf32, #tpu.memory_space<smem>>
      %538 = vector.broadcast %537 : f32 to vector<1x256xf32>
      %539 = arith.mulf %538, %408 : vector<1x256xf32>
      %540 = arith.addf %524, %539 : vector<1x256xf32>
      %c97 = arith.constant 97 : index
      %541 = memref.load %arg2[%c97] : memref<144xf32, #tpu.memory_space<smem>>
      %542 = vector.broadcast %541 : f32 to vector<1x256xf32>
      %543 = arith.mulf %542, %408 : vector<1x256xf32>
      %544 = arith.addf %528, %543 : vector<1x256xf32>
      %c133 = arith.constant 133 : index
      %545 = memref.load %arg2[%c133] : memref<144xf32, #tpu.memory_space<smem>>
      %546 = vector.broadcast %545 : f32 to vector<1x256xf32>
      %547 = arith.mulf %546, %408 : vector<1x256xf32>
      %548 = arith.addf %532, %547 : vector<1x256xf32>
      %c26 = arith.constant 26 : index
      %549 = memref.load %arg2[%c26] : memref<144xf32, #tpu.memory_space<smem>>
      %550 = vector.broadcast %549 : f32 to vector<1x256xf32>
      %551 = arith.mulf %550, %420 : vector<1x256xf32>
      %552 = arith.addf %536, %551 : vector<1x256xf32>
      %c62 = arith.constant 62 : index
      %553 = memref.load %arg2[%c62] : memref<144xf32, #tpu.memory_space<smem>>
      %554 = vector.broadcast %553 : f32 to vector<1x256xf32>
      %555 = arith.mulf %554, %420 : vector<1x256xf32>
      %556 = arith.addf %540, %555 : vector<1x256xf32>
      %c98 = arith.constant 98 : index
      %557 = memref.load %arg2[%c98] : memref<144xf32, #tpu.memory_space<smem>>
      %558 = vector.broadcast %557 : f32 to vector<1x256xf32>
      %559 = arith.mulf %558, %420 : vector<1x256xf32>
      %560 = arith.addf %544, %559 : vector<1x256xf32>
      %c134 = arith.constant 134 : index
      %561 = memref.load %arg2[%c134] : memref<144xf32, #tpu.memory_space<smem>>
      %562 = vector.broadcast %561 : f32 to vector<1x256xf32>
      %563 = arith.mulf %562, %420 : vector<1x256xf32>
      %564 = arith.addf %548, %563 : vector<1x256xf32>
      %c16_i32_69 = arith.constant 16 : i32
      %565 = tpu.dynamic_rotate %50 by %c16_i32_69 dim 1 : vector<1x256xf32>, i32 -> vector<1x256xf32>
      %566 = arith.select %70, %565, %51 : vector<1x256xi1>, vector<1x256xf32>
      %c240_i32_70 = arith.constant 240 : i32
      %567 = tpu.dynamic_rotate %50 by %c240_i32_70 dim 1 : vector<1x256xf32>, i32 -> vector<1x256xf32>
      %568 = arith.select %72, %567, %51 : vector<1x256xi1>, vector<1x256xf32>
      %c1_i32_71 = arith.constant 1 : i32
      %569 = tpu.dynamic_rotate %566 by %c1_i32_71 dim 1 : vector<1x256xf32>, i32 -> vector<1x256xf32>
      %570 = arith.select %74, %569, %51 : vector<1x256xi1>, vector<1x256xf32>
      %c255_i32_72 = arith.constant 255 : i32
      %571 = tpu.dynamic_rotate %566 by %c255_i32_72 dim 1 : vector<1x256xf32>, i32 -> vector<1x256xf32>
      %572 = arith.select %76, %571, %51 : vector<1x256xi1>, vector<1x256xf32>
      %c1_i32_73 = arith.constant 1 : i32
      %573 = tpu.dynamic_rotate %50 by %c1_i32_73 dim 1 : vector<1x256xf32>, i32 -> vector<1x256xf32>
      %574 = arith.select %74, %573, %51 : vector<1x256xi1>, vector<1x256xf32>
      %c255_i32_74 = arith.constant 255 : i32
      %575 = tpu.dynamic_rotate %50 by %c255_i32_74 dim 1 : vector<1x256xf32>, i32 -> vector<1x256xf32>
      %576 = arith.select %76, %575, %51 : vector<1x256xi1>, vector<1x256xf32>
      %c1_i32_75 = arith.constant 1 : i32
      %577 = tpu.dynamic_rotate %568 by %c1_i32_75 dim 1 : vector<1x256xf32>, i32 -> vector<1x256xf32>
      %578 = arith.select %74, %577, %51 : vector<1x256xi1>, vector<1x256xf32>
      %c255_i32_76 = arith.constant 255 : i32
      %579 = tpu.dynamic_rotate %568 by %c255_i32_76 dim 1 : vector<1x256xf32>, i32 -> vector<1x256xf32>
      %580 = arith.select %76, %579, %51 : vector<1x256xi1>, vector<1x256xf32>
      %c27 = arith.constant 27 : index
      %581 = memref.load %arg2[%c27] : memref<144xf32, #tpu.memory_space<smem>>
      %582 = vector.broadcast %581 : f32 to vector<1x256xf32>
      %583 = arith.mulf %582, %570 : vector<1x256xf32>
      %584 = arith.addf %552, %583 : vector<1x256xf32>
      %c63 = arith.constant 63 : index
      %585 = memref.load %arg2[%c63] : memref<144xf32, #tpu.memory_space<smem>>
      %586 = vector.broadcast %585 : f32 to vector<1x256xf32>
      %587 = arith.mulf %586, %570 : vector<1x256xf32>
      %588 = arith.addf %556, %587 : vector<1x256xf32>
      %c99 = arith.constant 99 : index
      %589 = memref.load %arg2[%c99] : memref<144xf32, #tpu.memory_space<smem>>
      %590 = vector.broadcast %589 : f32 to vector<1x256xf32>
      %591 = arith.mulf %590, %570 : vector<1x256xf32>
      %592 = arith.addf %560, %591 : vector<1x256xf32>
      %c135 = arith.constant 135 : index
      %593 = memref.load %arg2[%c135] : memref<144xf32, #tpu.memory_space<smem>>
      %594 = vector.broadcast %593 : f32 to vector<1x256xf32>
      %595 = arith.mulf %594, %570 : vector<1x256xf32>
      %596 = arith.addf %564, %595 : vector<1x256xf32>
      %c28 = arith.constant 28 : index
      %597 = memref.load %arg2[%c28] : memref<144xf32, #tpu.memory_space<smem>>
      %598 = vector.broadcast %597 : f32 to vector<1x256xf32>
      %599 = arith.mulf %598, %566 : vector<1x256xf32>
      %600 = arith.addf %584, %599 : vector<1x256xf32>
      %c64 = arith.constant 64 : index
      %601 = memref.load %arg2[%c64] : memref<144xf32, #tpu.memory_space<smem>>
      %602 = vector.broadcast %601 : f32 to vector<1x256xf32>
      %603 = arith.mulf %602, %566 : vector<1x256xf32>
      %604 = arith.addf %588, %603 : vector<1x256xf32>
      %c100 = arith.constant 100 : index
      %605 = memref.load %arg2[%c100] : memref<144xf32, #tpu.memory_space<smem>>
      %606 = vector.broadcast %605 : f32 to vector<1x256xf32>
      %607 = arith.mulf %606, %566 : vector<1x256xf32>
      %608 = arith.addf %592, %607 : vector<1x256xf32>
      %c136 = arith.constant 136 : index
      %609 = memref.load %arg2[%c136] : memref<144xf32, #tpu.memory_space<smem>>
      %610 = vector.broadcast %609 : f32 to vector<1x256xf32>
      %611 = arith.mulf %610, %566 : vector<1x256xf32>
      %612 = arith.addf %596, %611 : vector<1x256xf32>
      %c29 = arith.constant 29 : index
      %613 = memref.load %arg2[%c29] : memref<144xf32, #tpu.memory_space<smem>>
      %614 = vector.broadcast %613 : f32 to vector<1x256xf32>
      %615 = arith.mulf %614, %572 : vector<1x256xf32>
      %616 = arith.addf %600, %615 : vector<1x256xf32>
      %c65 = arith.constant 65 : index
      %617 = memref.load %arg2[%c65] : memref<144xf32, #tpu.memory_space<smem>>
      %618 = vector.broadcast %617 : f32 to vector<1x256xf32>
      %619 = arith.mulf %618, %572 : vector<1x256xf32>
      %620 = arith.addf %604, %619 : vector<1x256xf32>
      %c101 = arith.constant 101 : index
      %621 = memref.load %arg2[%c101] : memref<144xf32, #tpu.memory_space<smem>>
      %622 = vector.broadcast %621 : f32 to vector<1x256xf32>
      %623 = arith.mulf %622, %572 : vector<1x256xf32>
      %624 = arith.addf %608, %623 : vector<1x256xf32>
      %c137 = arith.constant 137 : index
      %625 = memref.load %arg2[%c137] : memref<144xf32, #tpu.memory_space<smem>>
      %626 = vector.broadcast %625 : f32 to vector<1x256xf32>
      %627 = arith.mulf %626, %572 : vector<1x256xf32>
      %628 = arith.addf %612, %627 : vector<1x256xf32>
      %c30 = arith.constant 30 : index
      %629 = memref.load %arg2[%c30] : memref<144xf32, #tpu.memory_space<smem>>
      %630 = vector.broadcast %629 : f32 to vector<1x256xf32>
      %631 = arith.mulf %630, %574 : vector<1x256xf32>
      %632 = arith.addf %616, %631 : vector<1x256xf32>
      %c66 = arith.constant 66 : index
      %633 = memref.load %arg2[%c66] : memref<144xf32, #tpu.memory_space<smem>>
      %634 = vector.broadcast %633 : f32 to vector<1x256xf32>
      %635 = arith.mulf %634, %574 : vector<1x256xf32>
      %636 = arith.addf %620, %635 : vector<1x256xf32>
      %c102 = arith.constant 102 : index
      %637 = memref.load %arg2[%c102] : memref<144xf32, #tpu.memory_space<smem>>
      %638 = vector.broadcast %637 : f32 to vector<1x256xf32>
      %639 = arith.mulf %638, %574 : vector<1x256xf32>
      %640 = arith.addf %624, %639 : vector<1x256xf32>
      %c138 = arith.constant 138 : index
      %641 = memref.load %arg2[%c138] : memref<144xf32, #tpu.memory_space<smem>>
      %642 = vector.broadcast %641 : f32 to vector<1x256xf32>
      %643 = arith.mulf %642, %574 : vector<1x256xf32>
      %644 = arith.addf %628, %643 : vector<1x256xf32>
      %c31 = arith.constant 31 : index
      %645 = memref.load %arg2[%c31] : memref<144xf32, #tpu.memory_space<smem>>
      %646 = vector.broadcast %645 : f32 to vector<1x256xf32>
      %647 = arith.mulf %646, %50 : vector<1x256xf32>
      %648 = arith.addf %632, %647 : vector<1x256xf32>
      %c67 = arith.constant 67 : index
      %649 = memref.load %arg2[%c67] : memref<144xf32, #tpu.memory_space<smem>>
      %650 = vector.broadcast %649 : f32 to vector<1x256xf32>
      %651 = arith.mulf %650, %50 : vector<1x256xf32>
      %652 = arith.addf %636, %651 : vector<1x256xf32>
      %c103 = arith.constant 103 : index
      %653 = memref.load %arg2[%c103] : memref<144xf32, #tpu.memory_space<smem>>
      %654 = vector.broadcast %653 : f32 to vector<1x256xf32>
      %655 = arith.mulf %654, %50 : vector<1x256xf32>
      %656 = arith.addf %640, %655 : vector<1x256xf32>
      %c139 = arith.constant 139 : index
      %657 = memref.load %arg2[%c139] : memref<144xf32, #tpu.memory_space<smem>>
      %658 = vector.broadcast %657 : f32 to vector<1x256xf32>
      %659 = arith.mulf %658, %50 : vector<1x256xf32>
      %660 = arith.addf %644, %659 : vector<1x256xf32>
      %c32 = arith.constant 32 : index
      %661 = memref.load %arg2[%c32] : memref<144xf32, #tpu.memory_space<smem>>
      %662 = vector.broadcast %661 : f32 to vector<1x256xf32>
      %663 = arith.mulf %662, %576 : vector<1x256xf32>
      %664 = arith.addf %648, %663 : vector<1x256xf32>
      %c68 = arith.constant 68 : index
      %665 = memref.load %arg2[%c68] : memref<144xf32, #tpu.memory_space<smem>>
      %666 = vector.broadcast %665 : f32 to vector<1x256xf32>
      %667 = arith.mulf %666, %576 : vector<1x256xf32>
      %668 = arith.addf %652, %667 : vector<1x256xf32>
      %c104 = arith.constant 104 : index
      %669 = memref.load %arg2[%c104] : memref<144xf32, #tpu.memory_space<smem>>
      %670 = vector.broadcast %669 : f32 to vector<1x256xf32>
      %671 = arith.mulf %670, %576 : vector<1x256xf32>
      %672 = arith.addf %656, %671 : vector<1x256xf32>
      %c140 = arith.constant 140 : index
      %673 = memref.load %arg2[%c140] : memref<144xf32, #tpu.memory_space<smem>>
      %674 = vector.broadcast %673 : f32 to vector<1x256xf32>
      %675 = arith.mulf %674, %576 : vector<1x256xf32>
      %676 = arith.addf %660, %675 : vector<1x256xf32>
      %c33 = arith.constant 33 : index
      %677 = memref.load %arg2[%c33] : memref<144xf32, #tpu.memory_space<smem>>
      %678 = vector.broadcast %677 : f32 to vector<1x256xf32>
      %679 = arith.mulf %678, %578 : vector<1x256xf32>
      %680 = arith.addf %664, %679 : vector<1x256xf32>
      %c69 = arith.constant 69 : index
      %681 = memref.load %arg2[%c69] : memref<144xf32, #tpu.memory_space<smem>>
      %682 = vector.broadcast %681 : f32 to vector<1x256xf32>
      %683 = arith.mulf %682, %578 : vector<1x256xf32>
      %684 = arith.addf %668, %683 : vector<1x256xf32>
      %c105 = arith.constant 105 : index
      %685 = memref.load %arg2[%c105] : memref<144xf32, #tpu.memory_space<smem>>
      %686 = vector.broadcast %685 : f32 to vector<1x256xf32>
      %687 = arith.mulf %686, %578 : vector<1x256xf32>
      %688 = arith.addf %672, %687 : vector<1x256xf32>
      %c141 = arith.constant 141 : index
      %689 = memref.load %arg2[%c141] : memref<144xf32, #tpu.memory_space<smem>>
      %690 = vector.broadcast %689 : f32 to vector<1x256xf32>
      %691 = arith.mulf %690, %578 : vector<1x256xf32>
      %692 = arith.addf %676, %691 : vector<1x256xf32>
      %c34 = arith.constant 34 : index
      %693 = memref.load %arg2[%c34] : memref<144xf32, #tpu.memory_space<smem>>
      %694 = vector.broadcast %693 : f32 to vector<1x256xf32>
      %695 = arith.mulf %694, %568 : vector<1x256xf32>
      %696 = arith.addf %680, %695 : vector<1x256xf32>
      %c70 = arith.constant 70 : index
      %697 = memref.load %arg2[%c70] : memref<144xf32, #tpu.memory_space<smem>>
      %698 = vector.broadcast %697 : f32 to vector<1x256xf32>
      %699 = arith.mulf %698, %568 : vector<1x256xf32>
      %700 = arith.addf %684, %699 : vector<1x256xf32>
      %c106 = arith.constant 106 : index
      %701 = memref.load %arg2[%c106] : memref<144xf32, #tpu.memory_space<smem>>
      %702 = vector.broadcast %701 : f32 to vector<1x256xf32>
      %703 = arith.mulf %702, %568 : vector<1x256xf32>
      %704 = arith.addf %688, %703 : vector<1x256xf32>
      %c142 = arith.constant 142 : index
      %705 = memref.load %arg2[%c142] : memref<144xf32, #tpu.memory_space<smem>>
      %706 = vector.broadcast %705 : f32 to vector<1x256xf32>
      %707 = arith.mulf %706, %568 : vector<1x256xf32>
      %708 = arith.addf %692, %707 : vector<1x256xf32>
      %c35 = arith.constant 35 : index
      %709 = memref.load %arg2[%c35] : memref<144xf32, #tpu.memory_space<smem>>
      %710 = vector.broadcast %709 : f32 to vector<1x256xf32>
      %711 = arith.mulf %710, %580 : vector<1x256xf32>
      %712 = arith.addf %696, %711 : vector<1x256xf32>
      %c71 = arith.constant 71 : index
      %713 = memref.load %arg2[%c71] : memref<144xf32, #tpu.memory_space<smem>>
      %714 = vector.broadcast %713 : f32 to vector<1x256xf32>
      %715 = arith.mulf %714, %580 : vector<1x256xf32>
      %716 = arith.addf %700, %715 : vector<1x256xf32>
      %c107 = arith.constant 107 : index
      %717 = memref.load %arg2[%c107] : memref<144xf32, #tpu.memory_space<smem>>
      %718 = vector.broadcast %717 : f32 to vector<1x256xf32>
      %719 = arith.mulf %718, %580 : vector<1x256xf32>
      %720 = arith.addf %704, %719 : vector<1x256xf32>
      %c143 = arith.constant 143 : index
      %721 = memref.load %arg2[%c143] : memref<144xf32, #tpu.memory_space<smem>>
      %722 = vector.broadcast %721 : f32 to vector<1x256xf32>
      %723 = arith.mulf %722, %580 : vector<1x256xf32>
      %724 = arith.addf %708, %723 : vector<1x256xf32>
      %c0_77 = arith.constant 0 : index
      %725 = memref.load %arg5[%c0_77] : memref<1xf32, #tpu.memory_space<smem>>
      %726 = vector.broadcast %725 : f32 to vector<1x256xf32>
      %cst_78 = arith.constant 0.000000e+00 : f32
      %727 = vector.broadcast %cst_78 : f32 to vector<1x256xf32>
      %728 = arith.maximumf %712, %727 : vector<1x256xf32>
      %c16_i32_79 = arith.constant 16 : i32
      %729 = tpu.dynamic_rotate %728 by %c16_i32_79 dim 1 : vector<1x256xf32>, i32 -> vector<1x256xf32>
      %730 = arith.select %70, %729, %51 : vector<1x256xi1>, vector<1x256xf32>
      %c240_i32_80 = arith.constant 240 : i32
      %731 = tpu.dynamic_rotate %728 by %c240_i32_80 dim 1 : vector<1x256xf32>, i32 -> vector<1x256xf32>
      %732 = arith.select %72, %731, %51 : vector<1x256xi1>, vector<1x256xf32>
      %c1_i32_81 = arith.constant 1 : i32
      %733 = tpu.dynamic_rotate %730 by %c1_i32_81 dim 1 : vector<1x256xf32>, i32 -> vector<1x256xf32>
      %734 = arith.select %74, %733, %51 : vector<1x256xi1>, vector<1x256xf32>
      %c255_i32_82 = arith.constant 255 : i32
      %735 = tpu.dynamic_rotate %730 by %c255_i32_82 dim 1 : vector<1x256xf32>, i32 -> vector<1x256xf32>
      %736 = arith.select %76, %735, %51 : vector<1x256xi1>, vector<1x256xf32>
      %c1_i32_83 = arith.constant 1 : i32
      %737 = tpu.dynamic_rotate %728 by %c1_i32_83 dim 1 : vector<1x256xf32>, i32 -> vector<1x256xf32>
      %738 = arith.select %74, %737, %51 : vector<1x256xi1>, vector<1x256xf32>
      %c255_i32_84 = arith.constant 255 : i32
      %739 = tpu.dynamic_rotate %728 by %c255_i32_84 dim 1 : vector<1x256xf32>, i32 -> vector<1x256xf32>
      %740 = arith.select %76, %739, %51 : vector<1x256xi1>, vector<1x256xf32>
      %c1_i32_85 = arith.constant 1 : i32
      %741 = tpu.dynamic_rotate %732 by %c1_i32_85 dim 1 : vector<1x256xf32>, i32 -> vector<1x256xf32>
      %742 = arith.select %74, %741, %51 : vector<1x256xi1>, vector<1x256xf32>
      %c255_i32_86 = arith.constant 255 : i32
      %743 = tpu.dynamic_rotate %732 by %c255_i32_86 dim 1 : vector<1x256xf32>, i32 -> vector<1x256xf32>
      %744 = arith.select %76, %743, %51 : vector<1x256xi1>, vector<1x256xf32>
      %c0_87 = arith.constant 0 : index
      %745 = memref.load %arg4[%c0_87] : memref<36xf32, #tpu.memory_space<smem>>
      %746 = vector.broadcast %745 : f32 to vector<1x256xf32>
      %747 = arith.mulf %746, %734 : vector<1x256xf32>
      %748 = arith.addf %726, %747 : vector<1x256xf32>
      %c1_88 = arith.constant 1 : index
      %749 = memref.load %arg4[%c1_88] : memref<36xf32, #tpu.memory_space<smem>>
      %750 = vector.broadcast %749 : f32 to vector<1x256xf32>
      %751 = arith.mulf %750, %730 : vector<1x256xf32>
      %752 = arith.addf %748, %751 : vector<1x256xf32>
      %c2_89 = arith.constant 2 : index
      %753 = memref.load %arg4[%c2_89] : memref<36xf32, #tpu.memory_space<smem>>
      %754 = vector.broadcast %753 : f32 to vector<1x256xf32>
      %755 = arith.mulf %754, %736 : vector<1x256xf32>
      %756 = arith.addf %752, %755 : vector<1x256xf32>
      %c3_90 = arith.constant 3 : index
      %757 = memref.load %arg4[%c3_90] : memref<36xf32, #tpu.memory_space<smem>>
      %758 = vector.broadcast %757 : f32 to vector<1x256xf32>
      %759 = arith.mulf %758, %738 : vector<1x256xf32>
      %760 = arith.addf %756, %759 : vector<1x256xf32>
      %c4_91 = arith.constant 4 : index
      %761 = memref.load %arg4[%c4_91] : memref<36xf32, #tpu.memory_space<smem>>
      %762 = vector.broadcast %761 : f32 to vector<1x256xf32>
      %763 = arith.mulf %762, %728 : vector<1x256xf32>
      %764 = arith.addf %760, %763 : vector<1x256xf32>
      %c5_92 = arith.constant 5 : index
      %765 = memref.load %arg4[%c5_92] : memref<36xf32, #tpu.memory_space<smem>>
      %766 = vector.broadcast %765 : f32 to vector<1x256xf32>
      %767 = arith.mulf %766, %740 : vector<1x256xf32>
      %768 = arith.addf %764, %767 : vector<1x256xf32>
      %c6_93 = arith.constant 6 : index
      %769 = memref.load %arg4[%c6_93] : memref<36xf32, #tpu.memory_space<smem>>
      %770 = vector.broadcast %769 : f32 to vector<1x256xf32>
      %771 = arith.mulf %770, %742 : vector<1x256xf32>
      %772 = arith.addf %768, %771 : vector<1x256xf32>
      %c7_94 = arith.constant 7 : index
      %773 = memref.load %arg4[%c7_94] : memref<36xf32, #tpu.memory_space<smem>>
      %774 = vector.broadcast %773 : f32 to vector<1x256xf32>
      %775 = arith.mulf %774, %732 : vector<1x256xf32>
      %776 = arith.addf %772, %775 : vector<1x256xf32>
      %c8_95 = arith.constant 8 : index
      %777 = memref.load %arg4[%c8_95] : memref<36xf32, #tpu.memory_space<smem>>
      %778 = vector.broadcast %777 : f32 to vector<1x256xf32>
      %779 = arith.mulf %778, %744 : vector<1x256xf32>
      %780 = arith.addf %776, %779 : vector<1x256xf32>
      %cst_96 = arith.constant 0.000000e+00 : f32
      %781 = vector.broadcast %cst_96 : f32 to vector<1x256xf32>
      %782 = arith.maximumf %716, %781 : vector<1x256xf32>
      %c16_i32_97 = arith.constant 16 : i32
      %783 = tpu.dynamic_rotate %782 by %c16_i32_97 dim 1 : vector<1x256xf32>, i32 -> vector<1x256xf32>
      %784 = arith.select %70, %783, %51 : vector<1x256xi1>, vector<1x256xf32>
      %c240_i32_98 = arith.constant 240 : i32
      %785 = tpu.dynamic_rotate %782 by %c240_i32_98 dim 1 : vector<1x256xf32>, i32 -> vector<1x256xf32>
      %786 = arith.select %72, %785, %51 : vector<1x256xi1>, vector<1x256xf32>
      %c1_i32_99 = arith.constant 1 : i32
      %787 = tpu.dynamic_rotate %784 by %c1_i32_99 dim 1 : vector<1x256xf32>, i32 -> vector<1x256xf32>
      %788 = arith.select %74, %787, %51 : vector<1x256xi1>, vector<1x256xf32>
      %c255_i32_100 = arith.constant 255 : i32
      %789 = tpu.dynamic_rotate %784 by %c255_i32_100 dim 1 : vector<1x256xf32>, i32 -> vector<1x256xf32>
      %790 = arith.select %76, %789, %51 : vector<1x256xi1>, vector<1x256xf32>
      %c1_i32_101 = arith.constant 1 : i32
      %791 = tpu.dynamic_rotate %782 by %c1_i32_101 dim 1 : vector<1x256xf32>, i32 -> vector<1x256xf32>
      %792 = arith.select %74, %791, %51 : vector<1x256xi1>, vector<1x256xf32>
      %c255_i32_102 = arith.constant 255 : i32
      %793 = tpu.dynamic_rotate %782 by %c255_i32_102 dim 1 : vector<1x256xf32>, i32 -> vector<1x256xf32>
      %794 = arith.select %76, %793, %51 : vector<1x256xi1>, vector<1x256xf32>
      %c1_i32_103 = arith.constant 1 : i32
      %795 = tpu.dynamic_rotate %786 by %c1_i32_103 dim 1 : vector<1x256xf32>, i32 -> vector<1x256xf32>
      %796 = arith.select %74, %795, %51 : vector<1x256xi1>, vector<1x256xf32>
      %c255_i32_104 = arith.constant 255 : i32
      %797 = tpu.dynamic_rotate %786 by %c255_i32_104 dim 1 : vector<1x256xf32>, i32 -> vector<1x256xf32>
      %798 = arith.select %76, %797, %51 : vector<1x256xi1>, vector<1x256xf32>
      %c9_105 = arith.constant 9 : index
      %799 = memref.load %arg4[%c9_105] : memref<36xf32, #tpu.memory_space<smem>>
      %800 = vector.broadcast %799 : f32 to vector<1x256xf32>
      %801 = arith.mulf %800, %788 : vector<1x256xf32>
      %802 = arith.addf %780, %801 : vector<1x256xf32>
      %c10_106 = arith.constant 10 : index
      %803 = memref.load %arg4[%c10_106] : memref<36xf32, #tpu.memory_space<smem>>
      %804 = vector.broadcast %803 : f32 to vector<1x256xf32>
      %805 = arith.mulf %804, %784 : vector<1x256xf32>
      %806 = arith.addf %802, %805 : vector<1x256xf32>
      %c11_107 = arith.constant 11 : index
      %807 = memref.load %arg4[%c11_107] : memref<36xf32, #tpu.memory_space<smem>>
      %808 = vector.broadcast %807 : f32 to vector<1x256xf32>
      %809 = arith.mulf %808, %790 : vector<1x256xf32>
      %810 = arith.addf %806, %809 : vector<1x256xf32>
      %c12_108 = arith.constant 12 : index
      %811 = memref.load %arg4[%c12_108] : memref<36xf32, #tpu.memory_space<smem>>
      %812 = vector.broadcast %811 : f32 to vector<1x256xf32>
      %813 = arith.mulf %812, %792 : vector<1x256xf32>
      %814 = arith.addf %810, %813 : vector<1x256xf32>
      %c13_109 = arith.constant 13 : index
      %815 = memref.load %arg4[%c13_109] : memref<36xf32, #tpu.memory_space<smem>>
      %816 = vector.broadcast %815 : f32 to vector<1x256xf32>
      %817 = arith.mulf %816, %782 : vector<1x256xf32>
      %818 = arith.addf %814, %817 : vector<1x256xf32>
      %c14_110 = arith.constant 14 : index
      %819 = memref.load %arg4[%c14_110] : memref<36xf32, #tpu.memory_space<smem>>
      %820 = vector.broadcast %819 : f32 to vector<1x256xf32>
      %821 = arith.mulf %820, %794 : vector<1x256xf32>
      %822 = arith.addf %818, %821 : vector<1x256xf32>
      %c15_111 = arith.constant 15 : index
      %823 = memref.load %arg4[%c15_111] : memref<36xf32, #tpu.memory_space<smem>>
      %824 = vector.broadcast %823 : f32 to vector<1x256xf32>
      %825 = arith.mulf %824, %796 : vector<1x256xf32>
      %826 = arith.addf %822, %825 : vector<1x256xf32>
      %c16_112 = arith.constant 16 : index
      %827 = memref.load %arg4[%c16_112] : memref<36xf32, #tpu.memory_space<smem>>
      %828 = vector.broadcast %827 : f32 to vector<1x256xf32>
      %829 = arith.mulf %828, %786 : vector<1x256xf32>
      %830 = arith.addf %826, %829 : vector<1x256xf32>
      %c17_113 = arith.constant 17 : index
      %831 = memref.load %arg4[%c17_113] : memref<36xf32, #tpu.memory_space<smem>>
      %832 = vector.broadcast %831 : f32 to vector<1x256xf32>
      %833 = arith.mulf %832, %798 : vector<1x256xf32>
      %834 = arith.addf %830, %833 : vector<1x256xf32>
      %cst_114 = arith.constant 0.000000e+00 : f32
      %835 = vector.broadcast %cst_114 : f32 to vector<1x256xf32>
      %836 = arith.maximumf %720, %835 : vector<1x256xf32>
      %c16_i32_115 = arith.constant 16 : i32
      %837 = tpu.dynamic_rotate %836 by %c16_i32_115 dim 1 : vector<1x256xf32>, i32 -> vector<1x256xf32>
      %838 = arith.select %70, %837, %51 : vector<1x256xi1>, vector<1x256xf32>
      %c240_i32_116 = arith.constant 240 : i32
      %839 = tpu.dynamic_rotate %836 by %c240_i32_116 dim 1 : vector<1x256xf32>, i32 -> vector<1x256xf32>
      %840 = arith.select %72, %839, %51 : vector<1x256xi1>, vector<1x256xf32>
      %c1_i32_117 = arith.constant 1 : i32
      %841 = tpu.dynamic_rotate %838 by %c1_i32_117 dim 1 : vector<1x256xf32>, i32 -> vector<1x256xf32>
      %842 = arith.select %74, %841, %51 : vector<1x256xi1>, vector<1x256xf32>
      %c255_i32_118 = arith.constant 255 : i32
      %843 = tpu.dynamic_rotate %838 by %c255_i32_118 dim 1 : vector<1x256xf32>, i32 -> vector<1x256xf32>
      %844 = arith.select %76, %843, %51 : vector<1x256xi1>, vector<1x256xf32>
      %c1_i32_119 = arith.constant 1 : i32
      %845 = tpu.dynamic_rotate %836 by %c1_i32_119 dim 1 : vector<1x256xf32>, i32 -> vector<1x256xf32>
      %846 = arith.select %74, %845, %51 : vector<1x256xi1>, vector<1x256xf32>
      %c255_i32_120 = arith.constant 255 : i32
      %847 = tpu.dynamic_rotate %836 by %c255_i32_120 dim 1 : vector<1x256xf32>, i32 -> vector<1x256xf32>
      %848 = arith.select %76, %847, %51 : vector<1x256xi1>, vector<1x256xf32>
      %c1_i32_121 = arith.constant 1 : i32
      %849 = tpu.dynamic_rotate %840 by %c1_i32_121 dim 1 : vector<1x256xf32>, i32 -> vector<1x256xf32>
      %850 = arith.select %74, %849, %51 : vector<1x256xi1>, vector<1x256xf32>
      %c255_i32_122 = arith.constant 255 : i32
      %851 = tpu.dynamic_rotate %840 by %c255_i32_122 dim 1 : vector<1x256xf32>, i32 -> vector<1x256xf32>
      %852 = arith.select %76, %851, %51 : vector<1x256xi1>, vector<1x256xf32>
      %c18_123 = arith.constant 18 : index
      %853 = memref.load %arg4[%c18_123] : memref<36xf32, #tpu.memory_space<smem>>
      %854 = vector.broadcast %853 : f32 to vector<1x256xf32>
      %855 = arith.mulf %854, %842 : vector<1x256xf32>
      %856 = arith.addf %834, %855 : vector<1x256xf32>
      %c19_124 = arith.constant 19 : index
      %857 = memref.load %arg4[%c19_124] : memref<36xf32, #tpu.memory_space<smem>>
      %858 = vector.broadcast %857 : f32 to vector<1x256xf32>
      %859 = arith.mulf %858, %838 : vector<1x256xf32>
      %860 = arith.addf %856, %859 : vector<1x256xf32>
      %c20_125 = arith.constant 20 : index
      %861 = memref.load %arg4[%c20_125] : memref<36xf32, #tpu.memory_space<smem>>
      %862 = vector.broadcast %861 : f32 to vector<1x256xf32>
      %863 = arith.mulf %862, %844 : vector<1x256xf32>
      %864 = arith.addf %860, %863 : vector<1x256xf32>
      %c21_126 = arith.constant 21 : index
      %865 = memref.load %arg4[%c21_126] : memref<36xf32, #tpu.memory_space<smem>>
      %866 = vector.broadcast %865 : f32 to vector<1x256xf32>
      %867 = arith.mulf %866, %846 : vector<1x256xf32>
      %868 = arith.addf %864, %867 : vector<1x256xf32>
      %c22_127 = arith.constant 22 : index
      %869 = memref.load %arg4[%c22_127] : memref<36xf32, #tpu.memory_space<smem>>
      %870 = vector.broadcast %869 : f32 to vector<1x256xf32>
      %871 = arith.mulf %870, %836 : vector<1x256xf32>
      %872 = arith.addf %868, %871 : vector<1x256xf32>
      %c23_128 = arith.constant 23 : index
      %873 = memref.load %arg4[%c23_128] : memref<36xf32, #tpu.memory_space<smem>>
      %874 = vector.broadcast %873 : f32 to vector<1x256xf32>
      %875 = arith.mulf %874, %848 : vector<1x256xf32>
      %876 = arith.addf %872, %875 : vector<1x256xf32>
      %c24_129 = arith.constant 24 : index
      %877 = memref.load %arg4[%c24_129] : memref<36xf32, #tpu.memory_space<smem>>
      %878 = vector.broadcast %877 : f32 to vector<1x256xf32>
      %879 = arith.mulf %878, %850 : vector<1x256xf32>
      %880 = arith.addf %876, %879 : vector<1x256xf32>
      %c25_130 = arith.constant 25 : index
      %881 = memref.load %arg4[%c25_130] : memref<36xf32, #tpu.memory_space<smem>>
      %882 = vector.broadcast %881 : f32 to vector<1x256xf32>
      %883 = arith.mulf %882, %840 : vector<1x256xf32>
      %884 = arith.addf %880, %883 : vector<1x256xf32>
      %c26_131 = arith.constant 26 : index
      %885 = memref.load %arg4[%c26_131] : memref<36xf32, #tpu.memory_space<smem>>
      %886 = vector.broadcast %885 : f32 to vector<1x256xf32>
      %887 = arith.mulf %886, %852 : vector<1x256xf32>
      %888 = arith.addf %884, %887 : vector<1x256xf32>
      %cst_132 = arith.constant 0.000000e+00 : f32
      %889 = vector.broadcast %cst_132 : f32 to vector<1x256xf32>
      %890 = arith.maximumf %724, %889 : vector<1x256xf32>
      %c16_i32_133 = arith.constant 16 : i32
      %891 = tpu.dynamic_rotate %890 by %c16_i32_133 dim 1 : vector<1x256xf32>, i32 -> vector<1x256xf32>
      %892 = arith.select %70, %891, %51 : vector<1x256xi1>, vector<1x256xf32>
      %c240_i32_134 = arith.constant 240 : i32
      %893 = tpu.dynamic_rotate %890 by %c240_i32_134 dim 1 : vector<1x256xf32>, i32 -> vector<1x256xf32>
      %894 = arith.select %72, %893, %51 : vector<1x256xi1>, vector<1x256xf32>
      %c1_i32_135 = arith.constant 1 : i32
      %895 = tpu.dynamic_rotate %892 by %c1_i32_135 dim 1 : vector<1x256xf32>, i32 -> vector<1x256xf32>
      %896 = arith.select %74, %895, %51 : vector<1x256xi1>, vector<1x256xf32>
      %c255_i32_136 = arith.constant 255 : i32
      %897 = tpu.dynamic_rotate %892 by %c255_i32_136 dim 1 : vector<1x256xf32>, i32 -> vector<1x256xf32>
      %898 = arith.select %76, %897, %51 : vector<1x256xi1>, vector<1x256xf32>
      %c1_i32_137 = arith.constant 1 : i32
      %899 = tpu.dynamic_rotate %890 by %c1_i32_137 dim 1 : vector<1x256xf32>, i32 -> vector<1x256xf32>
      %900 = arith.select %74, %899, %51 : vector<1x256xi1>, vector<1x256xf32>
      %c255_i32_138 = arith.constant 255 : i32
      %901 = tpu.dynamic_rotate %890 by %c255_i32_138 dim 1 : vector<1x256xf32>, i32 -> vector<1x256xf32>
      %902 = arith.select %76, %901, %51 : vector<1x256xi1>, vector<1x256xf32>
      %c1_i32_139 = arith.constant 1 : i32
      %903 = tpu.dynamic_rotate %894 by %c1_i32_139 dim 1 : vector<1x256xf32>, i32 -> vector<1x256xf32>
      %904 = arith.select %74, %903, %51 : vector<1x256xi1>, vector<1x256xf32>
      %c255_i32_140 = arith.constant 255 : i32
      %905 = tpu.dynamic_rotate %894 by %c255_i32_140 dim 1 : vector<1x256xf32>, i32 -> vector<1x256xf32>
      %906 = arith.select %76, %905, %51 : vector<1x256xi1>, vector<1x256xf32>
      %c27_141 = arith.constant 27 : index
      %907 = memref.load %arg4[%c27_141] : memref<36xf32, #tpu.memory_space<smem>>
      %908 = vector.broadcast %907 : f32 to vector<1x256xf32>
      %909 = arith.mulf %908, %896 : vector<1x256xf32>
      %910 = arith.addf %888, %909 : vector<1x256xf32>
      %c28_142 = arith.constant 28 : index
      %911 = memref.load %arg4[%c28_142] : memref<36xf32, #tpu.memory_space<smem>>
      %912 = vector.broadcast %911 : f32 to vector<1x256xf32>
      %913 = arith.mulf %912, %892 : vector<1x256xf32>
      %914 = arith.addf %910, %913 : vector<1x256xf32>
      %c29_143 = arith.constant 29 : index
      %915 = memref.load %arg4[%c29_143] : memref<36xf32, #tpu.memory_space<smem>>
      %916 = vector.broadcast %915 : f32 to vector<1x256xf32>
      %917 = arith.mulf %916, %898 : vector<1x256xf32>
      %918 = arith.addf %914, %917 : vector<1x256xf32>
      %c30_144 = arith.constant 30 : index
      %919 = memref.load %arg4[%c30_144] : memref<36xf32, #tpu.memory_space<smem>>
      %920 = vector.broadcast %919 : f32 to vector<1x256xf32>
      %921 = arith.mulf %920, %900 : vector<1x256xf32>
      %922 = arith.addf %918, %921 : vector<1x256xf32>
      %c31_145 = arith.constant 31 : index
      %923 = memref.load %arg4[%c31_145] : memref<36xf32, #tpu.memory_space<smem>>
      %924 = vector.broadcast %923 : f32 to vector<1x256xf32>
      %925 = arith.mulf %924, %890 : vector<1x256xf32>
      %926 = arith.addf %922, %925 : vector<1x256xf32>
      %c32_146 = arith.constant 32 : index
      %927 = memref.load %arg4[%c32_146] : memref<36xf32, #tpu.memory_space<smem>>
      %928 = vector.broadcast %927 : f32 to vector<1x256xf32>
      %929 = arith.mulf %928, %902 : vector<1x256xf32>
      %930 = arith.addf %926, %929 : vector<1x256xf32>
      %c33_147 = arith.constant 33 : index
      %931 = memref.load %arg4[%c33_147] : memref<36xf32, #tpu.memory_space<smem>>
      %932 = vector.broadcast %931 : f32 to vector<1x256xf32>
      %933 = arith.mulf %932, %904 : vector<1x256xf32>
      %934 = arith.addf %930, %933 : vector<1x256xf32>
      %c34_148 = arith.constant 34 : index
      %935 = memref.load %arg4[%c34_148] : memref<36xf32, #tpu.memory_space<smem>>
      %936 = vector.broadcast %935 : f32 to vector<1x256xf32>
      %937 = arith.mulf %936, %894 : vector<1x256xf32>
      %938 = arith.addf %934, %937 : vector<1x256xf32>
      %c35_149 = arith.constant 35 : index
      %939 = memref.load %arg4[%c35_149] : memref<36xf32, #tpu.memory_space<smem>>
      %940 = vector.broadcast %939 : f32 to vector<1x256xf32>
      %941 = arith.mulf %940, %906 : vector<1x256xf32>
      %942 = arith.addf %938, %941 : vector<1x256xf32>
      %943 = arith.negf %942 : vector<1x256xf32>
      %944 = math.exp %943 : vector<1x256xf32>
      %cst_150 = arith.constant 1.000000e+00 : f32
      %945 = vector.broadcast %cst_150 : f32 to vector<1x256xf32>
      %946 = arith.addf %945, %944 : vector<1x256xf32>
      %947 = arith.divf %945, %946 : vector<1x256xf32>
      %c0_151 = arith.constant 0 : index
      %c0_152 = arith.constant 0 : index
      %948 = vector.load %arg8[%c0_151, %c0_152] : memref<1x256xf32, #tpu.memory_space<vmem>>, vector<1x256xf32>
      tpu.vector_store %arg8[%c0_151, %c0_152], %947 {strides = array<i32>} : memref<1x256xf32, #tpu.memory_space<vmem>>, vector<1x256xf32>,
    } else {
    }
    return
  }
  func.func @transform_0(%arg0: i32, %arg1: i32) -> i32 {
    %c0_i32 = arith.constant 0 : i32
    %c0_i32_0 = arith.constant 0 : i32
    return %c0_i32 : i32
  }
  func.func @transform_1(%arg0: i32, %arg1: i32) -> i32 {
    %c0_i32 = arith.constant 0 : i32
    %c0_i32_0 = arith.constant 0 : i32
    return %c0_i32 : i32
  }
  func.func @transform_2(%arg0: i32, %arg1: i32) -> i32 {
    %c0_i32 = arith.constant 0 : i32
    %c0_i32_0 = arith.constant 0 : i32
    return %c0_i32 : i32
  }
  func.func @transform_3(%arg0: i32, %arg1: i32) -> i32 {
    %c0_i32 = arith.constant 0 : i32
    %c0_i32_0 = arith.constant 0 : i32
    return %c0_i32 : i32
  }
  func.func @transform_4(%arg0: i32, %arg1: i32) -> (i32, i32, i32) {
    %c0_i32 = arith.constant 0 : i32
    %c0_i32_0 = arith.constant 0 : i32
    return %arg0, %arg1, %c0_i32 : i32, i32, i32
  }
  func.func @transform_5(%arg0: i32, %arg1: i32) -> (i32, i32, i32) {
    %c0_i32 = arith.constant 0 : i32
    %c0_i32_0 = arith.constant 0 : i32
    return %arg0, %arg1, %c0_i32 : i32, i32, i32
  }
  func.func @transform_6(%arg0: i32, %arg1: i32) -> (i32, i32) {
    %c0_i32 = arith.constant 0 : i32
    %c0_i32_0 = arith.constant 0 : i32
    %c0_i32_1 = arith.constant 0 : i32
    return %c0_i32, %c0_i32_0 : i32, i32
  }
}

</mosaic_0001>

<bundles_post_ra>
// kernel: bilateral_attention.1
= control target key start
LH: loop header
LB: loop body
LE: loop exit
PB: predicated region body
PF: predicated region fallthrough
CT: control target
= control target key end

     0   :  { %s5805_s0 = inlined_call_operand.vmem [shape: f32[144], index: 0, kind: input, shape index: {}]   ;;  %s5806_s1 = inlined_call_operand.vmem [shape: f32[4], index: 1, kind: input, shape index: {}]   ;;  %s5807_s2 = inlined_call_operand.vmem [shape: f32[36], index: 2, kind: input, shape index: {}]   ;;  %s5808_s3 = inlined_call_operand.<no memory space> [shape: f32[1], index: 3, kind: input, shape index: {}]   ;;  %s5809_s4 = inlined_call_operand.vmem [shape: f32[2,4,256], index: 4, kind: input, shape index: {}]   ;;  %s5810_s5 = inlined_call_operand.vmem [shape: f32[2,4,256], index: 5, kind: input, shape index: {}]   ;;  %s5811_s6 = inlined_call_operand.vmem [shape: f32[1,256], index: 6, kind: output, shape index: {}]  }
   0x1   :  { %6065 = sst [smem:[#allocation160_spill]] %s5805_s0 }
   0x2   :  { %6066 = sst [smem:[#allocation161_spill]] %s5806_s1 }
   0x3   :  { %6067 = sst [smem:[#allocation162_spill]] %s5807_s2 }
   0x4   :  { %6068 = sst [smem:[#allocation163_spill]] %s5809_s4 }
   0x5   :  { %6069 = sst [smem:[#allocation164_spill]] %s5810_s5 }
   0x6   :  { %6070 = sst [smem:[#allocation165_spill]] %s5811_s6 }
   0x7   :  { %11 = sst [smem:[#allocation8]] %s5808_s3 }
   0x8   :  { %12 = vsyncpa [#allocation10], 0 }
   0x9   :  { %13 = vsyncpa [#allocation12], 0  ;;  %s3024_s23 = smov 0   ;;  %s3026_s24 = smov 0  }
   0xa   :  { %s3028_s25 = smov 0  }
   0xb LB: > { %6071 = sst [smem:[#allocation16_spill]] %s2970_s24  ;;  %s6073_s1 = sld [smem:[#allocation161_spill]]  ;;  %s2974_s25 = sphi %s3028_s25, %s19_s25   ;;  %s2970_s24 = sphi %s3026_s24, %s6748_s24   ;;  %s2966_s23 = sphi %s3024_s23, %s6747_s23  }
   0xc   : > { %6072 = sst [smem:[#allocation17_spill]] %s2974_s25  ;;  %s2620_s28 = sadd.s32 4294967295, %s2974_s25  }
   0xd   : > { %p2621_p0 = scmp.ge.s32.totalorder %s2974_s25, 1  ;;  %p197_p1 = scmp.lt.s32.totalorder %s2974_s25, 3 }
   0xe   : > { %p3045_p2 = scmp.eq.s32.totalorder %s2620_s28, 0  ;;  %s31_s7 = sadd.s32 1, %s2970_s24 }
   0xf   : > { %p3049_p3 = pnand %p2621_p0, %p197_p1  ;;  %s6076_s0 = sld [smem:[#allocation160_spill]] }
  0x10   : > { %s6074_s29 = scalar_select %p3045_p2, 1, 0 }
  0x11   : > { %s221_s27 = sshll.u32 %s6073_s1, 4  ;;  %p2839_p4 = pneg %p3049_p3  ;;  %s222_s27 = int_to_ptr.vmem [resolvable:$true] %s221_s27 }
  0x12   : > { %s6075_s30 = scalar_select %p3049_p3, 1, 0 }
  0x13   : > { %p3061_p5 = pnand %p3045_p2, %p2839_p4  ;;  %p3065_p6 = scmp.ge.s32.totalorder %s31_s7, 2 }
  0x14   : > { %s6079_s2 = sld [smem:[#allocation162_spill]]  ;;  %s2899_s16 = scalar_lea.vmem %s222_s27, 16 }
  0x15   : > { %s210_s10 = sshll.u32 %s6076_s0, 4  ;;  %p2900_p7 = scmp.ne.s32.totalorder %s222_s27, %s2899_s16  ;;  %s211_s10 = int_to_ptr.vmem [resolvable:$true] %s210_s10 }
  0x16   : > { %p2901_p8 = pneg %p3061_p5  ;;  %p2907_p11 = scmp.lt.s32.totalorder %s222_s27, %s222_s27 }
  0x17   : > { %p2908_p12 = scmp.lt.s32.totalorder %s2899_s16, %s2899_s16 }
  0x18   : > { %p2902_p9 = pnand %p2901_p8, %p2900_p7 }
  0x19   : > { %p2909_p13 = por %p2908_p12, %p2907_p11 }
  0x1a   : > { %s232_s15 = sshll.u32 %s6079_s2, 4  ;;  %p2903_p10 = pneg %p2902_p9  ;;  %s233_s15 = int_to_ptr.vmem [resolvable:$true] %s232_s15 }
  0x1c   : > { %p2910_p0 = pnand %p2909_p13, %p2903_p10 }
  0x1e   : > { %2913 = shalt.err (!%p2910_p0)
}
  0x1f   : > { %s2976_s17 = smov [#allocation11]   ;;  %s6750_s7 = smov (%p3065_p6, %s31_s7), 0 }
  0x20   : > { %2845 = dma.vmem_to_smem (!%p3061_p5), %s222_s27, 16, %s2976_s17, [#allocation12]  }
  0x21   : > { %6080 = sst [smem:[#allocation18_spill]] %s6750_s7  ;;  %s2914_s18 = scalar_lea.vmem %s211_s10, 32 }
  0x22   : > { %p2915_p1 = scmp.ne.s32.totalorder %s211_s10, %s2914_s18  ;;  %p2922_p9 = scmp.lt.s32.totalorder %s211_s10, %s211_s10 }
  0x23   : > { %p2923_p2 = scmp.lt.s32.totalorder %s2914_s18, %s2914_s18 }
  0x24   : > { %p2917_p4 = pnand %p2915_p1, %p2901_p8 }
  0x25   : > { %p2924_p11 = por %p2923_p2, %p2922_p9 }
  0x26   : > { %p2918_p7 = pneg %p2917_p4 }
  0x28   : > { %p2925_p10 = pnand %p2924_p11, %p2918_p7 }
  0x2a   : > { %2928 = shalt.err (!%p2925_p10)
}
  0x2b   : > { %s2977_s19 = smov [#allocation9]   ;;  %s2929_s20 = scalar_lea.vmem %s233_s15, 16 }
  0x2c   : > { %2842 = dma.vmem_to_smem (!%p3061_p5), %s211_s10, 32, %s2977_s19, [#allocation10]  }
  0x2d   : > { %p2930_p6 = scmp.ne.s32.totalorder %s233_s15, %s2929_s20  ;;  %p2937_p0 = scmp.lt.s32.totalorder %s233_s15, %s233_s15 }
  0x2e   : > { %p2938_p1 = scmp.lt.s32.totalorder %s2929_s20, %s2929_s20 }
  0x2f   : > { %p2932_p12 = pnand %p2930_p6, %p2901_p8 }
  0x30   : > { %p2939_p4 = por %p2938_p1, %p2937_p0 }
  0x31   : > { %p2933_p13 = pneg %p2932_p12 }
  0x33   : > { %p2940_p3 = pnand %p2939_p4, %p2933_p13 }
  0x35   : > { %2943 = shalt.err (!%p2940_p3)
}
  0x36   : > { %s2978_s21 = smov [#allocation13]   ;;  %p6081_p2 = scmp.ne.s32.totalorder %s6075_s30, 0 }
  0x37   : > { %2848 = dma.vmem_to_smem (!%p3061_p5), %s233_s15, 16, %s2978_s21, [#allocation12]  }
  0x38   : > { %272 = sbr.rel (%p6081_p2) target bundleno = 963 (0x3c3), region = 44 }
  0x3f   : > { %p6082_p7 = scmp.ne.s32.totalorder %s6074_s29, 0 }
  0x41   : > { %2957 = dma.done.wait (%p6082_p7), [#allocation10], 32  }
  0x42   : > { %2959 = vsyncadd (%p6082_p7), [#allocation10], 4294967264 }
  0x43   : > { %2961 = dma.done.wait (%p6082_p7), [#allocation12], 32  }
  0x44   : > { %2963 = vsyncadd (%p6082_p7), [#allocation12], 4294967264 }
  0x45   : > { %286 = sfence }
  0x46   : > { %p319_p3 = scmp.lt.s32.totalorder %s2966_s23, 1  ;;  %p402_p5 = scmp.eq.s32.totalorder %s2966_s23, 0  ;;  %vm342_vm0 = vcmask 1043456  }
  0x47   : > { %s6083_s4 = sld [smem:[#allocation163_spill]]  ;;  %s6084_s5 = sld [smem:[#allocation164_spill]]  ;;  %v414_v60 = vlaneseq (%p402_p5)  ;;  %v2979_v61 = vmov (%p402_p5), 1966171168  }
  0x48   : > { %s320_s22 = scalar_select %p319_p3, %s2966_s23, 1 }
  0x49   : > { %v412_v62 = vunpack.c.l.s4 (%p402_p5), %v2979_v61  ;;  %v415_v63 = vshrl.u32 (%p402_p5), %v414_v60, 7  ;;  %vm428_vm1 = vcmp.lt.s32.totalorder (%p402_p5), %v414_v60, 256 }
  0x4a   : > { %s2822_s3 = sshll.u32 %s320_s22, 3 }
  0x4d   : > { %s327_s28 = scalar_lea.vmem %s6083_s4, %s2822_s3  ;;  %s336_s9 = scalar_lea.vmem %s6084_s5, %s2822_s3 }
  0x4e   : > { %v337_v0 = vld [vmem:[%s327_s28] sm:$0xff] }
  0x4f   : > { %v338_v1 = vld [vmem:[%s336_s9] sm:$0xff]  ;;  %v340_v2 = vcombine.high %v337_v0, %v337_v0  ;;  %v343_v3 = vsel %vm342_vm0, %v337_v0, 0.0  ;;  %v357_v4 = vsel %vm342_vm0, %v337_v0, -inf }
  0x50   : > { %v372_v5 = vcombine.high %v338_v1, %v338_v1  ;;  %v344_v6 = vrot.slane %v343_v3, 4  ;;  %v358_v7 = vrot.slane %v357_v4, 4  ;;  %v374_v8 = vsel %vm342_vm0, %v338_v1, 0.0 }
  0x51   : > { %v388_v9 = vsel %vm342_vm0, %v338_v1, -inf  ;;  %v350_v10 = vsel %vm342_vm0, %v340_v2, 0.0  ;;  %v364_v11 = vsel %vm342_vm0, %v340_v2, -inf  ;;  %v375_v12 = vrot.slane %v374_v8, 4 }
  0x52   : > { %v381_v13 = vsel %vm342_vm0, %v372_v5, 0.0  ;;  %v345_v14 = vadd.f32 %v344_v6, %v343_v3  ;;  %v351_v15 = vrot.slane %v350_v10, 4  ;;  %v359_v16 = vmax.f32 %v357_v4, %v358_v7 }
  0x53   : > { %v365_v17 = vrot.slane %v364_v11, 4  ;;  %v376_v18 = vadd.f32 %v375_v12, %v374_v8  ;;  %v382_v19 = vrot.slane %v381_v13, 4  ;;  %v389_v20 = vrot.slane %v388_v9, 4 }
  0x54   : > { %v395_v21 = vsel %vm342_vm0, %v372_v5, -inf  ;;  %v346_v22 = vrot.slane %v345_v14, 2  ;;  %v352_v23 = vadd.f32 %v351_v15, %v350_v10  ;;  %v360_v24 = vrot.slane %v359_v16, 2 }
  0x55   : > { %v366_v25 = vmax.f32 %v364_v11, %v365_v17  ;;  %v377_v26 = vrot.slane %v376_v18, 2  ;;  %v383_v27 = vadd.f32 %v382_v19, %v381_v13  ;;  %v390_v28 = vmax.f32 %v388_v9, %v389_v20 }
  0x56   : > { %v396_v29 = vrot.slane %v395_v21, 4  ;;  %v347_v30 = vadd.f32 %v346_v22, %v345_v14  ;;  %v353_v31 = vrot.slane %v352_v23, 2  ;;  %v361_v32 = vmax.f32 %v359_v16, %v360_v24 }
  0x57   : > { %v367_v33 = vrot.slane %v366_v25, 2  ;;  %v378_v34 = vadd.f32 %v377_v26, %v376_v18  ;;  %v384_v35 = vrot.slane %v383_v27, 2  ;;  %v391_v36 = vrot.slane %v390_v28, 2 }
  0x58   : > { %v397_v37 = vmax.f32 %v395_v21, %v396_v29  ;;  %v348_v38 = vrot.slane %v347_v30, 1  ;;  %v354_v39 = vadd.f32 %v353_v31, %v352_v23  ;;  %v362_v40 = vrot.slane %v361_v32, 1 }
  0x59   : > { %v368_v41 = vmax.f32 %v366_v25, %v367_v33  ;;  %v379_v42 = vrot.slane %v378_v34, 1  ;;  %v385_v43 = vadd.f32 %v384_v35, %v383_v27  ;;  %v392_v44 = vmax.f32 %v390_v28, %v391_v36 }
  0x5a   : > { %v398_v45 = vrot.slane %v397_v37, 2  ;;  %v349_v46 = vadd.f32 %v348_v38, %v347_v30  ;;  %v355_v47 = vrot.slane %v354_v39, 1  ;;  %v363_v48 = vmax.f32 %v361_v32, %v362_v40  ;;  %407 = sbr.rel (!%p402_p5) target bundleno = 102 (0x66), region = 60 }
  0x5b   : > { %v369_v49 = vrot.slane %v368_v41, 1  ;;  %v380_v50 = vadd.f32 %v379_v42, %v378_v34  ;;  %v386_v51 = vrot.slane %v385_v43, 1  ;;  %v393_v52 = vrot.slane %v392_v44, 1 }
  0x5c   : > { %v399_v53 = vmax.f32 %v397_v37, %v398_v45  ;;  %v356_v54 = vadd.f32 %v355_v47, %v354_v39  ;;  %v413_v1 = vunpack.c.0.s8 (%p402_p5), %v412_v62 }
  0x5d   : > { %v370_v55 = vmax.f32 %v368_v41, %v369_v49  ;;  %v387_v56 = vadd.f32 %v386_v51, %v385_v43  ;;  %v394_v57 = vmax.f32 %v392_v44, %v393_v52 }
  0x5e   : > { %v400_v58 = vrot.slane %v399_v53, 1  ;;  %v410_v0 = vcombine.low (%p402_p5), %v349_v46, %v356_v54  ;;  %v416_v3 = vsub.s32 (%p402_p5), %v413_v1, %v415_v63 }
  0x5f   : > { %v433_v2 = vcombine.low (%p402_p5), %v380_v50, %v387_v56 }
  0x60   : > { %v401_v59 = vmax.f32 %v399_v53, %v400_v58  ;;  %v417_v4 = vrot.slane (%p402_p5), %v410_v0, %v416_v3 }
  0x61   : > { %v440_v5 = vrot.slane %v433_v2, %v416_v3 }
  0x62   : > { %v424_v6 = vrot.slane %v417_v4, %v416_v3 }
  0x63   : > { %v447_v7 = vrot.slane %v440_v5, %v416_v3 }
  0x64   : > { %430 = vst.msk [vmem:[#allocation2] sm:$0x3] %vm428_vm1, %v424_v6 }
  0x65   : > { %449 = vst.msk [vmem:[#allocation4] sm:$0x3] %vm428_vm1, %v447_v7 }
  0x66 PF: > { %452 = sbr.rel (%p402_p5) target bundleno = 116 (0x74), region = 64  ;;  %v460_v8 = vlaneseq (!%p402_p5)  ;;  %v2980_v9 = vmov (!%p402_p5), 1966171168   ;;  %v456_v12 = vcombine.low (!%p402_p5), %v349_v46, %v356_v54  ;;  %v481_v14 = vcombine.low (!%p402_p5), %v380_v50, %v387_v56 }
  0x67   : > { %v458_v10 = vunpack.c.l.s4 (!%p402_p5), %v2980_v9 }
  0x68   : > { %v461_v11 = vshrl.u32 (!%p402_p5), %v460_v8, 7  ;;  %vm475_vm2 = vcmp.lt.s32.totalorder (!%p402_p5), %v460_v8, 256 }
  0x69   : > { %v459_v13 = vunpack.c.0.s8 (!%p402_p5), %v458_v10 }
  0x6b   : > { %v462_v15 = vsub.s32 (!%p402_p5), %v459_v13, %v461_v11  ;;  %v453_v18 = vld [vmem:[#allocation2] sm:$0x3] (!%p402_p5) }
  0x6c   : > { %v478_v19 = vld [vmem:[#allocation4] sm:$0x3] (!%p402_p5) }
  0x6d   : > { %v463_v16 = vrot.slane %v456_v12, %v462_v15  ;;  %v488_v17 = vrot.slane %v481_v14, %v462_v15 }
  0x6f   : > { %v470_v20 = vrot.slane %v463_v16, %v462_v15  ;;  %v495_v21 = vrot.slane %v488_v17, %v462_v15 }
  0x71   : > { %v472_v22 = vadd.f32 %v470_v20, %v453_v18  ;;  %v497_v23 = vadd.f32 %v495_v21, %v478_v19 }
  0x73   : > { %477 = vst.msk [vmem:[#allocation2] sm:$0x3] %vm475_vm2, %v472_v22  ;;  %498 = vst.msk [vmem:[#allocation4] sm:$0x3] %vm475_vm2, %v497_v23 }
  0x74 PF: > { %v508_v24 = vlaneseq  ;;  %v2981_v25 = vmov 1966171168   ;;  %v504_v28 = vcombine.low %v363_v48, %v370_v55  ;;  %v527_v30 = vcombine.low %v394_v57, %v401_v59 }
  0x75   : > { %v506_v26 = vunpack.c.l.s4 %v2981_v25  ;;  %v6086_v34 = vmov 0 }
  0x76   : > { %v509_v27 = vshrl.u32 %v508_v24, 7  ;;  %vm3130_vm3 = vcmp.lt.s32.totalorder %v508_v24, 256 }
  0x77   : > { %v507_v29 = vunpack.c.0.s8 %v506_v26  ;;  %v6087_v34 = vsel %vm3130_vm3, 4294967295, %v6086_v34 }
  0x78   : > { %6088 = vst [vmem:[#allocation20_spill] sm:$0xff] %v6087_v34 }
  0x79   : > { %v3125_v31 = vsub.s32 %v507_v29, %v509_v27  ;;  %595 = sbr.rel (!%p402_p5) target bundleno = 136 (0x88), region = 76 }
  0x7b   : > { %6085 = vst [vmem:[#allocation19_spill] sm:$0xff] %v3125_v31  ;;  %v511_v32 = vrot.slane %v504_v28, %v3125_v31  ;;  %v534_v33 = vrot.slane %v527_v30, %v3125_v31 }
  0x7d   : > { %v518_v35 = vrot.slane %v511_v32, %v3125_v31  ;;  %v541_v36 = vrot.slane %v534_v33, %v3125_v31 }
  0x7f   : > { %524 = vst.msk [vmem:[#allocation6] sm:$0x3] %vm3130_vm3, %v518_v35  ;;  %543 = vst.msk [vmem:[#allocation7] sm:$0x3] %vm3130_vm3, %v541_v36 }
  0x86   : > { %v596_v37 = vld [vmem:[#allocation6] sm:$0x3]  ;;  %v602_v38 = vld [vmem:[#allocation7] sm:$0x3] }
  0x87   : > { %601 = vst.msk [vmem:[#allocation3] sm:$0x3] %vm3130_vm3, %v596_v37  ;;  %603 = vst.msk [vmem:[#allocation5] sm:$0x3] %vm3130_vm3, %v602_v38 }
  0x88 PF: > { %p604_p8 = scmp.ne.s32.totalorder %s2966_s23, 0 }
  0x8a   : > { %608 = sbr.rel (!%p604_p8) target bundleno = 147 (0x93), region = 80 }
  0x8e   : > { %v609_v39 = vld [vmem:[#allocation3] sm:$0x3] (%p604_p8)  ;;  %v610_v40 = vld [vmem:[#allocation6] sm:$0x3] (%p604_p8)  ;;  %v617_v41 = vld [vmem:[#allocation5] sm:$0x3] (%p604_p8) }
  0x8f   : > { %v611_v42 = vadd.f32 (%p604_p8), %v610_v40, %v609_v39  ;;  %v618_v43 = vld [vmem:[#allocation7] sm:$0x3] (%p604_p8) }
  0x90   : > { %v619_v44 = vadd.f32 (%p604_p8), %v618_v43, %v617_v41 }
  0x91   : > { %616 = vst.msk [vmem:[#allocation3] sm:$0x3] %vm3130_vm3, %v611_v42 }
  0x92   : > { %620 = vst.msk [vmem:[#allocation5] sm:$0x3] %vm3130_vm3, %v619_v44 }
  0x93 PF: > { %p621_p9 = scmp.eq.s32.totalorder %s2966_s23, 1 }
  0x95   : > { %625 = sbr.rel (!%p621_p9) target bundleno = 963 (0x3c3), region = 84 }
  0x9c   : > { %v626_v45 = vld [vmem:[#allocation2] sm:$0x3]  ;;  %v3152_v46 = vsub.s32 0, %v509_v27  ;;  %v3156_v48 = vsub.s32 1, %v509_v27  ;;  %v628_v49 = vld [vmem:[#allocation3] sm:$0x3] }
  0x9d   : > { %v3154_v47 = vmul.f32 0.125, %v626_v45  ;;  %s5815_s29 = smov 112   ;;  %s5817_s10 = smov 16   ;;  %v3164_v52 = vmul.f32 0.5, %v628_v49  ;;  %v630_v55 = vld [vmem:[#allocation4] sm:$0x3] }
  0x9e   : > { %v3174_v56 = vmul.f32 0.125, %v630_v55  ;;  %v632_v59 = vld [vmem:[#allocation5] sm:$0x3]  ;;  %s5823_s23 = smov 1   ;;  %s5819_s11 = smov 127   ;;  %v3219_v63 = vand.u32 127, %v508_v24 }
  0x9f   : > { %v681_v50 = vrot.slane %v3154_v47, %v3152_v46  ;;  %v685_v51 = vrot.slane %v3154_v47, %v3156_v48  ;;  %v1020_v53 = vrot.slane %v3164_v52, %v3156_v48  ;;  %v1016_v54 = vrot.slane %v3164_v52, %v3152_v46  ;;  %s3296_s12 = sld [smem:[#allocation9 + $0x7]]  ;;  %s3302_s13 = sld [smem:[#allocation9 + $0x2b]] }
  0xa0   : > { %v3180_v57 = vrot.slane %v3174_v56, %v3156_v48  ;;  %v3184_v58 = vrot.slane %v3174_v56, %v3152_v46  ;;  %v3190_v60 = vmul.f32 0.5, %v632_v59  ;;  %vm701_vm4 = vcmp.lt.s32.totalorder %v3219_v63, 112  ;;  %s3304_s14 = sld [smem:[#allocation9 + $0x4f]]  ;;  %s3306_s15 = sld [smem:[#allocation9 + $0x73]] }
  0xa1   : > { %697 = vrot.lane.b32.xlu1 %v681_v50, %s5815_s29  ;;  %688 = vrot.lane.b32.xlu0 %v681_v50, %s5817_s10  ;;  %vm692_vm5 = vcmp.lt.s32.totalorder %v3219_v63, 16  ;;  %vm661_vm6 = vcmp.ge.s32.totalorder %v3219_v63, 16  ;;  %v3255_v11 = vadd.s32 128, %v3219_v63  ;;  %s3308_s16 = sld [smem:[#allocation9 + $0x1]]  ;;  %s3310_s17 = sld [smem:[#allocation9 + $0x25]]  ;;  %vm710_vm8 = vcmp.lt.s32.totalorder %v3219_v63, 1 }
  0xa2   : > { %v3198_v61 = vrot.slane %v3190_v60, %v3156_v48  ;;  %v3202_v62 = vrot.slane %v3190_v60, %v3152_v46  ;;  %s3312_s18 = sld [smem:[#allocation9 + $0x49]]  ;;  %s3314_s19 = sld [smem:[#allocation9 + $0x6d]]  ;;  %vm719_vm11 = vcmp.lt.s32.totalorder %v3219_v63, 127 }
  0xa3   : > { %6089 = vst [vmem:[#allocation21_spill] sm:$0xff] %v3255_v11  ;;  %vm664_vm7 = vcmp.lt.s32.totalorder %v3255_v11, 240  ;;  %s3316_s20 = sld [smem:[#allocation9 + $0xa]]  ;;  %s3324_s21 = sld [smem:[#allocation9 + $0x2e]] }
  0xa4   : > { %s3326_s22 = sld [smem:[#allocation9 + $0x52]]  ;;  %s3328_s3 = sld [smem:[#allocation9 + $0x76]] }
  0xa5   : > { %699 = vrot.lane.b32.xlu1 %v685_v51, %s5815_s29  ;;  %690 = vrot.lane.b32.xlu0 %v685_v51, %s5817_s10  ;;  %6090 = sst [smem:[#allocation22_spill]] %s3296_s12  ;;  %s3330_s26 = sld [smem:[#allocation9 + $0x10]]  ;;  %v965_v30 = vstv %s3296_s12  ;;  %v971_v32 = vstv %s3302_s13 }
  0xa6   : > { %6091 = sst [smem:[#allocation23_spill]] %s3302_s13  ;;  %s3334_s28 = sld [smem:[#allocation9 + $0x58]]  ;;  %v5903_v33 = vstv %s3304_s14  ;;  %v5902_v35 = vstv %s3306_s15 }
  0xa7   : > { %6092 = sst [smem:[#allocation24_spill]] %s3304_s14  ;;  %s3332_s27 = sld [smem:[#allocation9 + $0x34]]  ;;  %v781_v36 = vstv %s3308_s16  ;;  %v787_v38 = vstv %s3310_s17 }
  0xa8   : > { %6093 = sst [smem:[#allocation25_spill]] %s3306_s15  ;;  %s3340_s30 = sld [smem:[#allocation9 + $0x7c]]  ;;  %v793_v39 = vstv %s3312_s18  ;;  %v799_v40 = vstv %s3314_s19 }
  0xa9   : > { %1025 = vrot.lane.b32.xlu1 %v1020_v53, %s5817_s10  ;;  %1023 = vrot.lane.b32.xlu0 %v1016_v54, %s5817_s10  ;;  %6094 = sst [smem:[#allocation26_spill]] %s3308_s16  ;;  %s3342_s8 = sld [smem:[#allocation9 + $0x13]]  ;;  %v5906_v41 = vstv %s3316_s20  ;;  %v5907_v42 = vstv %s3324_s21 }
  0xaa   : > { %6095 = sst [smem:[#allocation27_spill]] %s3310_s17  ;;  %s3350_s9 = sld [smem:[#allocation9 + $0x37]]  ;;  %v5908_v43 = vstv %s3326_s22  ;;  %v5909_v44 = vstv %s3328_s3 }
  0xab   : > { %6096 = sst [smem:[#allocation28_spill]] %s3312_s18  ;;  %s6110_s2 = smov 127   ;;  %v5917_v49 = vstv %s3330_s26 }
  0xac   : > { %6097 = sst [smem:[#allocation29_spill]] %s3314_s19  ;;  %s3356_s0 = sld [smem:[#allocation9 + $0x19]] }
  0xad   : > { %1033 = vrot.lane.b32.xlu1 %v1020_v53, %s5815_s29  ;;  %1031 = vrot.lane.b32.xlu0 %v1016_v54, %s5815_s29  ;;  %6098 = sst [smem:[#allocation30_spill]] %s3316_s20  ;;  %s3364_s1 = sld [smem:[#allocation9 + $0x61]] }
  0xae   : > { %6099 = sst [smem:[#allocation31_spill]] %s3324_s21  ;;  %s3370_s4 = sld [smem:[#allocation9 + $0x85]] }
  0xaf   : > { %6100 = sst [smem:[#allocation32_spill]] %s3326_s22  ;;  %s3372_s5 = sld [smem:[#allocation9 + $0x1c]]  ;;  %v5940_v55 = vstv %s3342_s8 }
  0xb0   : > { %6101 = sst [smem:[#allocation33_spill]] %s3328_s3  ;;  %s3374_s7 = sld [smem:[#allocation9 + $0x40]] }
  0xb1   : > { %1356 = vrot.lane.b32.xlu1 %v3180_v57, %s5817_s10  ;;  %1354 = vrot.lane.b32.xlu0 %v3184_v58, %s5817_s10  ;;  %6102 = sst [smem:[#allocation34_spill]] %s3330_s26  ;;  %s3376_s24 = sld [smem:[#allocation9 + $0x64]] }
  0xb2   : > { %6103 = sst [smem:[#allocation35_spill]] %s3332_s27  ;;  %s3386_s6 = sld [smem:[#allocation9 + $0x27]] }
  0xb3   : > { %6104 = sst [smem:[#allocation36_spill]] %s3342_s8  ;;  %s3380_s25 = sld [smem:[#allocation9 + $0x88]] }
  0xb4   : > { %6105 = sst [smem:[#allocation37_spill]] %s3350_s9  ;;  %s3409_s13 = sld [smem:[#allocation9 + $0x46]] }
  0xb5   : > { %1364 = vrot.lane.b32.xlu1 %v3180_v57, %s5815_s29  ;;  %1362 = vrot.lane.b32.xlu0 %v3184_v58, %s5815_s29  ;;  %6107 = sst [smem:[#allocation39_spill]] %s3356_s0  ;;  %s3411_s12 = sld [smem:[#allocation9 + $0x6a]] }
  0xb6   : > { %6109 = sst [smem:[#allocation41_spill]] %s3364_s1  ;;  %s3419_s16 = sld [smem:[#allocation9 + $0x5]] }
  0xb7   : > { %6111 = sst [smem:[#allocation42_spill]] %s3370_s4  ;;  %s3417_s14 = sld [smem:[#allocation9 + $0x8e]] }
  0xb8   : > { %6112 = sst [smem:[#allocation43_spill]] %s3372_s5  ;;  %s3388_s5 = sld [smem:[#allocation9 + $0x4b]] }
  0xb9   : > { %1687 = vrot.lane.b32.xlu1 %v3198_v61, %s5817_s10  ;;  %1685 = vrot.lane.b32.xlu0 %v3202_v62, %s5817_s10  ;;  %s3354_s10 = sld [smem:[#allocation9 + $0x7f]]  ;;  %6113 = sst [smem:[#allocation44_spill]] %s3374_s7 }
  0xba   : > { %6114 = sst [smem:[#allocation45_spill]] %s3376_s24  ;;  %s3428_s17 = sld [smem:[#allocation9 + $0x29]] }
  0xbb   : > { %6115 = sst [smem:[#allocation46_spill]] %s3380_s25  ;;  %s3396_s25 = sld [smem:[#allocation9 + $0x6f]] }
  0xbc   : > { %6117 = sst [smem:[#allocation48_spill]] %s3386_s6  ;;  %s6127_s22 = smov 1  }
  0xbd   : > { %726 = vrot.lane.b32.xlu1 %v685_v51, %s5823_s23  ;;  %724 = vrot.lane.b32.xlu0 %v681_v50, %s5823_s23  ;;  %6121 = sst [smem:[#allocation52_spill]] %s3409_s13  ;;  %s3430_s20 = sld [smem:[#allocation9 + $0x4d]] }
  0xbe   : > { %6118 = sst [smem:[#allocation49_spill]] %s3388_s5  ;;  %s3440_s21 = sld [smem:[#allocation9 + $0x71]] }
  0xbf   : > { %6106 = sst [smem:[#allocation38_spill]] %s3354_s10  ;;  %s3442_s19 = sld [smem:[#allocation9 + $0xc]]  ;;  %v5938_v59 = vstv %s3354_s10 }
  0xc0   : > { %6122 = sst [smem:[#allocation53_spill]] %s3411_s12  ;;  %s3450_s26 = sld [smem:[#allocation9 + $0x54]] }
  0xc1   : > { %1695 = vrot.lane.b32.xlu1 %v3198_v61, %s5815_s29  ;;  %1693 = vrot.lane.b32.xlu0 %v3202_v62, %s5815_s29  ;;  %s3352_s29 = sld [smem:[#allocation9 + $0x5b]]  ;;  %6119 = sst [smem:[#allocation50_spill]] %s3396_s25 }
  0xc2   : > { %6123 = sst [smem:[#allocation54_spill]] %s3417_s14  ;;  %s3465_s8 = sld [smem:[#allocation9]] }
  0xc3   : > { %6124 = sst [smem:[#allocation55_spill]] %s3419_s16  ;;  %s3474_s3 = sld [smem:[#allocation11]] }
  0xc4   : > { %6125 = sst [smem:[#allocation56_spill]] %s3428_s17  ;;  %s3476_s4 = sld [smem:[#allocation9 + $0x24]] }
  0xc5   : > { %734 = vrot.lane.b32.xlu1 %v685_v51, %s5819_s11  ;;  %732 = vrot.lane.b32.xlu0 %v681_v50, %s5819_s11  ;;  %6126 = sst [smem:[#allocation57_spill]] %s3430_s20  ;;  %v5916_v50 = vstv %s3332_s27  ;;  %s3448_s27 = sld [smem:[#allocation9 + $0x30]] }
  0xc6   : > { %6129 = sst [smem:[#allocation58_spill]] %s3440_s21  ;;  %s3482_s7 = sld [smem:[#allocation11 + $0x1]] }
  0xc7   : > { %6130 = sst [smem:[#allocation59_spill]] %s3442_s19  ;;  %s3484_s24 = sld [smem:[#allocation11 + $0x2]] }
  0xc8   : > { %6132 = sst [smem:[#allocation61_spill]] %s3450_s26  ;;  %s3490_s1 = sld [smem:[#allocation11 + $0x3]] }
  0xc9   : > { %1057 = vrot.lane.b32.xlu1 %v1020_v53, %s5823_s23  ;;  %1055 = vrot.lane.b32.xlu0 %v1016_v54, %s5823_s23  ;;  %6136 = sst [smem:[#allocation63_spill]] %s3465_s8  ;;  %s3513_s16 = sld [smem:[#allocation9 + $0x2]] }
  0xca   : > { %6137 = sst [smem:[#allocation64_spill]] %s3474_s3  ;;  %s3498_s5 = sld [smem:[#allocation9 + $0x6c]] }
  0xcb   : > { %6131 = sst [smem:[#allocation60_spill]] %s3448_s27  ;;  %s3500_s25 = sld [smem:[#allocation9 + $0x4]] }
  0xcc   : > { %6138 = sst [smem:[#allocation65_spill]] %s3476_s4  ;;  %s3533_s21 = sld [smem:[#allocation9 + $0x4a]] }
  0xcd   : > { %6139 = sst [smem:[#allocation66_spill]] %s3482_s7  ;;  %s3515_s13 = sld [smem:[#allocation9 + $0x26]] }
  0xce   : > { %6140 = sst [smem:[#allocation67_spill]] %s3484_s24  ;;  %s6159_s26 = sld [smem:[#allocation30_spill]] }
  0xcf   : > { %6141 = sst [smem:[#allocation68_spill]] %s3490_s1  ;;  %s3535_s6 = sld [smem:[#allocation9 + $0x28]] }
  0xd0   : > { %6145 = sst [smem:[#allocation69_spill]] %s3498_s5  ;;  %s3557_s27 = sld [smem:[#allocation9 + $0x6e]] }
  0xd1   : > { %6150 = sst [smem:[#allocation26_spill]] %s3513_s16  ;;  %s6161_s15 = sld [smem:[#allocation31_spill]] }
  0xd2   : > { %6156 = sst [smem:[#allocation28_spill]] %s3533_s21  ;;  %s3559_s12 = sld [smem:[#allocation9 + $0x4c]] }
  0xd3   : > { %6151 = sst [smem:[#allocation27_spill]] %s3515_s13  ;;  %s6162_s14 = sld [smem:[#allocation32_spill]] }
  0xd4   : > { %s6163_s18 = sld [smem:[#allocation33_spill]]  ;;  %s3582_s20 = sld [smem:[#allocation9 + $0x32]] }
  0xd5   : > { %s3580_s10 = sld [smem:[#allocation9 + $0xe]]  ;;  %s6168_s17 = sld [smem:[#allocation34_spill]] }
  0xd6   : > { %6160 = sst [smem:[#allocation29_spill]] %s3557_s27  ;;  %s6170_s19 = sld [smem:[#allocation35_spill]] }
  0xd7   : > { %s6175_s1 = sld [smem:[#allocation36_spill]]  ;;  %s6182_s16 = sld [smem:[#allocation37_spill]] }
  0xd8   : > { %s3679_s24 = sld [smem:[#allocation9 + $0x6]]  ;;  %s3688_s7 = sld [smem:[#allocation9 + $0x2a]] }
  0xd9   : > { %s3690_s3 = sld [smem:[#allocation9 + $0x4e]]  ;;  %s3700_s21 = sld [smem:[#allocation9 + $0x72]] }
  0xda   : > { %6165 = sst [smem:[#allocation31_spill]] %s3582_s20  ;;  %s6196_s20 = sld [smem:[#allocation42_spill]] }
  0xdb   : > { %6164 = sst [smem:[#allocation30_spill]] %s3580_s10  ;;  %s6208_s13 = sld [smem:[#allocation44_spill]] }
  0xdc   : > { %s6222_s10 = sld [smem:[#allocation24_spill]]  ;;  %s6225_s27 = sld [smem:[#allocation25_spill]] }
  0xdd   : > { %s3864_s4 = sld [smem:[#allocation9 + $0x2d]]  ;;  %s3866_s8 = sld [smem:[#allocation9 + $0x51]] }
  0xde   : > { %6184 = sst [smem:[#allocation34_spill]] %s3679_s24  ;;  %s3850_s24 = sld [smem:[#allocation9 + $0x9]] }
  0xdf   : > { %6185 = sst [smem:[#allocation35_spill]] %s3688_s7  ;;  %s3833_s7 = sld [smem:[#allocation9 + $0x74]] }
  0xe0   : > { %6186 = sst [smem:[#allocation36_spill]] %s3690_s3  ;;  %s3831_s3 = sld [smem:[#allocation9 + $0x50]] }
  0xe1   : > { %6190 = sst [smem:[#allocation37_spill]] %s3700_s21 }
  0xe3   : > { %6238 = sst [smem:[#allocation42_spill]] %s3864_s4  ;;  %s4141_s4 = sld [smem:[#allocation9 + $0x16]] }
 0x113   : > { %v698_v0 = vpop.permute.xlu1 %697  ;;  %v689_v1 = vpop.permute.xlu0 %688 }
 0x117   : > { %v700_v2 = vpop.permute.xlu1 %699  ;;  %v691_v3 = vpop.permute.xlu0 %690 }
 0x118   : > { %v3225_v4 = vsel %vm701_vm4, %v698_v0, %v700_v2  ;;  %v3229_v5 = vsel %vm692_vm5, %v689_v1, %v691_v3  ;;  %v694_v8 = vsel %vm692_vm5, %v691_v3, %v689_v1  ;;  %v703_v14 = vsel %vm701_vm4, %v700_v2, %v698_v0 }
 0x119   : > { %740 = vrot.lane.b32.xlu0 %v3225_v4, %s5823_s23  ;;  %708 = vrot.lane.b32.xlu1 %v3229_v5, %s5823_s23  ;;  %v3248_v10 = vsel %vm661_vm6, %v694_v8, 0.0  ;;  %v3272_v16 = vsel %vm664_vm7, %v703_v14, 0.0  ;;  %v5939_v0 = vstv %s3356_s0  ;;  %v5925_v8 = vand.u32 15, %v3219_v63  ;;  %s3492_s0 = sld [smem:[#allocation9 + $0x48]] }
 0x11b   : > { %v1026_v6 = vpop.permute.xlu1 %1025  ;;  %v1024_v7 = vpop.permute.xlu0 %1023  ;;  %vm3657_vm9 = vcmp.ge.s32.totalorder %v5925_v8, 1 }
 0x11c   : > { %v3244_v9 = vsel %vm692_vm5, %v1024_v7, %v1026_v6  ;;  %v1028_v19 = vsel %vm692_vm5, %v1026_v6, %v1024_v7 }
 0x11d   : > { %748 = vrot.lane.b32.xlu0 %v3225_v4, %s5819_s11  ;;  %717 = vrot.lane.b32.xlu1 %v3229_v5, %s5819_s11  ;;  %v3290_v21 = vsel %vm661_vm6, %v1028_v19, 0.0  ;;  %v3555_v19 = vmul.f32 %v787_v38, %v3229_v5 }
 0x11f   : > { %v1034_v12 = vpop.permute.xlu1 %1033  ;;  %v1032_v13 = vpop.permute.xlu0 %1031  ;;  %6143 = sst [smem:[#allocation22_spill]] %s3492_s0  ;;  %s6195_s0 = sld [smem:[#allocation41_spill]] }
 0x120   : > { %v3268_v15 = vsel %vm701_vm4, %v1032_v13, %v1034_v12  ;;  %v1036_v22 = vsel %vm701_vm4, %v1034_v12, %v1032_v13  ;;  %6232 = sst [smem:[#allocation41_spill]] %s3850_s24 }
 0x121   : > { %706 = vrot.lane.b32.xlu0 %v3248_v10, %s5823_s23  ;;  %1041 = vrot.lane.b32.xlu1 %v3244_v9, %s5823_s23  ;;  %v3338_v23 = vsel %vm664_vm7, %v1036_v22, 0.0  ;;  %v3545_v22 = vmul.f32 %v5902_v35, %v3225_v4  ;;  %v3569_v35 = vmul.f32 %v787_v38, %v3248_v10  ;;  %v3592_v38 = vmul.f32 %v799_v40, %v3248_v10  ;;  %s4154_s24 = sld [smem:[#allocation9 + $0x5e]] }
 0x122   : > { %v3640_v1 = vmul.f32 %v5917_v49, %v3268_v15 }
 0x123   : > { %v1357_v17 = vpop.permute.xlu1 %1356  ;;  %v1355_v18 = vpop.permute.xlu0 %1354  ;;  %6158 = vst [vmem:[#allocation73_spill] sm:$0xff] %v3545_v22 }
 0x124   : > { %v3286_v20 = vsel %vm692_vm5, %v1355_v18, %v1357_v17  ;;  %v1359_v24 = vsel %vm692_vm5, %v1357_v17, %v1355_v18  ;;  %v3550_v18 = vmul.f32 %v781_v36, %v3229_v5  ;;  %6173 = vst [vmem:[#allocation78_spill] sm:$0xff] %v3640_v1 }
 0x125   : > { %715 = vrot.lane.b32.xlu0 %v3248_v10, %s5819_s11  ;;  %1049 = vrot.lane.b32.xlu1 %v3244_v9, %s5819_s11  ;;  %v3360_v27 = vsel %vm661_vm6, %v1359_v24, 0.0  ;;  %v5918_v24 = vand.u32 15, %v3255_v11 }
 0x127   : > { %v1365_v25 = vpop.permute.xlu1 %1364  ;;  %v1363_v26 = vpop.permute.xlu0 %1362  ;;  %vm3663_vm10 = vcmp.ge.s32.totalorder %v5918_v24, 1 }
 0x128   : > { %v3426_v45 = vsel %vm701_vm4, %v1363_v26, %v1365_v25  ;;  %v1367_v51 = vsel %vm701_vm4, %v1365_v25, %v1363_v26  ;;  %v3540_v25 = vmul.f32 %v5903_v33, %v3225_v4  ;;  %v3574_v33 = vmul.f32 %v793_v39, %v3248_v10 }
 0x129   : > { %1063 = vrot.lane.b32.xlu0 %v1016_v54, %s5819_s11  ;;  %1065 = vrot.lane.b32.xlu1 %v1020_v53, %s5819_s11  ;;  %v5919_v53 = vstv %s3334_s28  ;;  %v5924_v54 = vstv %s3340_s30  ;;  %v3460_v6 = vsel %vm664_vm7, %v1367_v51, 0.0 }
 0x12a   : > { %6157 = vst [vmem:[#allocation72_spill] sm:$0xff] %v3540_v25  ;;  %v3670_v12 = vmul.f32 %v5919_v53, %v3268_v15  ;;  %v885_v53 = vstv %s3559_s12  ;;  %s6191_s12 = sld [smem:[#allocation39_spill]] }
 0x12b   : > { %v3378_v28 = vpop.permute.xlu1 %1687  ;;  %v3382_v29 = vpop.permute.xlu0 %1685  ;;  %6227 = sst [smem:[#allocation39_spill]] %s3831_s3  ;;  %s3993_s3 = sld [smem:[#allocation9 + $0x81]] }
 0x12c   : > { %v3407_v37 = vsel %vm692_vm5, %v3382_v29, %v3378_v28  ;;  %v1690_v26 = vsel %vm692_vm5, %v3378_v28, %v3382_v29  ;;  %v3520_v28 = vmul.f32 %v965_v30, %v3225_v4  ;;  %v3525_v29 = vmul.f32 %v971_v32, %v3225_v4  ;;  %6181 = vst [vmem:[#allocation80_spill] sm:$0xff] %v3670_v12 }
 0x12d   : > { %742 = vrot.lane.b32.xlu1 %v3272_v16, %s5823_s23  ;;  %1071 = vrot.lane.b32.xlu0 %v3268_v15, %s5823_s23  ;;  %v3564_v4 = vmul.f32 %v781_v36, %v3248_v10  ;;  %v3578_v14 = vsel %vm661_vm6, %v1690_v26, 0.0  ;;  %v3587_v36 = vmul.f32 %v793_v39, %v3229_v5  ;;  %v3597_v26 = vmul.f32 %v799_v40, %v3229_v5 }
 0x12e   : > { %6152 = vst [vmem:[#allocation70_spill] sm:$0xff] %v3520_v28  ;;  %6154 = vst [vmem:[#allocation71_spill] sm:$0xff] %v3525_v29  ;;  %v3609_v10 = vmul.f32 %v5906_v41, %v3244_v9  ;;  %v3614_v5 = vmul.f32 %v5907_v42, %v3244_v9  ;;  %v3619_v39 = vmul.f32 %v5908_v43, %v3244_v9  ;;  %v869_v43 = vstv %s3535_s6  ;;  %s6188_s6 = sld [smem:[#allocation38_spill]] }
 0x12f   : > { %v3527_v17 = vpop.permute.xlu1 %726  ;;  %v3529_v51 = vpop.permute.xlu0 %724  ;;  %v3624_v40 = vmul.f32 %v5909_v44, %v3244_v9  ;;  %v853_v44 = vstv %s3500_s25  ;;  %v3645_v41 = vmul.f32 %v5916_v50, %v3268_v15  ;;  %s3653_s25 = sld [smem:[#allocation9 + $0x7a]]  ;;  %v3675_v42 = vmul.f32 %v5924_v54, %v3268_v15 }
 0x130   : > { %6167 = vst [vmem:[#allocation74_spill] sm:$0xff] %v3609_v10  ;;  %6169 = vst [vmem:[#allocation75_spill] sm:$0xff] %v3614_v5  ;;  %v3685_v24 = vmul.f32 %v853_v44, %v3154_v47  ;;  %v3718_v54 = vmul.f32 %v869_v43, %v3154_v47 }
 0x131   : > { %750 = vrot.lane.b32.xlu1 %v3272_v16, %s5819_s11  ;;  %1079 = vrot.lane.b32.xlu0 %v3268_v15, %s5819_s11  ;;  %6171 = vst [vmem:[#allocation76_spill] sm:$0xff] %v3619_v39  ;;  %6172 = vst [vmem:[#allocation77_spill] sm:$0xff] %v3624_v40  ;;  %v3695_v15 = vmul.f32 %v5940_v55, %v3286_v20 }
 0x132   : > { %6174 = vst [vmem:[#allocation79_spill] sm:$0xff] %v3645_v41  ;;  %6183 = vst [vmem:[#allocation81_spill] sm:$0xff] %v3675_v42 }
 0x133   : > { %v1696_v7 = vpop.permute.xlu1 %1695  ;;  %v1694_v3 = vpop.permute.xlu0 %1693  ;;  %6187 = vst [vmem:[#allocation82_spill] sm:$0xff] %v3695_v15 }
 0x134   : > { %v1698_v50 = vsel %vm701_vm4, %v1696_v7, %v1694_v3  ;;  %v3722_v2 = vsel %vm701_vm4, %v1694_v3, %v1696_v7  ;;  %v3743_v3 = vmul.f32 %v965_v30, %v3272_v16 }
 0x135   : > { %1039 = vrot.lane.b32.xlu0 %v3290_v21, %s5823_s23  ;;  %1372 = vrot.lane.b32.xlu1 %v3286_v20, %s5823_s23  ;;  %6176 = sst [smem:[#allocation33_spill]] %s3653_s25  ;;  %s3811_s25 = sld [smem:[#allocation9 + $0x8]] }
 0x136   : > { %6198 = vst [vmem:[#allocation86_spill] sm:$0xff] %v3743_v3 }
 0x137   : > { %v735_v34 = vpop.permute.xlu1 %734  ;;  %v733_v31 = vpop.permute.xlu0 %732 }
 0x139   : > { %1047 = vrot.lane.b32.xlu0 %v3290_v21, %s5819_s11  ;;  %1380 = vrot.lane.b32.xlu1 %v3286_v20, %s5819_s11 }
 0x13b   : > { %6217 = sst [smem:[#allocation38_spill]] %s3811_s25  ;;  %v1056_v41 = vpop.permute.xlu0 %1055  ;;  %s6284_s25 = sld [smem:[#allocation55_spill]] }
 0x13d   : > { %1386 = vrot.lane.b32.xlu0 %v3184_v58, %s5823_s23  ;;  %1388 = vrot.lane.b32.xlu1 %v3180_v57, %s5823_s23 }
 0x141   : > { %1394 = vrot.lane.b32.xlu0 %v3184_v58, %s5819_s11  ;;  %1073 = vrot.lane.b32.xlu1 %v3338_v23, %s5823_s23  ;;  %s3362_s11 = sld [smem:[#allocation9 + $0x3d]]  ;;  %v5936_v58 = vstv %s3352_s29 }
 0x142   : > { %v3710_v49 = vmul.f32 %v5936_v58, %v3286_v20  ;;  %v3726_v58 = vsel %vm664_vm7, %v1698_v50, 0.0  ;;  %v3748_v50 = vmul.f32 %v971_v32, %v3272_v16  ;;  %v6205_v32 = vstv %s6196_s20 }
 0x144   : > { %6194 = vst [vmem:[#allocation84_spill] sm:$0xff] %v3710_v49  ;;  %6199 = vst [vmem:[#allocation87_spill] sm:$0xff] %v3748_v50 }
 0x145   : > { %1370 = vrot.lane.b32.xlu0 %v3360_v27, %s5823_s23  ;;  %1081 = vrot.lane.b32.xlu1 %v3338_v23, %s6110_s2  ;;  %s3384_s23 = sld [smem:[#allocation9 + $0x3]] }
 0x147   : > { %6108 = sst [smem:[#allocation40_spill]] %s3362_s11  ;;  %s6207_s11 = sld [smem:[#allocation43_spill]] }
 0x148   : > { %s6193_s5 = sld [smem:[#allocation40_spill]]  ;;  %6239 = sst [smem:[#allocation43_spill]] %s3866_s8 }
 0x149   : > { %1378 = vrot.lane.b32.xlu0 %v3360_v27, %s6110_s2  ;;  %1396 = vrot.lane.b32.xlu1 %v3180_v57, %s6110_s2  ;;  %v5937_v57 = vstv %s3350_s9  ;;  %s3463_s9 = sld [smem:[#allocation9 + $0x78]]  ;;  %6228 = sst [smem:[#allocation40_spill]] %s3833_s7 }
 0x14a   : > { %v3705_v44 = vmul.f32 %v5937_v57, %v3286_v20  ;;  %v3729_v57 = vmul.f32 %v885_v53, %v3154_v47  ;;  %v3753_v53 = vmul.f32 %v5939_v0, %v3426_v45  ;;  %v6210_v0 = vand.u32 15, %v3219_v63  ;;  %s3995_s7 = sld [smem:[#allocation9 + $0xf]]  ;;  %s4125_s8 = sld [smem:[#allocation9 + $0x3b]] }
 0x14b   : > { %6116 = sst [smem:[#allocation47_spill]] %s3384_s23  ;;  %s3398_s23 = sld [smem:[#allocation9 + $0x22]] }
 0x14c   : > { %6192 = vst [vmem:[#allocation83_spill] sm:$0xff] %v3705_v44  ;;  %6200 = vst [vmem:[#allocation88_spill] sm:$0xff] %v3753_v53  ;;  %vm3784_vm12 = vcmp.lt.s32.totalorder %v6210_v0, 15  ;;  %s6231_s21 = sld [smem:[#allocation47_spill]] }
 0x14d   : > { %1402 = vrot.lane.b32.xlu0 %v3426_v45, %s6127_s22  ;;  %1703 = vrot.lane.b32.xlu1 %v3407_v37, %s6127_s22 }
 0x14e   : > { %v6201_v7 = vstv %s6193_s5 }
 0x14f   : > { %6135 = sst [smem:[#allocation62_spill]] %s3463_s9  ;;  %s3626_s9 = sld [smem:[#allocation9 + $0x70]]  ;;  %v3758_v8 = vmul.f32 %v6201_v7, %v3426_v45  ;;  %v6235_v7 = vstv %s6225_s27 }
 0x150   : > { %s6249_s27 = sld [smem:[#allocation50_spill]] }
 0x151   : > { %6120 = sst [smem:[#allocation51_spill]] %s3398_s23  ;;  %1410 = vrot.lane.b32.xlu0 %v3426_v45, %s6110_s2  ;;  %1404 = vrot.lane.b32.xlu1 %v3460_v6, %s6127_s22  ;;  %s3604_s23 = sld [smem:[#allocation9 + $0x56]]  ;;  %6202 = vst [vmem:[#allocation89_spill] sm:$0xff] %v3758_v8 }
 0x152   : > { %v6254_v8 = vstv %s6231_s21  ;;  %s3935_s21 = sld [smem:[#allocation9 + $0x77]] }
 0x155   : > { %1717 = vrot.lane.b32.xlu0 %v3202_v62, %s6127_s22  ;;  %1412 = vrot.lane.b32.xlu1 %v3460_v6, %s6110_s2 }
 0x157   : > { %6166 = sst [smem:[#allocation32_spill]] %s3604_s23  ;;  %s3813_s23 = sld [smem:[#allocation9 + $0x2c]] }
 0x158   : > { %6268 = sst [smem:[#allocation47_spill]] %s3935_s21  ;;  %s3969_s21 = sld [smem:[#allocation9 + $0x79]] }
 0x159   : > { %1701 = vrot.lane.b32.xlu0 %v3578_v14, %s6127_s22  ;;  %1711 = vrot.lane.b32.xlu1 %v3407_v37, %s6110_s2 }
 0x15d   : > { %1709 = vrot.lane.b32.xlu0 %v3578_v14, %s6110_s2  ;;  %1719 = vrot.lane.b32.xlu1 %v3198_v61, %s6127_s22  ;;  %6218 = sst [smem:[#allocation23_spill]] %s3813_s23  ;;  %s3985_s23 = sld [smem:[#allocation9 + $0x5d]] }
 0x161   : > { %1725 = vrot.lane.b32.xlu0 %v3202_v62, %s6110_s2  ;;  %1727 = vrot.lane.b32.xlu1 %v3198_v61, %s6110_s2  ;;  %v901_v62 = vstv %s3626_s9  ;;  %v3736_v61 = vmul.f32 %v5938_v59, %v3286_v20  ;;  %v6203_v20 = vstv %s6195_s0  ;;  %v3770_v59 = vmul.f32 %v6205_v32, %v3426_v45  ;;  %s6209_s9 = sld [smem:[#allocation45_spill]] }
 0x162   : > { %v3763_v43 = vmul.f32 %v6203_v20, %v3426_v45  ;;  %v3780_v30 = vmul.f32 %v901_v62, %v3154_v47  ;;  %v6213_v32 = vand.u32 15, %v3255_v11  ;;  %v728_v20 = vsel %vm710_vm8, %v3529_v51, %v3527_v17 }
 0x163   : > { %6197 = vst [vmem:[#allocation85_spill] sm:$0xff] %v3736_v61  ;;  %6206 = vst [vmem:[#allocation91_spill] sm:$0xff] %v3770_v59  ;;  %v729_v47 = vsel %vm710_vm8, %v3527_v17, %v3529_v51  ;;  %v6219_v11 = vstv %s6207_s11  ;;  %v6221_v51 = vstv %s6208_s13  ;;  %6283 = sst [smem:[#allocation50_spill]] %s3985_s23  ;;  %s4004_s23 = sld [smem:[#allocation9 + $0x33]] }
 0x164   : > { %6204 = vst [vmem:[#allocation90_spill] sm:$0xff] %v3763_v43  ;;  %vm3790_vm13 = vcmp.lt.s32.totalorder %v6213_v32, 15  ;;  %v3818_v17 = vmul.f32 %v6219_v11, %v3407_v37  ;;  %v3823_v0 = vmul.f32 %v6221_v51, %v3407_v37  ;;  %v730_v51 = vsel %vm3657_vm9, %v729_v47, 0.0 }
 0x165   : > { %1735 = vrot.lane.b32.xlu1 %v3726_v58, %s6127_s22  ;;  %1733 = vrot.lane.b32.xlu0 %v3722_v2, %s6127_s22  ;;  %s6216_s22 = sld [smem:[#allocation46_spill]]  ;;  %v3899_v53 = vmul.f32 %v6254_v8, %v730_v51 }
 0x166   : > { %6220 = vst [vmem:[#allocation92_spill] sm:$0xff] %v3818_v17  ;;  %6223 = vst [vmem:[#allocation93_spill] sm:$0xff] %v3823_v0  ;;  %v6248_v0 = vstv %s6163_s18  ;;  %s6261_s18 = sld [smem:[#allocation51_spill]] }
 0x167   : > { %v6224_v62 = vstv %s6209_s9  ;;  %v3888_v59 = vmul.f32 %v6248_v0, %v3290_v21  ;;  %6285 = sst [smem:[#allocation51_spill]] %s3993_s3  ;;  %s4248_s3 = sld [smem:[#allocation9 + $0x62]] }
 0x168   : > { %v3828_v32 = vmul.f32 %v6224_v62, %v3407_v37  ;;  %v731_v62 = vsel %vm3663_vm10, %v728_v20, 0.0 }
 0x169   : > { %1743 = vrot.lane.b32.xlu1 %v3726_v58, %s6110_s2  ;;  %1741 = vrot.lane.b32.xlu0 %v3722_v2, %s6110_s2  ;;  %s6237_s2 = sld [smem:[#allocation48_spill]]  ;;  %6250 = vst [vmem:[#allocation101_spill] sm:$0xff] %v3888_v59 }
 0x16a   : > { %6226 = vst [vmem:[#allocation94_spill] sm:$0xff] %v3828_v32 }
 0x16b   : > { %v6229_v11 = vstv %s6216_s22  ;;  %s6241_s22 = sld [smem:[#allocation49_spill]] }
 0x16c   : > { %v3838_v17 = vmul.f32 %v6229_v11, %v3407_v37  ;;  %v6233_v11 = vstv %s6222_s10  ;;  %v6240_v37 = vstv %s6159_s26  ;;  %s3873_s10 = sld [smem:[#allocation9 + $0x75]]  ;;  %s3890_s26 = sld [smem:[#allocation9 + $0xb]] }
 0x16d   : > { %v3857_v20 = vmul.f32 %v6233_v11, %v3272_v16  ;;  %v3871_v47 = vmul.f32 %v6240_v37, %v3290_v21  ;;  %v6244_v11 = vstv %s6161_s15  ;;  %v6252_v37 = vstv %s6168_s17  ;;  %s3907_s15 = sld [smem:[#allocation9 + $0x53]]  ;;  %s6264_s17 = sld [smem:[#allocation52_spill]] }
 0x16e   : > { %6230 = vst [vmem:[#allocation95_spill] sm:$0xff] %v3838_v17  ;;  %v3862_v17 = vmul.f32 %v6235_v7, %v3272_v16  ;;  %v3878_v32 = vmul.f32 %v6244_v11, %v3290_v21  ;;  %v6246_v16 = vstv %s6162_s14  ;;  %v3895_v43 = vmul.f32 %v6252_v37, %v3338_v23  ;;  %s3905_s14 = sld [smem:[#allocation9 + $0x2f]]  ;;  %6286 = sst [smem:[#allocation52_spill]] %s3995_s7 }
 0x16f   : > { %6234 = vst [vmem:[#allocation96_spill] sm:$0xff] %v3857_v20  ;;  %6242 = vst [vmem:[#allocation98_spill] sm:$0xff] %v3871_v47  ;;  %v3883_v7 = vmul.f32 %v6246_v16, %v3290_v21  ;;  %v6255_v11 = vmov %v6254_v8  ;;  %v6258_v21 = vstv %s6170_s19  ;;  %v6260_v16 = vstv %s3334_s28  ;;  %s6269_s28 = sld [smem:[#allocation53_spill]]  ;;  %s3937_s19 = sld [smem:[#allocation9 + $0xd]] }
 0x170   : > { %6236 = vst [vmem:[#allocation97_spill] sm:$0xff] %v3862_v17  ;;  %6245 = vst [vmem:[#allocation99_spill] sm:$0xff] %v3878_v32  ;;  %v3903_v61 = vmul.f32 %v6255_v11, %v731_v62  ;;  %v3912_v0 = vmul.f32 %v6258_v21, %v3338_v23  ;;  %v3917_v49 = vmul.f32 %v6260_v16, %v3338_v23  ;;  %v6263_v37 = vstv %s6237_s2  ;;  %s3951_s2 = sld [smem:[#allocation9 + $0x31]]  ;;  %6289 = sst [smem:[#allocation53_spill]] %s4004_s23 }
 0x171   : > { %6247 = vst [vmem:[#allocation100_spill] sm:$0xff] %v3883_v7  ;;  %6253 = vst [vmem:[#allocation102_spill] sm:$0xff] %v3895_v43  ;;  %v3921_v8 = vmul.f32 %v6263_v37, %v730_v51  ;;  %v6265_v44 = vmov %v6263_v37  ;;  %v6266_v15 = vstv %s6241_s22  ;;  %v6270_v16 = vstv %s6249_s27  ;;  %s3953_s22 = sld [smem:[#allocation9 + $0x55]]  ;;  %s4023_s7 = sld [smem:[#allocation9 + $0x7b]] }
 0x172   : > { %6243 = sst [smem:[#allocation44_spill]] %s3873_s10  ;;  %6259 = vst [vmem:[#allocation103_spill] sm:$0xff] %v3912_v0  ;;  %6262 = vst [vmem:[#allocation104_spill] sm:$0xff] %v3917_v49  ;;  %v3925_v11 = vmul.f32 %v6265_v44, %v731_v62  ;;  %v3929_v42 = vmul.f32 %v6266_v15, %v730_v51  ;;  %v6267_v12 = vmov %v6266_v15  ;;  %v3941_v37 = vmul.f32 %v6270_v16, %v730_v51  ;;  %v1058_v0 = vpop.permute.xlu1 %1057  ;;  %s3967_s27 = sld [smem:[#allocation9 + $0x15]] }
 0x173   : > { %6251 = sst [smem:[#allocation45_spill]] %s3890_s26  ;;  %v3933_v21 = vmul.f32 %v6267_v12, %v731_v62  ;;  %v6272_v49 = vmov %v6270_v16  ;;  %v736_v15 = vsel %vm719_vm11, %v733_v31, %v735_v34  ;;  %v737_v12 = vsel %vm719_vm11, %v735_v34, %v733_v31  ;;  %s4025_s23 = sld [smem:[#allocation9 + $0x11]] }
 0x174   : > { %6256 = sst [smem:[#allocation24_spill]] %s3905_s14  ;;  %v3945_v44 = vmul.f32 %v6272_v49, %v731_v62  ;;  %v6273_v51 = vstv %s6261_s18  ;;  %v6275_v49 = vstv %s6264_s17  ;;  %s3983_s14 = sld [smem:[#allocation9 + $0x39]]  ;;  %v738_v1 = vsel %vm3784_vm12, %v736_v15, 0.0 }
 0x175   : > { %6257 = sst [smem:[#allocation25_spill]] %s3907_s15  ;;  %s6271_s15 = sld [smem:[#allocation54_spill]]  ;;  %v3958_v16 = vmul.f32 %v6273_v51, %v3722_v2  ;;  %v3963_v62 = vmul.f32 %v6275_v49, %v3722_v2  ;;  %v6278_v31 = vstv %s6269_s28  ;;  %v1059_v15 = vsel %vm710_vm8, %v1056_v41, %v1058_v0 }
 0x176   : > { %v3974_v34 = vmul.f32 %v6278_v31, %v3722_v2  ;;  %v739_v31 = vsel %vm3790_vm13, %v737_v12, 0.0  ;;  %v6291_v12 = vstv %s6175_s1  ;;  %v6294_v43 = vstv %s6182_s16  ;;  %s6306_s1 = sld [smem:[#allocation58_spill]]  ;;  %s4059_s16 = sld [smem:[#allocation9 + $0x59]] }
 0x177   : > { %6274 = vst [vmem:[#allocation105_spill] sm:$0xff] %v3958_v16  ;;  %6276 = vst [vmem:[#allocation106_spill] sm:$0xff] %v3963_v62  ;;  %v4011_v49 = vmul.f32 %v6291_v12, %v3360_v27  ;;  %v6303_v12 = vstv %s6191_s12  ;;  %s4097_s12 = sld [smem:[#allocation9 + $0x36]]  ;;  %s4127_s10 = sld [smem:[#allocation9 + $0x5f]] }
 0x178   : > { %6277 = sst [smem:[#allocation48_spill]] %s3967_s27  ;;  %6279 = vst [vmem:[#allocation107_spill] sm:$0xff] %v3974_v34  ;;  %v4035_v34 = vmul.f32 %v6303_v12, %v3460_v6  ;;  %s4236_s27 = sld [smem:[#allocation9 + $0x1a]] }
 0x179   : > { %6293 = vst [vmem:[#allocation110_spill] sm:$0xff] %v4011_v49  ;;  %s4265_s26 = sld [smem:[#allocation9 + $0x3f]] }
 0x17a   : > { %6282 = sst [smem:[#allocation49_spill]] %s3983_s14  ;;  %s4006_s14 = sld [smem:[#allocation9 + $0x57]]  ;;  %6304 = vst [vmem:[#allocation114_spill] sm:$0xff] %v4035_v34 }
 0x17b   : > { %v6280_v40 = vstv %s6271_s15  ;;  %s6292_s15 = sld [smem:[#allocation56_spill]] }
 0x17c   : > { %v3979_v51 = vmul.f32 %v6280_v40, %v3722_v2  ;;  %v1060_v2 = vsel %vm710_vm8, %v1058_v0, %v1056_v41  ;;  %v6287_v40 = vstv %s3340_s30  ;;  %s6297_s30 = sld [smem:[#allocation57_spill]]  ;;  %6299 = sst [smem:[#allocation56_spill]] %s4023_s7  ;;  %v6301_v41 = vstv %s6188_s6 }
 0x17d   : > { %v4000_v62 = vmul.f32 %v6287_v40, %v3338_v23  ;;  %v6296_v23 = vstv %s3352_s29  ;;  %6300 = sst [smem:[#allocation57_spill]] %s4025_s23  ;;  %v4030_v0 = vmul.f32 %v6301_v41, %v3360_v27  ;;  %v1061_v12 = vsel %vm3657_vm9, %v1060_v2, 0.0  ;;  %s6312_s29 = sld [smem:[#allocation59_spill]] }
 0x17e   : > { %6281 = vst [vmem:[#allocation108_spill] sm:$0xff] %v3979_v51  ;;  %v4016_v51 = vmul.f32 %v6294_v43, %v3360_v27  ;;  %v4021_v40 = vmul.f32 %v6296_v23, %v3360_v27  ;;  %v6305_v43 = vstv %s6193_s5  ;;  %v6308_v23 = vstv %s6195_s0  ;;  %s4057_s5 = sld [smem:[#allocation9 + $0x35]]  ;;  %6314 = sst [smem:[#allocation59_spill]] %s4059_s16 }
 0x17f   : > { %6288 = vst [vmem:[#allocation109_spill] sm:$0xff] %v4000_v62  ;;  %6302 = vst [vmem:[#allocation113_spill] sm:$0xff] %v4030_v0  ;;  %v4040_v16 = vmul.f32 %v6305_v43, %v3460_v6  ;;  %v6315_v43 = vstv %s6196_s20  ;;  %v1062_v0 = vsel %vm3663_vm10, %v1059_v15, 0.0  ;;  %s6320_s0 = sld [smem:[#allocation60_spill]]  ;;  %s4082_s20 = sld [smem:[#allocation9 + $0x12]] }
 0x180   : > { %6290 = sst [smem:[#allocation55_spill]] %s4006_s14  ;;  %6295 = vst [vmem:[#allocation111_spill] sm:$0xff] %v4016_v51  ;;  %6298 = vst [vmem:[#allocation112_spill] sm:$0xff] %v4021_v40  ;;  %v4045_v40 = vmul.f32 %v6308_v23, %v3460_v6  ;;  %v6310_v51 = vstv %s6284_s25  ;;  %v4064_v23 = vmul.f32 %v6315_v43, %v3460_v6  ;;  %s4080_s25 = sld [smem:[#allocation9 + $0x7d]]  ;;  %v6324_v43 = vstv %s6306_s1 }
 0x181   : > { %6307 = vst [vmem:[#allocation115_spill] sm:$0xff] %v4040_v16  ;;  %v4049_v49 = vmul.f32 %v6310_v51, %v738_v1  ;;  %v6311_v27 = vmov %v6310_v51  ;;  %s6327_s6 = sld [smem:[#allocation61_spill]]  ;;  %s4108_s1 = sld [smem:[#allocation9 + $0x7e]] }
 0x182   : > { %6309 = vst [vmem:[#allocation116_spill] sm:$0xff] %v4045_v40  ;;  %v4053_v41 = vmul.f32 %v6311_v27, %v739_v31  ;;  %6316 = vst [vmem:[#allocation117_spill] sm:$0xff] %v4064_v23  ;;  %v6317_v40 = vstv %s6292_s15  ;;  %v6319_v34 = vstv %s6297_s30  ;;  %v6325_v23 = vmov %v6324_v43  ;;  %6328 = sst [smem:[#allocation61_spill]] %s4097_s12  ;;  %s6331_s30 = sld [smem:[#allocation62_spill]] }
 0x183   : > { %v4068_v51 = vmul.f32 %v6317_v40, %v738_v1  ;;  %v6318_v27 = vmov %v6317_v40  ;;  %v4076_v2 = vmul.f32 %v6319_v34, %v738_v1  ;;  %v6323_v6 = vmov %v6319_v34  ;;  %s4099_s15 = sld [smem:[#allocation9 + $0x5a]]  ;;  %6340 = sst [smem:[#allocation125_spill]] %s4127_s10 }
 0x184   : > { %6313 = sst [smem:[#allocation58_spill]] %s4057_s5  ;;  %v4072_v16 = vmul.f32 %v6318_v27, %v739_v31  ;;  %v4086_v40 = vmul.f32 %v6323_v6, %v739_v31  ;;  %v4090_v27 = vmul.f32 %v6324_v43, %v738_v1  ;;  %v4094_v34 = vmul.f32 %v6325_v23, %v739_v31  ;;  %s4285_s23 = sld [smem:[#allocation9 + $0x8b]] }
 0x185   : > { %6322 = sst [smem:[#allocation118_spill]] %s4082_s20  ;;  %v6329_v15 = vstv %s6312_s29  ;;  %s4110_s20 = sld [smem:[#allocation9 + $0x17]]  ;;  %v6336_v43 = vstv %s6320_s0  ;;  %v1184_v6 = vstv %s3937_s19 }
 0x186   : > { %6321 = sst [smem:[#allocation60_spill]] %s4080_s25  ;;  %6326 = vst [vmem:[#allocation119_spill] sm:$0xff] %v4094_v34  ;;  %v4103_v59 = vmul.f32 %v6329_v15, %v1061_v12  ;;  %v6334_v31 = vmov %v6329_v15  ;;  %v4118_v62 = vmul.f32 %v6336_v43, %v1061_v12  ;;  %v6338_v7 = vmov %v6336_v43  ;;  %s6345_s29 = sld [smem:[#allocation46_spill]] }
 0x187   : > { %6332 = sst [smem:[#allocation62_spill]] %s4108_s1  ;;  %v4114_v23 = vmul.f32 %v6334_v31, %v1062_v0  ;;  %v4122_v15 = vmul.f32 %v6338_v7, %v1062_v0  ;;  %v6341_v1 = vstv %s6327_s6  ;;  %v1200_v43 = vstv %s3951_s2  ;;  %s4152_s19 = sld [smem:[#allocation9 + $0x3a]] }
 0x188   : > { %6330 = vst [vmem:[#allocation120_spill] sm:$0xff] %v4103_v59  ;;  %6337 = vst [vmem:[#allocation123_spill] sm:$0xff] %v4118_v62  ;;  %v4131_v39 = vmul.f32 %v6341_v1, %v1061_v12  ;;  %v6343_v59 = vmov %v6341_v1  ;;  %v1216_v62 = vstv %s3953_s22  ;;  %s4139_s0 = sld [smem:[#allocation9 + $0x83]]  ;;  %v6347_v7 = vstv %s6331_s30  ;;  %s4164_s2 = sld [smem:[#allocation9 + $0x14]] }
 0x189   : > { %6335 = vst [vmem:[#allocation122_spill] sm:$0xff] %v4114_v23  ;;  %6339 = vst [vmem:[#allocation124_spill] sm:$0xff] %v4122_v15  ;;  %v4135_v31 = vmul.f32 %v6343_v59, %v1062_v0  ;;  %v4145_v15 = vmul.f32 %v6347_v7, %v1061_v12  ;;  %v6349_v23 = vmov %v6347_v7  ;;  %v1232_v1 = vstv %s3969_s21  ;;  %s4166_s22 = sld [smem:[#allocation9 + $0x82]]  ;;  %s4234_s21 = sld [smem:[#allocation9 + $0x84]] }
 0x18a   : > { %6342 = vst [vmem:[#allocation126_spill] sm:$0xff] %v4131_v39  ;;  %v4149_v5 = vmul.f32 %v6349_v23, %v1062_v0  ;;  %v6352_v59 = vstv %s6207_s11  ;;  %v4162_v39 = vmul.f32 %v1184_v6, %v3164_v52  ;;  %v6356_v0 = vstv %s6208_s13  ;;  %s6366_s11 = sld [smem:[#allocation54_spill]]  ;;  %s4189_s13 = sld [smem:[#allocation9 + $0x38]] }
 0x18b   : > { %6333 = sst [smem:[#allocation121_spill]] %s4110_s20  ;;  %6344 = vst [vmem:[#allocation127_spill] sm:$0xff] %v4135_v31  ;;  %6348 = vst [vmem:[#allocation128_spill] sm:$0xff] %v4145_v15  ;;  %v4159_v31 = vmul.f32 %v6352_v59, %v3578_v14  ;;  %v4171_v12 = vmul.f32 %v6356_v0, %v3578_v14  ;;  %v6359_v23 = vstv %s6209_s9  ;;  %v6370_v0 = vstv %s6261_s18  ;;  %s6383_s6 = sld [smem:[#allocation53_spill]] }
 0x18c   : > { %6350 = vst [vmem:[#allocation129_spill] sm:$0xff] %v4149_v5  ;;  %6354 = vst [vmem:[#allocation131_spill] sm:$0xff] %v4162_v39  ;;  %v4176_v7 = vmul.f32 %v6359_v23, %v3578_v14  ;;  %v6362_v59 = vstv %s6345_s29  ;;  %v4187_v5 = vmul.f32 %v1216_v62, %v3164_v52  ;;  %v4196_v23 = vmul.f32 %v6370_v0, %v3726_v58  ;;  %s4208_s29 = sld [smem:[#allocation9 + $0x80]]  ;;  %s4220_s18 = sld [smem:[#allocation9 + $0x3c]] }
 0x18d   : > { %6353 = vst [vmem:[#allocation130_spill] sm:$0xff] %v4159_v31  ;;  %6358 = vst [vmem:[#allocation133_spill] sm:$0xff] %v4171_v12  ;;  %v4181_v6 = vmul.f32 %v6362_v59, %v3578_v14  ;;  %v4184_v31 = vmul.f32 %v1200_v43, %v3164_v52  ;;  %v6373_v14 = vstv %s6264_s17  ;;  %v4206_v62 = vmul.f32 %v1232_v1, %v3164_v52  ;;  %s4222_s17 = sld [smem:[#allocation9 + $0x60]]  ;;  %s4257_s9 = sld [smem:[#allocation9 + $0x86]] }
 0x18e   : > { %6346 = sst [smem:[#allocation46_spill]] %s4139_s0  ;;  %6361 = vst [vmem:[#allocation134_spill] sm:$0xff] %v4176_v7  ;;  %6365 = vst [vmem:[#allocation137_spill] sm:$0xff] %v4187_v5  ;;  %s4191_s0 = sld [smem:[#allocation9 + $0x5c]]  ;;  %v4201_v59 = vmul.f32 %v6373_v14, %v3726_v58  ;;  %v6377_v7 = vstv %s6269_s28  ;;  %v1515_v43 = vstv %s4141_s4  ;;  %v1531_v52 = vstv %s4152_s19 }
 0x18f   : > { %6355 = sst [smem:[#allocation132_spill]] %s4164_s2  ;;  %6363 = vst [vmem:[#allocation135_spill] sm:$0xff] %v4181_v6  ;;  %6364 = vst [vmem:[#allocation136_spill] sm:$0xff] %v4184_v31  ;;  %v4215_v12 = vmul.f32 %v6377_v7, %v3726_v58  ;;  %s6382_s28 = sld [smem:[#allocation52_spill]]  ;;  %v1563_v0 = vstv %s4166_s22 }
 0x190   : > { %6367 = sst [smem:[#allocation54_spill]] %s4189_s13  ;;  %6372 = vst [vmem:[#allocation139_spill] sm:$0xff] %v4196_v23  ;;  %6374 = vst [vmem:[#allocation140_spill] sm:$0xff] %v4201_v59  ;;  %s4210_s13 = sld [smem:[#allocation9 + $0x18]]  ;;  %v6380_v14 = vstv %s6366_s11  ;;  %v1547_v23 = vstv %s4154_s24  ;;  %v4303_v59 = vmul.f32 %v1563_v0, %v3174_v56 }
 0x191   : > { %6375 = vst [vmem:[#allocation141_spill] sm:$0xff] %v4206_v62  ;;  %6378 = vst [vmem:[#allocation143_spill] sm:$0xff] %v4215_v12  ;;  %v4227_v6 = vmul.f32 %v6380_v14, %v3726_v58  ;;  %s4246_s11 = sld [smem:[#allocation9 + $0x3e]]  ;;  %6384 = sst [smem:[#allocation52_spill]] %s4248_s3  ;;  %v4281_v12 = vmul.f32 %v1515_v43, %v3174_v56  ;;  %v4290_v58 = vmul.f32 %v1531_v52, %v3174_v56  ;;  %v4347_v62 = vpop.permute.xlu0 %740 }
 0x192   : > { %6376 = sst [smem:[#allocation142_spill]] %s4208_s29  ;;  %s4259_s2 = sld [smem:[#allocation9 + $0x1b]]  ;;  %v4293_v7 = vmul.f32 %v1547_v23, %v3174_v56  ;;  %6393 = vst [vmem:[#allocation149_spill] sm:$0xff] %v4303_v59  ;;  %v709_v56 = vpop.permute.xlu1 %708 }
 0x193   : > { %6379 = sst [smem:[#allocation144_spill]] %s4220_s18  ;;  %6381 = vst [vmem:[#allocation145_spill] sm:$0xff] %v4227_v6  ;;  %s4267_s3 = sld [smem:[#allocation9 + $0x63]]  ;;  %6387 = vst [vmem:[#allocation146_spill] sm:$0xff] %v4281_v12  ;;  %v1894_v6 = vstv %s4285_s23 }
 0x194   : > { %6369 = sst [smem:[#allocation138_spill]] %s4191_s0  ;;  %6390 = vst [vmem:[#allocation147_spill] sm:$0xff] %v4290_v58  ;;  %6392 = vst [vmem:[#allocation148_spill] sm:$0xff] %v4293_v7  ;;  %s4297_s16 = sld [smem:[#allocation9 + $0x1e]]  ;;  %v4383_v15 = vmul.f32 %v1894_v6, %v3190_v60 }
 0x195   : > { %s4273_s4 = sld [smem:[#allocation9 + $0x1f]]  ;;  %s4305_s12 = sld [smem:[#allocation9 + $0x42]]  ;;  %v4375_v43 = vpop.permute.xlu0 %748 }
 0x196   : > { %s4283_s24 = sld [smem:[#allocation9 + $0x67]]  ;;  %s4307_s30 = sld [smem:[#allocation9 + $0x66]]  ;;  %v718_v58 = vpop.permute.xlu1 %717  ;;  %6403 = vst [vmem:[#allocation156_spill] sm:$0xff] %v4375_v43  ;;  %6405 = vst [vmem:[#allocation158_spill] sm:$0xff] %v4383_v15 }
 0x197   : > { %s4295_s25 = sld [smem:[#allocation9 + $0x87]]  ;;  %s4313_s7 = sld [smem:[#allocation9 + $0x8a]] }
 0x198   : > { %6385 = sst [smem:[#allocation53_spill]] %s4259_s2  ;;  %s4275_s2 = sld [smem:[#allocation9 + $0x43]] }
 0x199   : > { %s4315_s14 = sld [smem:[#allocation9 + $0x1d]]  ;;  %s4322_s20 = sld [smem:[#allocation9 + $0x41]]  ;;  %v707_v10 = vpop.permute.xlu0 %706 }
 0x19a   : > { %s4324_s1 = sld [smem:[#allocation9 + $0x65]]  ;;  %s4334_s29 = sld [smem:[#allocation9 + $0x89]] }
 0x19b   : > { %s4336_s0 = sld [smem:[#allocation9 + $0x20]]  ;;  %s6398_s5 = sld [smem:[#allocation52_spill]]  ;;  %v1846_v14 = vstv %s4273_s4 }
 0x19c   : > { %s6399_s22 = sld [smem:[#allocation53_spill]]  ;;  %s4345_s19 = sld [smem:[#allocation9 + $0x44]]  ;;  %v1878_v7 = vstv %s4283_s24  ;;  %v4370_v0 = vmul.f32 %v1846_v14, %v3190_v60  ;;  %v4400_v14 = vpop.permute.xlu1 %1041 }
 0x19d   : > { %s4357_s10 = sld [smem:[#allocation9 + $0x68]]  ;;  %s4363_s18 = sld [smem:[#allocation9 + $0x8c]]  ;;  %v4380_v5 = vmul.f32 %v1878_v7, %v3190_v60  ;;  %6407 = vst [vmem:[#allocation159_spill] sm:$0xff] %v4400_v14  ;;  %v716_v22 = vpop.permute.xlu0 %715 }
 0x19e   : > { %v1862_v52 = vstv %s4275_s2  ;;  %s4365_s2 = sld [smem:[#allocation9 + $0x21]]  ;;  %6401 = vst [vmem:[#allocation154_spill] sm:$0xff] %v4370_v0  ;;  %s6406_s23 = sld [smem:[#allocation63_spill]] }
 0x19f   : > { %6394 = sst [smem:[#allocation150_spill]] %s4322_s20  ;;  %v4373_v59 = vmul.f32 %v1862_v52, %v3190_v60  ;;  %6404 = vst [vmem:[#allocation157_spill] sm:$0xff] %v4380_v5  ;;  %s6408_s4 = sld [smem:[#allocation65_spill]]  ;;  %v711_v60 = vsel %vm710_vm8, %v707_v10, %v709_v56  ;;  %v712_v52 = vsel %vm710_vm8, %v709_v56, %v707_v10 }
 0x1a0   : > { %6395 = sst [smem:[#allocation151_spill]] %s4324_s1  ;;  %v713_v7 = vsel %vm3657_vm9, %v712_v52, 0.0  ;;  %v714_v6 = vsel %vm3663_vm10, %v711_v60, 0.0  ;;  %s6413_s1 = sld [smem:[#allocation67_spill]]  ;;  %v4439_v39 = vpop.permute.xlu1 %1049 }
 0x1a1   : > { %6396 = sst [smem:[#allocation152_spill]] %s4334_s29  ;;  %6402 = vst [vmem:[#allocation155_spill] sm:$0xff] %v4373_v59  ;;  %s6409_s24 = sld [smem:[#allocation22_spill]] }
 0x1a2   : > { %6397 = sst [smem:[#allocation153_spill]] %s4336_s0  ;;  %s6412_s29 = sld [smem:[#allocation66_spill]] }
 0x1a3   : > { %6400 = sst [smem:[#allocation52_spill]] %s4345_s19  ;;  %s6410_s19 = sld [smem:[#allocation69_spill]] }
 0x1a4   : > { %s6411_s0 = sld [smem:[#allocation64_spill]]  ;;  %v6414_v31 = vstv %s6406_s23  ;;  %s6416_s20 = sld [smem:[#allocation68_spill]] }
 0x1a5   : > { %v758_v10 = vmul.f32 %v6414_v31, %v713_v7  ;;  %v6415_v56 = vmov %v6414_v31  ;;  %v6417_v1 = vstv %s6408_s4  ;;  %s6444_s23 = sld [smem:[#allocation31_spill]]  ;;  %s6445_s4 = sld [smem:[#allocation32_spill]] }
 0x1a6   : > { %v759_v47 = vmul.f32 %v6415_v56, %v714_v6  ;;  %v764_v17 = vmul.f32 %v6417_v1, %v713_v7  ;;  %v6418_v23 = vmov %v6417_v1 }
 0x1a7   : > { %v765_v12 = vmul.f32 %v6418_v23, %v714_v6  ;;  %v6419_v52 = vstv %s6409_s24  ;;  %v6427_v23 = vstv %s6413_s1  ;;  %s6434_s1 = sld [smem:[#allocation29_spill]]  ;;  %s6446_s24 = sld [smem:[#allocation33_spill]] }
 0x1a8   : > { %v770_v15 = vmul.f32 %v6419_v52, %v713_v7  ;;  %v6420_v5 = vmov %v6419_v52  ;;  %v6425_v50 = vstv %s6412_s29  ;;  %v6428_v52 = vmov %v6427_v23  ;;  %s6432_s29 = sld [smem:[#allocation27_spill]] }
 0x1a9   : > { %v771_v59 = vmul.f32 %v6420_v5, %v714_v6  ;;  %v6421_v60 = vstv %s6410_s19  ;;  %v766_v29 = vadd.f32 %v764_v17, %v6425_v50  ;;  %v6426_v1 = vmov %v6425_v50  ;;  %s6443_s19 = sld [smem:[#allocation30_spill]] }
 0x1aa   : > { %v776_v0 = vmul.f32 %v6421_v60, %v713_v7  ;;  %v6422_v32 = vmov %v6421_v60  ;;  %v6423_v31 = vstv %s6411_s0  ;;  %v767_v3 = vadd.f32 %v765_v12, %v6426_v1  ;;  %s6431_s0 = sld [smem:[#allocation26_spill]] }
 0x1ab   : > { %v777_v14 = vmul.f32 %v6422_v32, %v714_v6  ;;  %v760_v20 = vadd.f32 %v758_v10, %v6423_v31  ;;  %v6424_v25 = vmov %v6423_v31  ;;  %v772_v28 = vadd.f32 %v770_v15, %v6427_v23 }
 0x1ac   : > { %v761_v56 = vadd.f32 %v759_v47, %v6424_v25  ;;  %v773_v43 = vadd.f32 %v771_v59, %v6428_v52  ;;  %v6429_v5 = vstv %s6416_s20  ;;  %v790_v10 = vadd.f32 %v3569_v35, %v766_v29  ;;  %s6433_s20 = sld [smem:[#allocation28_spill]] }
 0x1ad   : > { %v778_v34 = vadd.f32 %v776_v0, %v6429_v5  ;;  %v6430_v7 = vmov %v6429_v5  ;;  %v784_v32 = vadd.f32 %v3564_v4, %v760_v20  ;;  %v791_v25 = vadd.f32 %v3555_v19, %v767_v3  ;;  %v1066_v4 = vpop.permute.xlu1 %1065 }
 0x1ae   : > { %v779_v60 = vadd.f32 %v777_v14, %v6430_v7  ;;  %v785_v6 = vadd.f32 %v3550_v18, %v761_v56  ;;  %v796_v50 = vadd.f32 %v3574_v33, %v772_v28  ;;  %v797_v17 = vadd.f32 %v3587_v36, %v773_v43  ;;  %v1064_v18 = vpop.permute.xlu0 %1063 }
 0x1af   : > { %v802_v47 = vadd.f32 %v3592_v38, %v778_v34  ;;  %v720_v35 = vsel %vm719_vm11, %v716_v22, %v718_v58  ;;  %v721_v33 = vsel %vm719_vm11, %v718_v58, %v716_v22  ;;  %v1067_v19 = vsel %vm719_vm11, %v1064_v18, %v1066_v4 }
 0x1b0   : > { %v803_v15 = vadd.f32 %v3597_v26, %v779_v60  ;;  %v1068_v28 = vsel %vm719_vm11, %v1066_v4, %v1064_v18  ;;  %v722_v29 = vsel %vm3784_vm12, %v720_v35, 0.0  ;;  %v723_v36 = vsel %vm3790_vm13, %v721_v33, 0.0 }
 0x1b1   : > { %v1069_v38 = vsel %vm3784_vm12, %v1067_v19, 0.0  ;;  %v1070_v26 = vsel %vm3790_vm13, %v1068_v28, 0.0  ;;  %v6435_v3 = vstv %s6431_s0  ;;  %v6437_v12 = vstv %s6432_s29  ;;  %s6459_s0 = sld [smem:[#allocation34_spill]]  ;;  %s6461_s29 = sld [smem:[#allocation35_spill]] }
 0x1b2   : > { %v806_v22 = vmul.f32 %v6435_v3, %v722_v29  ;;  %v6436_v20 = vmov %v6435_v3  ;;  %v812_v59 = vmul.f32 %v6437_v12, %v722_v29  ;;  %v6438_v58 = vmov %v6437_v12  ;;  %v4497_v3 = vpop.permute.xlu0 %1071 }
 0x1b3   : > { %v807_v34 = vmul.f32 %v6436_v20, %v723_v36  ;;  %v813_v43 = vmul.f32 %v6438_v58, %v723_v36  ;;  %v6439_v0 = vstv %s6433_s20  ;;  %v6441_v1 = vstv %s6434_s1  ;;  %s6464_s20 = sld [smem:[#allocation36_spill]]  ;;  %s6466_s1 = sld [smem:[#allocation37_spill]] }
 0x1b4   : > { %v818_v14 = vmul.f32 %v6439_v0, %v722_v29  ;;  %v6440_v31 = vmov %v6439_v0  ;;  %v824_v23 = vmul.f32 %v6441_v1, %v722_v29  ;;  %v6442_v52 = vmov %v6441_v1 }
 0x1b5   : > { %v819_v56 = vmul.f32 %v6440_v31, %v723_v36  ;;  %v825_v5 = vmul.f32 %v6442_v52, %v723_v36  ;;  %v808_v7 = vadd.f32 %v806_v22, %v784_v32  ;;  %v809_v60 = vadd.f32 %v807_v34, %v785_v6 }
 0x1b6   : > { %v814_v4 = vadd.f32 %v812_v59, %v790_v10  ;;  %v815_v18 = vadd.f32 %v813_v43, %v791_v25  ;;  %v820_v35 = vadd.f32 %v818_v14, %v796_v50  ;;  %v826_v19 = vadd.f32 %v824_v23, %v802_v47 }
 0x1b7   : > { %v821_v33 = vadd.f32 %v819_v56, %v797_v17  ;;  %v827_v28 = vadd.f32 %v825_v5, %v803_v15  ;;  %v832_v29 = vadd.f32 %v3899_v53, %v808_v7  ;;  %v833_v32 = vadd.f32 %v3903_v61, %v809_v60  ;;  %v743_v15 = vpop.permute.xlu1 %742  ;;  %v4561_v60 = vpop.permute.xlu0 %1079 }
 0x1b8   : > { %v838_v6 = vadd.f32 %v3921_v8, %v814_v4  ;;  %v839_v10 = vadd.f32 %v3925_v11, %v815_v18  ;;  %v844_v25 = vadd.f32 %v3929_v42, %v820_v35  ;;  %v850_v17 = vadd.f32 %v3941_v37, %v826_v19 }
 0x1b9   : > { %v845_v50 = vadd.f32 %v3933_v21, %v821_v33  ;;  %v851_v47 = vadd.f32 %v3945_v44, %v827_v28  ;;  %v6447_v36 = vstv %s6443_s19  ;;  %v6449_v61 = vstv %s6444_s23  ;;  %s6476_s19 = sld [smem:[#allocation38_spill]]  ;;  %s6478_s23 = sld [smem:[#allocation23_spill]] }
 0x1ba   : > { %v4509_v22 = vmul.f32 %v6447_v36, %v1069_v38  ;;  %v6448_v53 = vmov %v6447_v36  ;;  %v4517_v34 = vmul.f32 %v6449_v61, %v1069_v38  ;;  %v6450_v8 = vmov %v6449_v61 }
 0x1bb   : > { %v4513_v20 = vmul.f32 %v6448_v53, %v1070_v26  ;;  %v4521_v11 = vmul.f32 %v6450_v8, %v1070_v26  ;;  %v6451_v42 = vstv %s6445_s4  ;;  %v6453_v44 = vstv %s6446_s24  ;;  %s6480_s4 = sld [smem:[#allocation39_spill]]  ;;  %s6482_s24 = sld [smem:[#allocation40_spill]] }
 0x1bc   : > { %v4525_v12 = vmul.f32 %v6451_v42, %v1069_v38  ;;  %v6452_v21 = vmov %v6451_v42  ;;  %v4533_v59 = vmul.f32 %v6453_v44, %v1069_v38  ;;  %v6454_v58 = vmov %v6453_v44 }
 0x1bd   : > { %v4529_v37 = vmul.f32 %v6452_v21, %v1070_v26  ;;  %v4537_v43 = vmul.f32 %v6454_v58, %v1070_v26  ;;  %v744_v0 = vsel %vm710_vm8, %v4347_v62, %v743_v15  ;;  %v745_v14 = vsel %vm710_vm8, %v743_v15, %v4347_v62 }
 0x1be   : > { %v6455_v31 = vrot.slane %v3685_v24, %v3152_v46  ;;  %v6456_v1 = vrot.slane %v3685_v24, %v3156_v48  ;;  %v746_v26 = vsel %vm3657_vm9, %v745_v14, 0.0  ;;  %v747_v23 = vsel %vm3663_vm10, %v744_v0, 0.0 }
 0x1bf   : > { %v6457_v52 = vrot.slane %v3718_v54, %v3152_v46  ;;  %v6458_v62 = vrot.slane %v3718_v54, %v3156_v48  ;;  %v6460_v24 = vrot.slane %v3729_v57, %v3152_v46  ;;  %v6462_v18 = vrot.slane %v3729_v57, %v3156_v48 }
 0x1c0   : > { %v866_v56 = vadd.f32 %v6455_v31, %v832_v29  ;;  %v867_v38 = vadd.f32 %v6456_v1, %v833_v32  ;;  %v6463_v33 = vrot.slane %v3780_v30, %v3152_v46  ;;  %v6465_v19 = vrot.slane %v3780_v30, %v3156_v48  ;;  %v6467_v30 = vld [vmem:[#allocation119_spill] sm:$0xff]  ;;  %v1040_v1 = vpop.permute.xlu0 %1039 }
 0x1c1   : > { %v882_v5 = vadd.f32 %v6457_v52, %v838_v6  ;;  %v883_v7 = vadd.f32 %v6458_v62, %v839_v10  ;;  %v898_v4 = vadd.f32 %v6460_v24, %v844_v25  ;;  %v899_v35 = vadd.f32 %v6462_v18, %v845_v50  ;;  %v751_v10 = vpop.permute.xlu1 %750  ;;  %v6481_v18 = vld [vmem:[#allocation86_spill] sm:$0xff] }
 0x1c2   : > { %v914_v54 = vadd.f32 %v6463_v33, %v850_v17  ;;  %v915_v28 = vadd.f32 %v6465_v19, %v851_v47  ;;  %v920_v29 = vadd.f32 %v4049_v49, %v866_v56  ;;  %v921_v32 = vadd.f32 %v4053_v41, %v867_v38 }
 0x1c3   : > { %v926_v57 = vadd.f32 %v4068_v51, %v882_v5  ;;  %v927_v6 = vadd.f32 %v4072_v16, %v883_v7  ;;  %v932_v25 = vadd.f32 %v4076_v2, %v898_v4  ;;  %v933_v50 = vadd.f32 %v4086_v40, %v899_v35  ;;  %v6477_v7 = vld [vmem:[#allocation156_spill] sm:$0xff] }
 0x1c4   : > { %v938_v17 = vadd.f32 %v4090_v27, %v914_v54  ;;  %v939_v15 = vadd.f32 %v6467_v30, %v915_v28  ;;  %v6468_v47 = vstv %s6459_s0  ;;  %v6470_v61 = vstv %s6461_s29  ;;  %v6483_v28 = vld [vmem:[#allocation71_spill] sm:$0xff]  ;;  %s6497_s0 = sld [smem:[#allocation41_spill]]  ;;  %s6498_s29 = sld [smem:[#allocation42_spill]] }
 0x1c5   : > { %v942_v36 = vmul.f32 %v6468_v47, %v746_v26  ;;  %v6469_v53 = vmov %v6468_v47  ;;  %v948_v8 = vmul.f32 %v6470_v61, %v746_v26  ;;  %v6471_v41 = vmov %v6470_v61  ;;  %v4607_v33 = vpop.permute.xlu1 %1372 }
 0x1c6   : > { %v943_v49 = vmul.f32 %v6469_v53, %v747_v23  ;;  %v949_v42 = vmul.f32 %v6471_v41, %v747_v23  ;;  %v6472_v51 = vstv %s6464_s20  ;;  %v6474_v58 = vstv %s6466_s1  ;;  %s6499_s20 = sld [smem:[#allocation43_spill]]  ;;  %s6500_s1 = sld [smem:[#allocation44_spill]] }
 0x1c7   : > { %v954_v21 = vmul.f32 %v6472_v51, %v746_v26  ;;  %v6473_v16 = vmov %v6472_v51  ;;  %v960_v2 = vmul.f32 %v6474_v58, %v746_v26  ;;  %v6475_v0 = vmov %v6474_v58 }
 0x1c8   : > { %v955_v44 = vmul.f32 %v6473_v16, %v747_v23  ;;  %v961_v40 = vmul.f32 %v6475_v0, %v747_v23  ;;  %v944_v14 = vadd.f32 %v942_v36, %v920_v29  ;;  %v945_v27 = vadd.f32 %v943_v49, %v921_v32  ;;  %v6479_v23 = vld [vmem:[#allocation70_spill] sm:$0xff]  ;;  %v6484_v32 = vld [vmem:[#allocation87_spill] sm:$0xff] }
 0x1c9   : > { %v950_v31 = vadd.f32 %v948_v8, %v926_v57  ;;  %v951_v56 = vadd.f32 %v949_v42, %v927_v6  ;;  %v956_v38 = vadd.f32 %v954_v21, %v932_v25  ;;  %v962_v5 = vadd.f32 %v960_v2, %v938_v17  ;;  %v6485_v6 = vld [vmem:[#allocation72_spill] sm:$0xff]  ;;  %v6487_v17 = vld [vmem:[#allocation73_spill] sm:$0xff] }
 0x1ca   : > { %v957_v52 = vadd.f32 %v955_v44, %v933_v50  ;;  %v963_v62 = vadd.f32 %v961_v40, %v939_v15  ;;  %v752_v24 = vsel %vm719_vm11, %v6477_v7, %v751_v10  ;;  %v753_v26 = vsel %vm719_vm11, %v751_v10, %v6477_v7  ;;  %v6486_v25 = vld [vmem:[#allocation96_spill] sm:$0xff]  ;;  %v6488_v15 = vld [vmem:[#allocation97_spill] sm:$0xff] }
 0x1cb   : > { %v968_v4 = vadd.f32 %v6479_v23, %v944_v14  ;;  %v969_v35 = vadd.f32 %v6481_v18, %v945_v27  ;;  %v754_v54 = vsel %vm3784_vm12, %v752_v24, 0.0  ;;  %v755_v19 = vsel %vm3790_vm13, %v753_v26, 0.0  ;;  %v1048_v27 = vpop.permute.xlu0 %1047  ;;  %v4635_v26 = vpop.permute.xlu1 %1380  ;;  %v6501_v23 = vld [vmem:[#allocation159_spill] sm:$0xff] }
 0x1cc   : > { %v974_v29 = vadd.f32 %v6483_v28, %v950_v31  ;;  %v975_v57 = vadd.f32 %v6484_v32, %v951_v56  ;;  %v980_v10 = vadd.f32 %v6485_v6, %v956_v38  ;;  %v981_v50 = vadd.f32 %v6486_v25, %v957_v52 }
 0x1cd   : > { %v986_v30 = vadd.f32 %v6487_v17, %v962_v5  ;;  %v987_v47 = vadd.f32 %v6488_v15, %v963_v62  ;;  %v6489_v36 = vstv %s6476_s19  ;;  %v6491_v8 = vstv %s6478_s23  ;;  %s6510_s19 = sld [smem:[#allocation45_spill]]  ;;  %s6511_s23 = sld [smem:[#allocation24_spill]] }
 0x1ce   : > { %v990_v53 = vmul.f32 %v6489_v36, %v754_v54  ;;  %v6490_v49 = vmov %v6489_v36  ;;  %v996_v41 = vmul.f32 %v6491_v8, %v754_v54  ;;  %v6492_v42 = vmov %v6491_v8 }
 0x1cf   : > { %v991_v61 = vmul.f32 %v6490_v49, %v755_v19  ;;  %v997_v51 = vmul.f32 %v6492_v42, %v755_v19  ;;  %v6493_v21 = vstv %s6480_s4  ;;  %v6495_v2 = vstv %s6482_s24  ;;  %s6512_s4 = sld [smem:[#allocation25_spill]]  ;;  %s6513_s24 = sld [smem:[#allocation47_spill]] }
 0x1d0   : > { %v1002_v16 = vmul.f32 %v6493_v21, %v754_v54  ;;  %v6494_v44 = vmov %v6493_v21  ;;  %v1008_v0 = vmul.f32 %v6495_v2, %v754_v54  ;;  %v6496_v40 = vmov %v6495_v2 }
 0x1d1   : > { %v1003_v58 = vmul.f32 %v6494_v44, %v755_v19  ;;  %v1009_v14 = vmul.f32 %v6496_v40, %v755_v19  ;;  %v992_v31 = vadd.f32 %v990_v53, %v968_v4  ;;  %v993_v56 = vadd.f32 %v991_v61, %v969_v35  ;;  %v6514_v40 = vld [vmem:[#allocation98_spill] sm:$0xff] }
 0x1d2   : > { %v998_v38 = vadd.f32 %v996_v41, %v974_v29  ;;  %v999_v52 = vadd.f32 %v997_v51, %v975_v57  ;;  %v1004_v5 = vadd.f32 %v1002_v16, %v980_v10  ;;  %v1010_v7 = vadd.f32 %v1008_v0, %v986_v30  ;;  %v1389_v0 = vpop.permute.xlu1 %1388 }
 0x1d3   : > { %v1005_v62 = vadd.f32 %v1003_v58, %v981_v50  ;;  %v1011_v24 = vadd.f32 %v1009_v14, %v987_v47  ;;  %v1043_v4 = vsel %vm710_vm8, %v1040_v1, %v6501_v23  ;;  %v1044_v18 = vsel %vm710_vm8, %v6501_v23, %v1040_v1 }
 0x1d4   : > { %v1051_v35 = vsel %vm719_vm11, %v1048_v27, %v4439_v39  ;;  %v1052_v54 = vsel %vm719_vm11, %v4439_v39, %v1048_v27  ;;  %v1045_v19 = vsel %vm3657_vm9, %v1044_v18, 0.0  ;;  %v1046_v28 = vsel %vm3663_vm10, %v1043_v4, 0.0  ;;  %v6515_v27 = vld [vmem:[#allocation74_spill] sm:$0xff] }
 0x1d5   : > { %v1053_v29 = vsel %vm3784_vm12, %v1051_v35, 0.0  ;;  %v1054_v1 = vsel %vm3790_vm13, %v1052_v54, 0.0  ;;  %v6502_v32 = vstv %s6497_s0  ;;  %v6504_v25 = vstv %s6498_s29  ;;  %s6532_s0 = sld [smem:[#allocation48_spill]]  ;;  %s6535_s29 = sld [smem:[#allocation49_spill]] }
 0x1d6   : > { %v1089_v57 = vmul.f32 %v6502_v32, %v1045_v19  ;;  %v6503_v6 = vmov %v6502_v32  ;;  %v1095_v50 = vmul.f32 %v6504_v25, %v1045_v19  ;;  %v6505_v17 = vmov %v6504_v25 }
 0x1d7   : > { %v1090_v10 = vmul.f32 %v6503_v6, %v1046_v28  ;;  %v1096_v39 = vmul.f32 %v6505_v17, %v1046_v28  ;;  %v6506_v30 = vstv %s6499_s20  ;;  %v6508_v53 = vstv %s6500_s1  ;;  %s6538_s20 = sld [smem:[#allocation50_spill]]  ;;  %s6541_s1 = sld [smem:[#allocation51_spill]] }
 0x1d8   : > { %v1101_v15 = vmul.f32 %v6506_v30, %v1045_v19  ;;  %v6507_v47 = vmov %v6506_v30  ;;  %v1107_v49 = vmul.f32 %v6508_v53, %v1045_v19  ;;  %v6509_v61 = vmov %v6508_v53 }
 0x1d9   : > { %v1102_v36 = vmul.f32 %v6507_v47, %v1046_v28  ;;  %v1108_v8 = vmul.f32 %v6509_v61, %v1046_v28  ;;  %v1091_v41 = vadd.f32 %v1089_v57, %v992_v31  ;;  %v1092_v42 = vadd.f32 %v1090_v10, %v993_v56  ;;  %v6516_v56 = vld [vmem:[#allocation99_spill] sm:$0xff] }
 0x1da   : > { %v1097_v51 = vadd.f32 %v1095_v50, %v998_v38  ;;  %v1098_v21 = vadd.f32 %v1096_v39, %v999_v52  ;;  %v1103_v16 = vadd.f32 %v1101_v15, %v1004_v5  ;;  %v1109_v58 = vadd.f32 %v1107_v49, %v1010_v7  ;;  %v6517_v38 = vld [vmem:[#allocation75_spill] sm:$0xff]  ;;  %v6518_v52 = vld [vmem:[#allocation100_spill] sm:$0xff]  ;;  %v6521_v7 = vld [vmem:[#allocation77_spill] sm:$0xff] }
 0x1db   : > { %v1104_v44 = vadd.f32 %v1102_v36, %v1005_v62  ;;  %v1110_v2 = vadd.f32 %v1108_v8, %v1011_v24  ;;  %v1115_v14 = vadd.f32 %v6514_v40, %v1091_v41  ;;  %v1116_v31 = vadd.f32 %v6515_v27, %v1092_v42  ;;  %v6519_v5 = vld [vmem:[#allocation76_spill] sm:$0xff]  ;;  %v6520_v62 = vld [vmem:[#allocation101_spill] sm:$0xff]  ;;  %v6530_v40 = vld [vmem:[#allocation120_spill] sm:$0xff] }
 0x1dc   : > { %v1121_v23 = vadd.f32 %v6516_v56, %v1097_v51  ;;  %v1122_v4 = vadd.f32 %v6517_v38, %v1098_v21  ;;  %v1127_v18 = vadd.f32 %v6518_v52, %v1103_v16  ;;  %v1133_v54 = vadd.f32 %v6520_v62, %v1109_v58  ;;  %v1387_v58 = vpop.permute.xlu0 %1386  ;;  %v6531_v56 = vld [vmem:[#allocation122_spill] sm:$0xff]  ;;  %v6533_v52 = vld [vmem:[#allocation123_spill] sm:$0xff]  ;;  %v6540_v62 = vld [vmem:[#allocation129_spill] sm:$0xff] }
 0x1dd   : > { %v1128_v35 = vadd.f32 %v6519_v5, %v1104_v44  ;;  %v1134_v19 = vadd.f32 %v6521_v7, %v1110_v2  ;;  %v6522_v24 = vstv %s6510_s19  ;;  %v6524_v6 = vstv %s6511_s23  ;;  %v1074_v2 = vpop.permute.xlu1 %1073  ;;  %v6534_v5 = vld [vmem:[#allocation124_spill] sm:$0xff]  ;;  %s6561_s19 = sld [smem:[#allocation55_spill]]  ;;  %s6563_s23 = sld [smem:[#allocation56_spill]] }
 0x1de   : > { %v1137_v28 = vmul.f32 %v6522_v24, %v1053_v29  ;;  %v6523_v32 = vmov %v6522_v24  ;;  %v1143_v10 = vmul.f32 %v6524_v6, %v1053_v29  ;;  %v6525_v25 = vmov %v6524_v6 }
 0x1df   : > { %v1138_v57 = vmul.f32 %v6523_v32, %v1054_v1  ;;  %v1144_v50 = vmul.f32 %v6525_v25, %v1054_v1  ;;  %v6526_v17 = vstv %s6512_s4  ;;  %v6528_v47 = vstv %s6513_s24  ;;  %s6575_s4 = sld [smem:[#allocation59_spill]]  ;;  %s6577_s24 = sld [smem:[#allocation60_spill]] }
 0x1e0   : > { %v1149_v39 = vmul.f32 %v6526_v17, %v1053_v29  ;;  %v6527_v30 = vmov %v6526_v17  ;;  %v1155_v36 = vmul.f32 %v6528_v47, %v1053_v29  ;;  %v6529_v53 = vmov %v6528_v47 }
 0x1e1   : > { %v1150_v15 = vmul.f32 %v6527_v30, %v1054_v1  ;;  %v1156_v49 = vmul.f32 %v6529_v53, %v1054_v1  ;;  %v1139_v61 = vadd.f32 %v1137_v28, %v1115_v14  ;;  %v1140_v8 = vadd.f32 %v1138_v57, %v1116_v31  ;;  %v6536_v14 = vld [vmem:[#allocation126_spill] sm:$0xff] }
 0x1e2   : > { %v1145_v41 = vadd.f32 %v1143_v10, %v1121_v23  ;;  %v1146_v42 = vadd.f32 %v1144_v50, %v1122_v4  ;;  %v1151_v51 = vadd.f32 %v1149_v39, %v1127_v18  ;;  %v1157_v16 = vadd.f32 %v1155_v36, %v1133_v54  ;;  %v6537_v23 = vld [vmem:[#allocation127_spill] sm:$0xff]  ;;  %v6539_v18 = vld [vmem:[#allocation128_spill] sm:$0xff] }
 0x1e3   : > { %v1152_v21 = vadd.f32 %v1150_v15, %v1128_v35  ;;  %v1158_v44 = vadd.f32 %v1156_v49, %v1134_v19  ;;  %v1163_v27 = vadd.f32 %v6530_v40, %v1139_v61  ;;  %v1164_v38 = vadd.f32 %v6531_v56, %v1140_v8 }
 0x1e4   : > { %v1169_v29 = vadd.f32 %v6533_v52, %v1145_v41  ;;  %v1170_v1 = vadd.f32 %v6534_v5, %v1146_v42  ;;  %v1175_v31 = vadd.f32 %v6536_v14, %v1151_v51  ;;  %v1181_v35 = vadd.f32 %v6539_v18, %v1157_v16  ;;  %v6550_v51 = vld [vmem:[#allocation131_spill] sm:$0xff]  ;;  %v6556_v14 = vld [vmem:[#allocation137_spill] sm:$0xff] }
 0x1e5   : > { %v1176_v4 = vadd.f32 %v6537_v23, %v1152_v21  ;;  %v1182_v54 = vadd.f32 %v6540_v62, %v1158_v44  ;;  %v1390_v7 = vsel %vm710_vm8, %v1387_v58, %v1389_v0  ;;  %v1391_v19 = vsel %vm710_vm8, %v1389_v0, %v1387_v58 }
 0x1e6   : > { %v1075_v24 = vsel %vm710_vm8, %v4497_v3, %v1074_v2  ;;  %v1076_v28 = vsel %vm710_vm8, %v1074_v2, %v4497_v3  ;;  %v1392_v32 = vsel %vm3657_vm9, %v1391_v19, 0.0  ;;  %v1393_v57 = vsel %vm3663_vm10, %v1390_v7, 0.0  ;;  %v6553_v2 = vld [vmem:[#allocation136_spill] sm:$0xff] }
 0x1e7   : > { %v1077_v6 = vsel %vm3657_vm9, %v1076_v28, 0.0  ;;  %v1078_v0 = vsel %vm3663_vm10, %v1075_v24, 0.0  ;;  %v6542_v10 = vstv %s6532_s0  ;;  %v6544_v39 = vstv %s6535_s29  ;;  %s6592_s0 = sld [smem:[#allocation118_spill]]  ;;  %s6593_s29 = sld [smem:[#allocation61_spill]] }
 0x1e8   : > { %v4725_v25 = vmul.f32 %v6542_v10, %v1392_v32  ;;  %v6543_v50 = vmov %v6542_v10  ;;  %v4733_v3 = vmul.f32 %v6544_v39, %v1392_v32  ;;  %v6545_v30 = vmov %v6544_v39 }
 0x1e9   : > { %v4729_v17 = vmul.f32 %v6543_v50, %v1393_v57  ;;  %v4737_v15 = vmul.f32 %v6545_v30, %v1393_v57  ;;  %v6546_v47 = vstv %s6538_s20  ;;  %v6548_v61 = vstv %s6541_s1  ;;  %s6594_s20 = sld [smem:[#allocation62_spill]]  ;;  %s6598_s1 = sld [smem:[#allocation121_spill]] }
 0x1ea   : > { %v4741_v36 = vmul.f32 %v6546_v47, %v1392_v32  ;;  %v6547_v53 = vmov %v6546_v47  ;;  %v4749_v8 = vmul.f32 %v6548_v61, %v1392_v32  ;;  %v6549_v41 = vmov %v6548_v61  ;;  %v1082_v61 = vpop.permute.xlu1 %1081 }
 0x1eb   : > { %v4745_v49 = vmul.f32 %v6547_v53, %v1393_v57  ;;  %v4753_v42 = vmul.f32 %v6549_v41, %v1393_v57  ;;  %v6551_v21 = vrot.slane %v6550_v51, %v3152_v46  ;;  %v6552_v44 = vrot.slane %v6550_v51, %v3156_v48 }
 0x1ec   : > { %v6554_v40 = vrot.slane %v6553_v2, %v3152_v46  ;;  %v6555_v52 = vrot.slane %v6553_v2, %v3156_v48  ;;  %v6557_v23 = vrot.slane %v6556_v14, %v3152_v46  ;;  %v6558_v18 = vrot.slane %v6556_v14, %v3156_v48  ;;  %v1395_v2 = vpop.permute.xlu0 %1394 }
 0x1ed   : > { %v1197_v16 = vadd.f32 %v6551_v21, %v1163_v27  ;;  %v1198_v58 = vadd.f32 %v6552_v44, %v1164_v38  ;;  %v6559_v38 = vld [vmem:[#allocation141_spill] sm:$0xff]  ;;  %v6564_v50 = vstv %s6382_s28  ;;  %s6572_s28 = sld [smem:[#allocation57_spill]]  ;;  %v1083_v14 = vsel %vm719_vm11, %v4561_v60, %v1082_v61 }
 0x1ee   : > { %v1213_v56 = vadd.f32 %v6554_v40, %v1169_v29  ;;  %v1214_v5 = vadd.f32 %v6555_v52, %v1170_v1  ;;  %v1229_v27 = vadd.f32 %v6557_v23, %v1175_v31  ;;  %v1230_v62 = vadd.f32 %v6558_v18, %v1176_v4 }
 0x1ef   : > { %v6560_v7 = vrot.slane %v6559_v38, %v3152_v46  ;;  %v6562_v29 = vrot.slane %v6559_v38, %v3156_v48  ;;  %v1251_v1 = vadd.f32 %v4509_v22, %v1197_v16  ;;  %v1252_v31 = vadd.f32 %v4513_v20, %v1198_v58 }
 0x1f0   : > { %v1257_v28 = vadd.f32 %v4517_v34, %v1213_v56  ;;  %v1258_v4 = vadd.f32 %v4521_v11, %v1214_v5  ;;  %v1263_v32 = vadd.f32 %v4525_v12, %v1229_v27  ;;  %v1264_v57 = vadd.f32 %v4529_v37, %v1230_v62  ;;  %v6576_v27 = vld [vmem:[#allocation102_spill] sm:$0xff] }
 0x1f1   : > { %v1245_v19 = vadd.f32 %v6560_v7, %v1181_v35  ;;  %v1246_v24 = vadd.f32 %v6562_v29, %v1182_v54  ;;  %v1273_v54 = vmul.f32 %v6564_v50, %v1077_v6  ;;  %v6565_v39 = vmov %v6564_v50  ;;  %v6578_v7 = vld [vmem:[#allocation79_spill] sm:$0xff] }
 0x1f2   : > { %v1274_v30 = vmul.f32 %v6565_v39, %v1078_v0  ;;  %v6566_v22 = vstv %s6383_s6  ;;  %v6568_v34 = vstv %s6561_s19  ;;  %v6570_v12 = vstv %s6563_s23  ;;  %s6573_s6 = sld [smem:[#allocation58_spill]]  ;;  %v6579_v29 = vld [vmem:[#allocation103_spill] sm:$0xff]  ;;  %s6603_s19 = sld [smem:[#allocation125_spill]] }
 0x1f3   : > { %v1269_v35 = vadd.f32 %v4533_v59, %v1245_v19  ;;  %v1270_v10 = vadd.f32 %v4537_v43, %v1246_v24  ;;  %v1279_v47 = vmul.f32 %v6566_v22, %v1077_v6  ;;  %v6567_v53 = vmov %v6566_v22  ;;  %s6605_s23 = sld [smem:[#allocation46_spill]] }
 0x1f4   : > { %v1280_v20 = vmul.f32 %v6567_v53, %v1078_v0  ;;  %v1285_v41 = vmul.f32 %v6568_v34, %v1077_v6  ;;  %v6569_v11 = vmov %v6568_v34  ;;  %v1291_v21 = vmul.f32 %v6570_v12, %v1077_v6 }
 0x1f5   : > { %v1286_v51 = vmul.f32 %v6569_v11, %v1078_v0  ;;  %v6571_v37 = vmov %v6570_v12  ;;  %v1275_v59 = vadd.f32 %v1273_v54, %v1251_v1  ;;  %v1276_v44 = vadd.f32 %v1274_v30, %v1252_v31  ;;  %v6580_v1 = vld [vmem:[#allocation80_spill] sm:$0xff] }
 0x1f6   : > { %v1292_v16 = vmul.f32 %v6571_v37, %v1078_v0  ;;  %v1281_v43 = vadd.f32 %v1279_v47, %v1257_v28  ;;  %v1282_v58 = vadd.f32 %v1280_v20, %v1258_v4  ;;  %v1287_v40 = vadd.f32 %v1285_v41, %v1263_v32  ;;  %v6574_v0 = vld [vmem:[#allocation78_spill] sm:$0xff]  ;;  %v6581_v31 = vld [vmem:[#allocation104_spill] sm:$0xff]  ;;  %v6582_v4 = vld [vmem:[#allocation81_spill] sm:$0xff] }
 0x1f7   : > { %v1288_v56 = vadd.f32 %v1286_v51, %v1264_v57  ;;  %v1293_v52 = vadd.f32 %v1291_v21, %v1269_v35  ;;  %v1084_v6 = vsel %vm719_vm11, %v1082_v61, %v4561_v60  ;;  %v1299_v23 = vadd.f32 %v6574_v0, %v1275_v59  ;;  %v6583_v57 = vld [vmem:[#allocation109_spill] sm:$0xff] }
 0x1f8   : > { %v1294_v5 = vadd.f32 %v1292_v16, %v1270_v10  ;;  %v1300_v18 = vadd.f32 %v6576_v27, %v1276_v44  ;;  %v1085_v62 = vsel %vm3784_vm12, %v1083_v14, 0.0  ;;  %v1086_v38 = vsel %vm3790_vm13, %v1084_v6, 0.0  ;;  %v1397_v10 = vpop.permute.xlu1 %1396  ;;  %v1371_v16 = vpop.permute.xlu0 %1370 }
 0x1f9   : > { %v1305_v19 = vadd.f32 %v6578_v7, %v1281_v43  ;;  %v1306_v24 = vadd.f32 %v6579_v29, %v1282_v58  ;;  %v1311_v60 = vadd.f32 %v6580_v1, %v1287_v40  ;;  %v1312_v28 = vadd.f32 %v6581_v31, %v1288_v56 }
 0x1fa   : > { %v1317_v32 = vadd.f32 %v6582_v4, %v1293_v52  ;;  %v1318_v35 = vadd.f32 %v6583_v57, %v1294_v5  ;;  %v6584_v50 = vstv %s6572_s28  ;;  %v6586_v22 = vstv %s6573_s6  ;;  %s6623_s28 = sld [smem:[#allocation138_spill]]  ;;  %s6625_s6 = sld [smem:[#allocation142_spill]] }
 0x1fb   : > { %v1321_v54 = vmul.f32 %v6584_v50, %v1085_v62  ;;  %v6585_v39 = vmov %v6584_v50  ;;  %v1327_v47 = vmul.f32 %v6586_v22, %v1085_v62  ;;  %v6587_v53 = vmov %v6586_v22 }
 0x1fc   : > { %v1322_v30 = vmul.f32 %v6585_v39, %v1086_v38  ;;  %v1328_v20 = vmul.f32 %v6587_v53, %v1086_v38  ;;  %v6588_v61 = vstv %s6575_s4  ;;  %v6590_v51 = vstv %s6577_s24  ;;  %v4855_v7 = vpop.permute.xlu1 %1703  ;;  %v1379_v39 = vpop.permute.xlu0 %1378  ;;  %s6640_s4 = sld [smem:[#allocation144_spill]]  ;;  %s5425_s24 = sld [smem:[#allocation13 + $0x4]] }
 0x1fd   : > { %v1333_v34 = vmul.f32 %v6588_v61, %v1085_v62  ;;  %v6589_v41 = vmov %v6588_v61  ;;  %v1339_v12 = vmul.f32 %v6590_v51, %v1085_v62  ;;  %v6591_v21 = vmov %v6590_v51 }
 0x1fe   : > { %v1334_v11 = vmul.f32 %v6589_v41, %v1086_v38  ;;  %v1340_v37 = vmul.f32 %v6591_v21, %v1086_v38  ;;  %v1323_v59 = vadd.f32 %v1321_v54, %v1299_v23  ;;  %v1324_v44 = vadd.f32 %v1322_v30, %v1300_v18 }
 0x1ff   : > { %v1329_v43 = vadd.f32 %v1327_v47, %v1305_v19  ;;  %v1330_v58 = vadd.f32 %v1328_v20, %v1306_v24  ;;  %v1335_v40 = vadd.f32 %v1333_v34, %v1311_v60  ;;  %v1341_v52 = vadd.f32 %v1339_v12, %v1317_v32 }
 0x200   : > { %v1336_v56 = vadd.f32 %v1334_v11, %v1312_v28  ;;  %v1342_v5 = vadd.f32 %v1340_v37, %v1318_v35  ;;  %v1374_v14 = vsel %vm710_vm8, %v1371_v16, %v4607_v33  ;;  %v1375_v6 = vsel %vm710_vm8, %v4607_v33, %v1371_v16 }
 0x201   : > { %v1398_v0 = vsel %vm719_vm11, %v1395_v2, %v1397_v10  ;;  %v1399_v23 = vsel %vm719_vm11, %v1397_v10, %v1395_v2  ;;  %v1376_v27 = vsel %vm3657_vm9, %v1375_v6, 0.0  ;;  %v1377_v18 = vsel %vm3663_vm10, %v1374_v14, 0.0 }
 0x202   : > { %v1400_v62 = vsel %vm3784_vm12, %v1398_v0, 0.0  ;;  %v1401_v38 = vsel %vm3790_vm13, %v1399_v23, 0.0  ;;  %v6595_v33 = vstv %s6592_s0  ;;  %v6597_v1 = vstv %s6593_s29  ;;  %s5427_s0 = sld [smem:[#allocation13 + $0x3]]  ;;  %s5433_s29 = sld [smem:[#allocation13 + $0x2]] }
 0x203   : > { %v1420_v19 = vmul.f32 %v6595_v33, %v1376_v27  ;;  %v6596_v29 = vmov %v6595_v33  ;;  %v1426_v2 = vmul.f32 %v6597_v1, %v1376_v27  ;;  %v6599_v60 = vmov %v6597_v1 }
 0x204   : > { %v1421_v24 = vmul.f32 %v6596_v29, %v1377_v18  ;;  %v1427_v31 = vmul.f32 %v6599_v60, %v1377_v18  ;;  %v6600_v28 = vstv %s4099_s15  ;;  %v6602_v35 = vstv %s6594_s20  ;;  %s6617_s15 = sld [smem:[#allocation132_spill]]  ;;  %s5441_s20 = sld [smem:[#allocation13 + $0x5]] }
 0x205   : > { %v1432_v4 = vmul.f32 %v6600_v28, %v1376_v27  ;;  %v6601_v32 = vmov %v6600_v28  ;;  %v1438_v10 = vmul.f32 %v6602_v35, %v1376_v27  ;;  %v6604_v50 = vmov %v6602_v35 }
 0x206   : > { %v1433_v57 = vmul.f32 %v6601_v32, %v1377_v18  ;;  %v1439_v54 = vmul.f32 %v6604_v50, %v1377_v18  ;;  %v1422_v30 = vadd.f32 %v1420_v19, %v1323_v59  ;;  %v1423_v22 = vadd.f32 %v1421_v24, %v1324_v44  ;;  %v6616_v19 = vld [vmem:[#allocation111_spill] sm:$0xff] }
 0x207   : > { %v1428_v47 = vadd.f32 %v1426_v2, %v1329_v43  ;;  %v1429_v53 = vadd.f32 %v1427_v31, %v1330_v58  ;;  %v1434_v20 = vadd.f32 %v1432_v4, %v1335_v40  ;;  %v1440_v34 = vadd.f32 %v1438_v10, %v1341_v52  ;;  %v1405_v40 = vpop.permute.xlu1 %1404  ;;  %v6618_v24 = vld [vmem:[#allocation83_spill] sm:$0xff]  ;;  %v6619_v2 = vld [vmem:[#allocation112_spill] sm:$0xff]  ;;  %v6624_v4 = vld [vmem:[#allocation85_spill] sm:$0xff] }
 0x208   : > { %v1435_v61 = vadd.f32 %v1433_v57, %v1336_v56  ;;  %v1441_v41 = vadd.f32 %v1439_v54, %v1342_v5  ;;  %v6606_v11 = vstv %s6598_s1  ;;  %v6608_v37 = vstv %s4125_s8  ;;  %v6614_v56 = vld [vmem:[#allocation110_spill] sm:$0xff]  ;;  %s6620_s8 = sld [smem:[#allocation54_spill]]  ;;  %v6621_v31 = vld [vmem:[#allocation84_spill] sm:$0xff]  ;;  %v1403_v57 = vpop.permute.xlu0 %1402  ;;  %s5448_s1 = sld [smem:[#allocation13 + $0x6]] }
 0x209   : > { %v1580_v51 = vmul.f32 %v6606_v11, %v1400_v62  ;;  %v6607_v12 = vmov %v6606_v11  ;;  %v1586_v16 = vmul.f32 %v6608_v37, %v1400_v62  ;;  %v6609_v14 = vmov %v6608_v37  ;;  %v6615_v5 = vld [vmem:[#allocation82_spill] sm:$0xff] }
 0x20a   : > { %v1581_v21 = vmul.f32 %v6607_v12, %v1401_v38  ;;  %v1587_v6 = vmul.f32 %v6609_v14, %v1401_v38  ;;  %v6610_v0 = vstv %s6603_s19  ;;  %v6612_v59 = vstv %s6605_s23  ;;  %s5466_s19 = sld [smem:[#allocation13 + $0x7]]  ;;  %s5490_s23 = sld [smem:[#allocation13 + $0x8]] }
 0x20b   : > { %v1592_v23 = vmul.f32 %v6610_v0, %v1400_v62  ;;  %v6611_v27 = vmov %v6610_v0  ;;  %v1598_v44 = vmul.f32 %v6612_v59, %v1400_v62  ;;  %v6613_v43 = vmov %v6612_v59  ;;  %v6622_v62 = vld [vmem:[#allocation113_spill] sm:$0xff] }
 0x20c   : > { %v1593_v18 = vmul.f32 %v6611_v27, %v1401_v38  ;;  %v1599_v58 = vmul.f32 %v6613_v43, %v1401_v38  ;;  %v1446_v52 = vadd.f32 %v6614_v56, %v1422_v30  ;;  %v1447_v33 = vadd.f32 %v6615_v5, %v1423_v22 }
 0x20d   : > { %v1452_v29 = vadd.f32 %v6616_v19, %v1428_v47  ;;  %v1453_v1 = vadd.f32 %v6618_v24, %v1429_v53  ;;  %v1458_v60 = vadd.f32 %v6619_v2, %v1434_v20  ;;  %v1459_v28 = vadd.f32 %v6621_v31, %v1435_v61 }
 0x20e   : > { %v1464_v38 = vadd.f32 %v6622_v62, %v1440_v34  ;;  %v1465_v32 = vadd.f32 %v6624_v4, %v1441_v41  ;;  %v1382_v35 = vsel %vm719_vm11, %v1379_v39, %v4635_v26  ;;  %v1383_v10 = vsel %vm719_vm11, %v4635_v26, %v1379_v39 }
 0x20f   : > { %v1406_v50 = vsel %vm710_vm8, %v1403_v57, %v1405_v40  ;;  %v1407_v54 = vsel %vm710_vm8, %v1405_v40, %v1403_v57  ;;  %v1384_v30 = vsel %vm3784_vm12, %v1382_v35, 0.0  ;;  %v1385_v22 = vsel %vm3790_vm13, %v1383_v10, 0.0 }
 0x210   : > { %v1408_v47 = vsel %vm3657_vm9, %v1407_v54, 0.0  ;;  %v1409_v53 = vsel %vm3663_vm10, %v1406_v50, 0.0  ;;  %v6626_v20 = vstv %s6617_s15  ;;  %v6628_v34 = vstv %s6620_s8  ;;  %s5492_s15 = sld [smem:[#allocation13 + $0xa]]  ;;  %s5500_s8 = sld [smem:[#allocation13 + $0x9]] }
 0x211   : > { %v1468_v26 = vmul.f32 %v6626_v20, %v1384_v30  ;;  %v6627_v39 = vmov %v6626_v20  ;;  %v1474_v41 = vmul.f32 %v6628_v34, %v1384_v30  ;;  %v6629_v11 = vmov %v6628_v34  ;;  %v1411_v20 = vpop.permute.xlu0 %1410 }
 0x212   : > { %v1469_v61 = vmul.f32 %v6627_v39, %v1385_v22  ;;  %v1475_v12 = vmul.f32 %v6629_v11, %v1385_v22  ;;  %v6630_v37 = vstv %s6623_s28  ;;  %v6632_v59 = vstv %s6625_s6  ;;  %s5502_s28 = sld [smem:[#allocation13 + $0xd]]  ;;  %s5505_s6 = sld [smem:[#allocation13 + $0xc]] }
 0x213   : > { %v1480_v14 = vmul.f32 %v6630_v37, %v1384_v30  ;;  %v6631_v0 = vmov %v6630_v37  ;;  %v1486_v43 = vmul.f32 %v6632_v59, %v1384_v30  ;;  %v6633_v40 = vmov %v6632_v59 }
 0x214   : > { %v1481_v27 = vmul.f32 %v6631_v0, %v1385_v22  ;;  %v1487_v56 = vmul.f32 %v6633_v40, %v1385_v22  ;;  %v1470_v5 = vadd.f32 %v1468_v26, %v1446_v52  ;;  %v1471_v19 = vadd.f32 %v1469_v61, %v1447_v33  ;;  %v6644_v61 = vld [vmem:[#allocation149_spill] sm:$0xff] }
 0x215   : > { %v1476_v24 = vadd.f32 %v1474_v41, %v1452_v29  ;;  %v1477_v2 = vadd.f32 %v1475_v12, %v1453_v1  ;;  %v1482_v31 = vadd.f32 %v1480_v14, %v1458_v60  ;;  %v1488_v4 = vadd.f32 %v1486_v43, %v1464_v38  ;;  %v6634_v1 = vld [vmem:[#allocation146_spill] sm:$0xff] }
 0x216   : > { %v1483_v62 = vadd.f32 %v1481_v27, %v1459_v28  ;;  %v1489_v57 = vadd.f32 %v1487_v56, %v1465_v32  ;;  %v1494_v35 = vadd.f32 %v4725_v25, %v1470_v5  ;;  %v1495_v10 = vadd.f32 %v4729_v17, %v1471_v19 }
 0x217   : > { %v1500_v50 = vadd.f32 %v4733_v3, %v1476_v24  ;;  %v1501_v54 = vadd.f32 %v4737_v15, %v1477_v2  ;;  %v1506_v30 = vadd.f32 %v4741_v36, %v1482_v31  ;;  %v1512_v33 = vadd.f32 %v4749_v8, %v1488_v4  ;;  %v6637_v3 = vld [vmem:[#allocation147_spill] sm:$0xff]  ;;  %v1413_v8 = vpop.permute.xlu1 %1412 }
 0x218   : > { %v1507_v52 = vadd.f32 %v4745_v49, %v1483_v62  ;;  %v1513_v29 = vadd.f32 %v4753_v42, %v1489_v57  ;;  %v6635_v60 = vrot.slane %v6634_v1, %v3152_v46  ;;  %v6636_v25 = vrot.slane %v6634_v1, %v3156_v48  ;;  %v6641_v42 = vld [vmem:[#allocation148_spill] sm:$0xff] }
 0x219   : > { %v6638_v15 = vrot.slane %v6637_v3, %v3152_v46  ;;  %v6639_v36 = vrot.slane %v6637_v3, %v3156_v48  ;;  %v6642_v32 = vrot.slane %v6641_v42, %v3152_v46  ;;  %v6643_v26 = vrot.slane %v6641_v42, %v3156_v48  ;;  %v6658_v42 = vld [vmem:[#allocation115_spill] sm:$0xff] }
 0x21a   : > { %v1528_v28 = vadd.f32 %v6635_v60, %v1494_v35  ;;  %v1529_v17 = vadd.f32 %v6636_v25, %v1495_v10  ;;  %v6645_v34 = vrot.slane %v6644_v61, %v3152_v46  ;;  %v6646_v11 = vrot.slane %v6644_v61, %v3156_v48  ;;  %v1718_v35 = vpop.permute.xlu0 %1717 }
 0x21b   : > { %v1544_v38 = vadd.f32 %v6638_v15, %v1500_v50  ;;  %v1545_v49 = vadd.f32 %v6639_v36, %v1501_v54  ;;  %v1560_v22 = vadd.f32 %v6642_v32, %v1506_v30  ;;  %v1561_v39 = vadd.f32 %v6643_v26, %v1507_v52  ;;  %v4979_v52 = vpop.permute.xlu1 %1711  ;;  %v6657_v36 = vld [vmem:[#allocation89_spill] sm:$0xff] }
 0x21c   : > { %v1576_v41 = vadd.f32 %v6645_v34, %v1512_v33  ;;  %v1577_v12 = vadd.f32 %v6646_v11, %v1513_v29  ;;  %v1582_v37 = vadd.f32 %v1580_v51, %v1528_v28  ;;  %v1583_v14 = vadd.f32 %v1581_v21, %v1529_v17  ;;  %v6656_v17 = vld [vmem:[#allocation114_spill] sm:$0xff]  ;;  %v6662_v34 = vld [vmem:[#allocation117_spill] sm:$0xff] }
 0x21d   : > { %v1588_v0 = vadd.f32 %v1586_v16, %v1544_v38  ;;  %v1589_v27 = vadd.f32 %v1587_v6, %v1545_v49  ;;  %v1594_v59 = vadd.f32 %v1592_v23, %v1560_v22  ;;  %v1595_v43 = vadd.f32 %v1593_v18, %v1561_v39  ;;  %v6659_v22 = vld [vmem:[#allocation90_spill] sm:$0xff]  ;;  %v6661_v39 = vld [vmem:[#allocation91_spill] sm:$0xff] }
 0x21e   : > { %v1600_v40 = vadd.f32 %v1598_v44, %v1576_v41  ;;  %v1601_v56 = vadd.f32 %v1599_v58, %v1577_v12  ;;  %v6647_v5 = vstv %s4210_s13  ;;  %v6649_v31 = vstv %s6640_s4  ;;  %v1702_v11 = vpop.permute.xlu0 %1701  ;;  %s2782_s13 = sld [smem:[#allocation9 + $0x8f]]  ;;  %s5517_s4 = sld [smem:[#allocation13 + $0xb]] }
 0x21f   : > { %v1604_v19 = vmul.f32 %v6647_v5, %v1408_v47  ;;  %v6648_v24 = vmov %v6647_v5  ;;  %v1610_v62 = vmul.f32 %v6649_v31, %v1408_v47  ;;  %v6650_v4 = vmov %v6649_v31 }
 0x220   : > { %v1605_v2 = vmul.f32 %v6648_v24, %v1409_v53  ;;  %v1611_v57 = vmul.f32 %v6650_v4, %v1409_v53  ;;  %v6651_v10 = vstv %s4222_s17  ;;  %v6653_v21 = vstv %s4234_s21  ;;  %s2781_s21 = sld [smem:[#allocation9 + $0x6b]]  ;;  %s6741_s17 = smov 127  }
 0x221   : > { %v1616_v50 = vmul.f32 %v6651_v10, %v1408_v47  ;;  %v6652_v51 = vmov %v6651_v10  ;;  %v1622_v16 = vmul.f32 %v6653_v21, %v1408_v47  ;;  %v6654_v6 = vmov %v6653_v21 }
 0x222   : > { %v1617_v54 = vmul.f32 %v6652_v51, %v1409_v53  ;;  %v1623_v23 = vmul.f32 %v6654_v6, %v1409_v53  ;;  %v1606_v18 = vadd.f32 %v1604_v19, %v1582_v37  ;;  %v1607_v44 = vadd.f32 %v1605_v2, %v1583_v14  ;;  %v6655_v53 = vld [vmem:[#allocation88_spill] sm:$0xff] }
 0x223   : > { %v1612_v58 = vadd.f32 %v1610_v62, %v1588_v0  ;;  %v1613_v30 = vadd.f32 %v1611_v57, %v1589_v27  ;;  %v1618_v33 = vadd.f32 %v1616_v50, %v1594_v59  ;;  %v1624_v1 = vadd.f32 %v1622_v16, %v1600_v40  ;;  %v1720_v57 = vpop.permute.xlu1 %1719 }
 0x224   : > { %v1619_v29 = vadd.f32 %v1617_v54, %v1595_v43  ;;  %v1625_v60 = vadd.f32 %v1623_v23, %v1601_v56  ;;  %v1414_v28 = vsel %vm719_vm11, %v1411_v20, %v1413_v8  ;;  %v1415_v47 = vsel %vm719_vm11, %v1413_v8, %v1411_v20  ;;  %v6660_v8 = vld [vmem:[#allocation116_spill] sm:$0xff] }
 0x225   : > { %v1630_v25 = vadd.f32 %v6655_v53, %v1606_v18  ;;  %v1631_v3 = vadd.f32 %v6656_v17, %v1607_v44  ;;  %v1416_v15 = vsel %vm3784_vm12, %v1414_v28, 0.0  ;;  %v1417_v38 = vsel %vm3790_vm13, %v1415_v47, 0.0  ;;  %v1710_v28 = vpop.permute.xlu0 %1709 }
 0x226   : > { %v1636_v49 = vadd.f32 %v6657_v36, %v1612_v58  ;;  %v1637_v32 = vadd.f32 %v6658_v42, %v1613_v30  ;;  %v1642_v20 = vadd.f32 %v6659_v22, %v1618_v33  ;;  %v1643_v26 = vadd.f32 %v6660_v8, %v1619_v29 }
 0x227   : > { %v1648_v61 = vadd.f32 %v6661_v39, %v1624_v1  ;;  %v1649_v41 = vadd.f32 %v6662_v34, %v1625_v60  ;;  %v6663_v12 = vstv %s4236_s27  ;;  %v6665_v27 = vstv %s4246_s11  ;;  %s5013_s27 = sld [smem:[#allocation9 + $0x45]]  ;;  %s2783_s11 = sld [smem:[#allocation13 + $0x1]] }
 0x228   : > { %v1652_v37 = vmul.f32 %v6663_v12, %v1416_v15  ;;  %v6664_v14 = vmov %v6663_v12  ;;  %v1658_v59 = vmul.f32 %v6665_v27, %v1416_v15  ;;  %v6666_v43 = vmov %v6665_v27 }
 0x229   : > { %v1653_v0 = vmul.f32 %v6664_v14, %v1417_v38  ;;  %v1659_v40 = vmul.f32 %v6666_v43, %v1417_v38  ;;  %v6667_v56 = vstv %s6398_s5  ;;  %v6669_v2 = vstv %s4257_s9  ;;  %s6697_s5 = sld [smem:[#allocation152_spill]]  ;;  %s6739_s9 = smov 112  }
 0x22a   : > { %v1664_v5 = vmul.f32 %v6667_v56, %v1416_v15  ;;  %v6668_v19 = vmov %v6667_v56  ;;  %v1670_v31 = vmul.f32 %v6669_v2, %v1416_v15  ;;  %v6670_v62 = vmov %v6669_v2 }
 0x22b   : > { %v1665_v24 = vmul.f32 %v6668_v19, %v1417_v38  ;;  %v1671_v4 = vmul.f32 %v6670_v62, %v1417_v38  ;;  %v1654_v10 = vadd.f32 %v1652_v37, %v1630_v25  ;;  %v1655_v50 = vadd.f32 %v1653_v0, %v1631_v3 }
 0x22c   : > { %v1660_v51 = vadd.f32 %v1658_v59, %v1636_v49  ;;  %v1661_v54 = vadd.f32 %v1659_v40, %v1637_v32  ;;  %v1666_v21 = vadd.f32 %v1664_v5, %v1642_v20  ;;  %v1672_v6 = vadd.f32 %v1670_v31, %v1648_v61 }
 0x22d   : > { %v1667_v16 = vadd.f32 %v1665_v24, %v1643_v26  ;;  %v1673_v23 = vadd.f32 %v1671_v4, %v1649_v41  ;;  %v1705_v18 = vsel %vm710_vm8, %v1702_v11, %v4855_v7  ;;  %v1706_v44 = vsel %vm710_vm8, %v4855_v7, %v1702_v11 }
 0x22e   : > { %v1721_v58 = vsel %vm710_vm8, %v1718_v35, %v1720_v57  ;;  %v1722_v30 = vsel %vm710_vm8, %v1720_v57, %v1718_v35  ;;  %v1707_v33 = vsel %vm3657_vm9, %v1706_v44, 0.0  ;;  %v1708_v29 = vsel %vm3663_vm10, %v1705_v18, 0.0  ;;  %v6689_v18 = vld [vmem:[#allocation93_spill] sm:$0xff] }
 0x22f   : > { %v1723_v1 = vsel %vm3657_vm9, %v1722_v30, 0.0  ;;  %v1724_v60 = vsel %vm3663_vm10, %v1721_v58, 0.0  ;;  %v6671_v7 = vstv %s6399_s22  ;;  %v6673_v17 = vstv %s4265_s26  ;;  %v6690_v58 = vld [vmem:[#allocation134_spill] sm:$0xff]  ;;  %s6695_s26 = sld [smem:[#allocation151_spill]]  ;;  %s2073_s22 = sld [smem:[#allocation13]] }
 0x230   : > { %v1751_v47 = vmul.f32 %v6671_v7, %v1707_v33  ;;  %v6672_v53 = vmov %v6671_v7  ;;  %v1757_v35 = vmul.f32 %v6673_v17, %v1707_v33  ;;  %v6674_v3 = vmov %v6673_v17  ;;  %v6693_v7 = vld [vmem:[#allocation135_spill] sm:$0xff] }
 0x231   : > { %v1752_v25 = vmul.f32 %v6672_v53, %v1708_v29  ;;  %v1758_v15 = vmul.f32 %v6674_v3, %v1708_v29  ;;  %v6675_v38 = vstv %s4267_s3  ;;  %v6677_v32 = vstv %s4295_s25  ;;  %s6692_s3 = sld [smem:[#allocation150_spill]]  ;;  %s5084_s25 = sld [smem:[#allocation9 + $0x8d]] }
 0x232   : > { %v1763_v36 = vmul.f32 %v6675_v38, %v1707_v33  ;;  %v6676_v49 = vmov %v6675_v38  ;;  %v1769_v22 = vmul.f32 %v6677_v32, %v1707_v33  ;;  %v6678_v20 = vmov %v6677_v32  ;;  %v6691_v33 = vld [vmem:[#allocation94_spill] sm:$0xff] }
 0x233   : > { %v1764_v42 = vmul.f32 %v6676_v49, %v1708_v29  ;;  %v1770_v8 = vmul.f32 %v6678_v20, %v1708_v29  ;;  %v1753_v26 = vadd.f32 %v1751_v47, %v1654_v10  ;;  %v1754_v39 = vadd.f32 %v1752_v25, %v1655_v50  ;;  %v1728_v10 = vpop.permute.xlu1 %1727  ;;  %v1726_v50 = vpop.permute.xlu0 %1725  ;;  %v6694_v47 = vld [vmem:[#allocation95_spill] sm:$0xff] }
 0x234   : > { %v1759_v61 = vadd.f32 %v1757_v35, %v1660_v51  ;;  %v1760_v34 = vadd.f32 %v1758_v15, %v1661_v54  ;;  %v1765_v41 = vadd.f32 %v1763_v36, %v1666_v21  ;;  %v1771_v12 = vadd.f32 %v1769_v22, %v1672_v6  ;;  %v6686_v51 = vld [vmem:[#allocation130_spill] sm:$0xff]  ;;  %v6687_v21 = vld [vmem:[#allocation92_spill] sm:$0xff]  ;;  %v6688_v6 = vld [vmem:[#allocation133_spill] sm:$0xff] }
 0x235   : > { %v1766_v11 = vadd.f32 %v1764_v42, %v1667_v16  ;;  %v1772_v37 = vadd.f32 %v1770_v8, %v1673_v23  ;;  %v6679_v14 = vstv %s4297_s16  ;;  %v6681_v43 = vstv %s4305_s12  ;;  %s5082_s16 = sld [smem:[#allocation9 + $0x69]]  ;;  %s5110_s12 = sld [smem:[#allocation9 + $0x23]] }
 0x236   : > { %v1823_v0 = vmul.f32 %v6679_v14, %v1723_v1  ;;  %v6680_v27 = vmov %v6679_v14  ;;  %v1829_v40 = vmul.f32 %v6681_v43, %v1723_v1  ;;  %v1940_v56 = vstv %s5013_s27  ;;  %s5527_s27 = sld [smem:[#allocation13 + $0x10]] }
 0x237   : > { %v1824_v59 = vmul.f32 %v6680_v27, %v1724_v60  ;;  %v6682_v5 = vmov %v6681_v43  ;;  %v6683_v24 = vstv %s4307_s30  ;;  %v6685_v4 = vstv %s4313_s7  ;;  %s6706_s7 = sld [smem:[#allocation153_spill]]  ;;  %s6738_s30 = smov 16  }
 0x238   : > { %v1830_v19 = vmul.f32 %v6682_v5, %v1724_v60  ;;  %v1835_v2 = vmul.f32 %v6683_v24, %v1723_v1  ;;  %v6684_v31 = vmov %v6683_v24  ;;  %v1841_v57 = vmul.f32 %v6685_v4, %v1723_v1 }
 0x239   : > { %v1836_v62 = vmul.f32 %v6684_v31, %v1724_v60  ;;  %v1777_v54 = vadd.f32 %v6686_v51, %v1753_v26  ;;  %v1778_v16 = vadd.f32 %v6687_v21, %v1754_v39  ;;  %v1783_v23 = vadd.f32 %v6688_v6, %v1759_v61 }
 0x23a   : > { %v1784_v44 = vadd.f32 %v6689_v18, %v1760_v34  ;;  %v1789_v30 = vadd.f32 %v6690_v58, %v1765_v41  ;;  %v1790_v29 = vadd.f32 %v6691_v33, %v1766_v11  ;;  %v1795_v1 = vadd.f32 %v6693_v7, %v1771_v12 }
 0x23b   : > { %v1796_v53 = vadd.f32 %v6694_v47, %v1772_v37  ;;  %v6696_v25 = vmov %v6685_v4  ;;  %v1713_v35 = vsel %vm719_vm11, %v1710_v28, %v4979_v52  ;;  %v1714_v3 = vsel %vm719_vm11, %v4979_v52, %v1710_v28  ;;  %v6714_v47 = vld [vmem:[#allocation157_spill] sm:$0xff] }
 0x23c   : > { %v1842_v17 = vmul.f32 %v6696_v25, %v1724_v60  ;;  %v1729_v15 = vsel %vm719_vm11, %v1726_v50, %v1728_v10  ;;  %v1715_v60 = vsel %vm3784_vm12, %v1713_v35, 0.0  ;;  %v1716_v38 = vsel %vm3790_vm13, %v1714_v3, 0.0  ;;  %v6717_v3 = vld [vmem:[#allocation158_spill] sm:$0xff] }
 0x23d   : > { %v1730_v36 = vsel %vm719_vm11, %v1728_v10, %v1726_v50  ;;  %v1731_v49 = vsel %vm3784_vm12, %v1729_v15, 0.0  ;;  %v6698_v52 = vstv %s4315_s14  ;;  %v6700_v22 = vstv %s6692_s3  ;;  %s6707_s14 = sld [smem:[#allocation52_spill]]  ;;  %s5549_s3 = sld [smem:[#allocation13 + $0xe]] }
 0x23e   : > { %v1799_v28 = vmul.f32 %v6698_v52, %v1715_v60  ;;  %v6699_v42 = vmov %v6698_v52  ;;  %v1805_v20 = vmul.f32 %v6700_v22, %v1715_v60  ;;  %v6701_v8 = vmov %v6700_v22 }
 0x23f   : > { %v1800_v32 = vmul.f32 %v6699_v42, %v1716_v38  ;;  %v1806_v26 = vmul.f32 %v6701_v8, %v1716_v38  ;;  %v6702_v39 = vstv %s6695_s26  ;;  %v6704_v11 = vstv %s6697_s5  ;;  %s5555_s26 = sld [smem:[#allocation13 + $0x13]]  ;;  %s5565_s5 = sld [smem:[#allocation13 + $0xf]] }
 0x240   : > { %v1811_v61 = vmul.f32 %v6702_v39, %v1715_v60  ;;  %v6703_v34 = vmov %v6702_v39  ;;  %v1817_v12 = vmul.f32 %v6704_v11, %v1715_v60  ;;  %v6705_v37 = vmov %v6704_v11 }
 0x241   : > { %v1812_v41 = vmul.f32 %v6703_v34, %v1716_v38  ;;  %v1818_v14 = vmul.f32 %v6705_v37, %v1716_v38  ;;  %v1801_v27 = vadd.f32 %v1799_v28, %v1777_v54  ;;  %v1802_v43 = vadd.f32 %v1800_v32, %v1778_v16  ;;  %v6708_v16 = vld [vmem:[#allocation154_spill] sm:$0xff]  ;;  %v1736_v34 = vpop.permute.xlu1 %1735 }
 0x242   : > { %v1807_v5 = vadd.f32 %v1805_v20, %v1783_v23  ;;  %v1808_v24 = vadd.f32 %v1806_v26, %v1784_v44  ;;  %v1813_v31 = vadd.f32 %v1811_v61, %v1789_v30  ;;  %v1819_v10 = vadd.f32 %v1817_v12, %v1795_v1 }
 0x243   : > { %v1814_v4 = vadd.f32 %v1812_v41, %v1790_v29  ;;  %v1820_v50 = vadd.f32 %v1818_v14, %v1796_v53  ;;  %v1825_v51 = vadd.f32 %v1823_v0, %v1801_v27  ;;  %v1826_v21 = vadd.f32 %v1824_v59, %v1802_v43  ;;  %v1734_v41 = vpop.permute.xlu0 %1733 }
 0x244   : > { %v1831_v6 = vadd.f32 %v1829_v40, %v1807_v5  ;;  %v1832_v18 = vadd.f32 %v1830_v19, %v1808_v24  ;;  %v1837_v58 = vadd.f32 %v1835_v2, %v1813_v31  ;;  %v1843_v7 = vadd.f32 %v1841_v57, %v1819_v10 }
 0x245   : > { %v1838_v33 = vadd.f32 %v1836_v62, %v1814_v4  ;;  %v1844_v54 = vadd.f32 %v1842_v17, %v1820_v50  ;;  %v6709_v23 = vrot.slane %v6708_v16, %v3152_v46  ;;  %v1732_v0 = vsel %vm3790_vm13, %v1730_v36, 0.0  ;;  %v6711_v62 = vld [vmem:[#allocation155_spill] sm:$0xff] }
 0x246   : > { %v1946_v59 = vstv %s5082_s16  ;;  %v1952_v40 = vstv %s5084_s25  ;;  %v6710_v19 = vrot.slane %v6708_v16, %v3156_v48  ;;  %v6712_v57 = vrot.slane %v6711_v62, %v3152_v46  ;;  %s5587_s16 = sld [smem:[#allocation13 + $0x15]]  ;;  %s5589_s25 = sld [smem:[#allocation13 + $0x11]] }
 0x247   : > { %v1859_v44 = vadd.f32 %v6709_v23, %v1825_v51  ;;  %v6713_v29 = vrot.slane %v6711_v62, %v3156_v48  ;;  %v6715_v53 = vrot.slane %v6714_v47, %v3152_v46  ;;  %v6716_v17 = vrot.slane %v6714_v47, %v3156_v48 }
 0x248   : > { %v1860_v2 = vadd.f32 %v6710_v19, %v1826_v21  ;;  %v1875_v30 = vadd.f32 %v6712_v57, %v1831_v6  ;;  %v6718_v15 = vrot.slane %v6717_v3, %v3152_v46  ;;  %v6719_v38 = vrot.slane %v6717_v3, %v3156_v48  ;;  %v6730_v3 = vld [vmem:[#allocation105_spill] sm:$0xff] }
 0x249   : > { %v1876_v1 = vadd.f32 %v6713_v29, %v1832_v18  ;;  %v1891_v25 = vadd.f32 %v6715_v53, %v1837_v58  ;;  %v1892_v35 = vadd.f32 %v6716_v17, %v1838_v33  ;;  %v6720_v52 = vstv %s6706_s7  ;;  %v1744_v17 = vpop.permute.xlu1 %1743  ;;  %s5603_s7 = sld [smem:[#allocation13 + $0x12]] }
 0x24a   : > { %v1907_v60 = vadd.f32 %v6718_v15, %v1843_v7  ;;  %v1908_v36 = vadd.f32 %v6719_v38, %v1844_v54  ;;  %v1911_v28 = vmul.f32 %v6720_v52, %v1731_v49  ;;  %v6721_v42 = vmov %v6720_v52 }
 0x24b   : > { %v1912_v32 = vmul.f32 %v6721_v42, %v1732_v0  ;;  %v6722_v22 = vstv %s6707_s14  ;;  %v6724_v39 = vstv %s4357_s10  ;;  %v6726_v37 = vstv %s4363_s18  ;;  %s2780_s10 = sld [smem:[#allocation9 + $0x47]]  ;;  %v6735_v42 = vld [vmem:[#allocation143_spill] sm:$0xff]  ;;  %s6740_s18 = smov 1  }
 0x24c   : > { %v1917_v20 = vmul.f32 %v6722_v22, %v1731_v49  ;;  %v6723_v8 = vmov %v6722_v22  ;;  %v1923_v61 = vmul.f32 %v6724_v39, %v1731_v49  ;;  %v1913_v11 = vadd.f32 %v1911_v28, %v1859_v44  ;;  %v6736_v22 = vld [vmem:[#allocation108_spill] sm:$0xff]  ;;  %s5605_s14 = sld [smem:[#allocation13 + $0x14]] }
 0x24d   : > { %v1918_v26 = vmul.f32 %v6723_v8, %v1732_v0  ;;  %v6725_v46 = vmov %v6724_v39  ;;  %v1929_v48 = vmul.f32 %v6726_v37, %v1731_v49  ;;  %v6727_v14 = vmov %v6726_v37  ;;  %v6737_v8 = vld [vmem:[#allocation145_spill] sm:$0xff] }
 0x24e   : > { %v1924_v12 = vmul.f32 %v6725_v46, %v1732_v0  ;;  %v1930_v27 = vmul.f32 %v6727_v14, %v1732_v0  ;;  %v1914_v43 = vadd.f32 %v1912_v32, %v1860_v2  ;;  %v1919_v5 = vadd.f32 %v1917_v20, %v1875_v30 }
 0x24f   : > { %v1920_v24 = vadd.f32 %v1918_v26, %v1876_v1  ;;  %v1925_v31 = vadd.f32 %v1923_v61, %v1891_v25  ;;  %v1931_v10 = vadd.f32 %v1929_v48, %v1907_v60  ;;  %v1737_v50 = vsel %vm710_vm8, %v1734_v41, %v1736_v34  ;;  %v6731_v60 = vld [vmem:[#allocation139_spill] sm:$0xff] }
 0x250   : > { %v1926_v4 = vadd.f32 %v1924_v12, %v1892_v35  ;;  %v1738_v51 = vsel %vm710_vm8, %v1736_v34, %v1734_v41  ;;  %v1932_v21 = vadd.f32 %v1930_v27, %v1908_v36  ;;  %v1740_v6 = vsel %vm3663_vm10, %v1737_v50, 0.0  ;;  %v1742_v35 = vpop.permute.xlu0 %1741 }
 0x251   : > { %v1739_v49 = vsel %vm3657_vm9, %v1738_v51, 0.0  ;;  %v1982_v18 = vstv %s5110_s12  ;;  %v6728_v58 = vstv %s4365_s2  ;;  %v1942_v23 = vmul.f32 %v1940_v56, %v1740_v6  ;;  %s2005_s2 = sld [smem:[#allocation8]]  ;;  %s5629_s12 = sld [smem:[#allocation13 + $0x17]] }
 0x252   : > { %v1935_v33 = vmul.f32 %v6728_v58, %v1739_v49  ;;  %v6729_v7 = vmov %v6728_v58  ;;  %v1941_v16 = vmul.f32 %v1940_v56, %v1739_v49  ;;  %v1947_v44 = vmul.f32 %v1946_v59, %v1739_v49  ;;  %v6732_v56 = vld [vmem:[#allocation106_spill] sm:$0xff] }
 0x253   : > { %v1936_v54 = vmul.f32 %v6729_v7, %v1740_v6  ;;  %v1948_v0 = vmul.f32 %v1946_v59, %v1740_v6  ;;  %v1953_v19 = vmul.f32 %v1952_v40, %v1739_v49  ;;  %v1954_v2 = vmul.f32 %v1952_v40, %v1740_v6  ;;  %v6733_v59 = vld [vmem:[#allocation140_spill] sm:$0xff] }
 0x254   : > { %v1937_v62 = vadd.f32 %v1935_v33, %v1913_v11  ;;  %v1943_v30 = vadd.f32 %v1941_v16, %v1919_v5  ;;  %v1944_v29 = vadd.f32 %v1942_v23, %v1920_v24  ;;  %v1949_v1 = vadd.f32 %v1947_v44, %v1925_v31  ;;  %v6734_v40 = vld [vmem:[#allocation107_spill] sm:$0xff] }
 0x255   : > { %v1938_v57 = vadd.f32 %v1936_v54, %v1914_v43  ;;  %v1950_v47 = vadd.f32 %v1948_v0, %v1926_v4  ;;  %v1955_v53 = vadd.f32 %v1953_v19, %v1931_v10  ;;  %v1956_v25 = vadd.f32 %v1954_v2, %v1932_v21 }
 0x256   : > { %v1961_v15 = vadd.f32 %v6730_v3, %v1937_v62  ;;  %v1967_v36 = vadd.f32 %v6732_v56, %v1943_v30  ;;  %v1968_v52 = vadd.f32 %v6733_v59, %v1944_v29  ;;  %v1973_v28 = vadd.f32 %v6734_v40, %v1949_v1 }
 0x257   : > { %v1962_v38 = vadd.f32 %v6731_v60, %v1938_v57  ;;  %v1974_v32 = vadd.f32 %v6735_v42, %v1950_v47  ;;  %v1979_v20 = vadd.f32 %v6736_v22, %v1955_v53  ;;  %v1980_v26 = vadd.f32 %v6737_v8, %v1956_v25 }
 0x258   : > { %v1745_v39 = vsel %vm719_vm11, %v1742_v35, %v1744_v17  ;;  %v1746_v61 = vsel %vm719_vm11, %v1744_v17, %v1742_v35  ;;  %v1988_v12 = vstv %s2780_s10  ;;  %v1994_v4 = vstv %s2781_s21  ;;  %s5631_s10 = sld [smem:[#allocation13 + $0x16]]  ;;  %s5657_s21 = sld [smem:[#allocation13 + $0x18]] }
 0x259   : > { %v1747_v34 = vsel %vm3784_vm12, %v1745_v39, 0.0  ;;  %v1748_v41 = vsel %vm3790_vm13, %v1746_v61, 0.0  ;;  %v2092_v59 = vstv %s5427_s0  ;;  %s5740_s0 = sld [smem:[#allocation13 + $0x21]] }
 0x25a   : > { %v1983_v11 = vmul.f32 %v1982_v18, %v1747_v34  ;;  %v1984_v46 = vmul.f32 %v1982_v18, %v1748_v41  ;;  %v1989_v14 = vmul.f32 %v1988_v12, %v1747_v34  ;;  %v1990_v27 = vmul.f32 %v1988_v12, %v1748_v41 }
 0x25b   : > { %v1995_v10 = vmul.f32 %v1994_v4, %v1747_v34  ;;  %v1996_v50 = vmul.f32 %v1994_v4, %v1748_v41  ;;  %v2000_v18 = vstv %s2782_s13  ;;  %s5675_s13 = sld [smem:[#allocation13 + $0x1c]] }
 0x25c   : > { %v1985_v37 = vadd.f32 %v1983_v11, %v1961_v15  ;;  %v1986_v48 = vadd.f32 %v1984_v46, %v1962_v38  ;;  %v1991_v24 = vadd.f32 %v1989_v14, %v1967_v36  ;;  %v1992_v31 = vadd.f32 %v1990_v27, %v1968_v52 }
 0x25d   : > { %v1997_v49 = vadd.f32 %v1995_v10, %v1973_v28  ;;  %v1998_v6 = vadd.f32 %v1996_v50, %v1974_v32  ;;  %v2001_v58 = vmul.f32 %v2000_v18, %v1747_v34  ;;  %v2002_v33 = vmul.f32 %v2000_v18, %v1748_v41 }
 0x25e   : > { %v5189_v43 = vmax.f32 %v1985_v37, 0.0  ;;  %v5191_v5 = vmax.f32 %v1986_v48, 0.0  ;;  %v5201_v51 = vmax.f32 %v1991_v24, 0.0  ;;  %v5203_v21 = vmax.f32 %v1992_v31, 0.0 }
 0x25f   : > { %v5213_v7 = vmax.f32 %v1997_v49, 0.0  ;;  %v5215_v54 = vmax.f32 %v1998_v6, 0.0  ;;  %v2003_v16 = vadd.f32 %v2001_v58, %v1979_v20  ;;  %v2004_v23 = vadd.f32 %v2002_v33, %v1980_v26 }
 0x260   : > { %2011 = vrot.lane.b32.xlu1 %v5191_v5, %s6738_s30  ;;  %2009 = vrot.lane.b32.xlu0 %v5189_v43, %s6738_s30 }
 0x261   : > { %v5225_v44 = vmax.f32 %v2003_v16, 0.0  ;;  %v5227_v0 = vmax.f32 %v2004_v23, 0.0 }
 0x264   : > { %2019 = vrot.lane.b32.xlu1 %v5191_v5, %s6739_s9  ;;  %2017 = vrot.lane.b32.xlu0 %v5189_v43, %s6739_s9 }
 0x268   : > { %2131 = vrot.lane.b32.xlu1 %v5203_v21, %s6738_s30  ;;  %2129 = vrot.lane.b32.xlu0 %v5201_v51, %s6738_s30 }
 0x26c   : > { %2139 = vrot.lane.b32.xlu1 %v5203_v21, %s6739_s9  ;;  %2137 = vrot.lane.b32.xlu0 %v5201_v51, %s6739_s9 }
 0x270   : > { %2251 = vrot.lane.b32.xlu1 %v5215_v54, %s6738_s30  ;;  %2249 = vrot.lane.b32.xlu0 %v5213_v7, %s6738_s30 }
 0x274   : > { %2259 = vrot.lane.b32.xlu1 %v5215_v54, %s6739_s9  ;;  %2257 = vrot.lane.b32.xlu0 %v5213_v7, %s6739_s9 }
 0x278   : > { %2371 = vrot.lane.b32.xlu1 %v5227_v0, %s6738_s30  ;;  %2369 = vrot.lane.b32.xlu0 %v5225_v44, %s6738_s30  ;;  %s5673_s30 = sld [smem:[#allocation13 + $0x19]] }
 0x27c   : > { %2043 = vrot.lane.b32.xlu1 %v5191_v5, %s6740_s18  ;;  %2041 = vrot.lane.b32.xlu0 %v5189_v43, %s6740_s18 }
 0x280   : > { %2379 = vrot.lane.b32.xlu1 %v5227_v0, %s6739_s9  ;;  %2377 = vrot.lane.b32.xlu0 %v5225_v44, %s6739_s9  ;;  %s5683_s9 = sld [smem:[#allocation13 + $0x1a]] }
 0x284   : > { %2051 = vrot.lane.b32.xlu1 %v5191_v5, %s6741_s17  ;;  %2049 = vrot.lane.b32.xlu0 %v5189_v43, %s6741_s17 }
 0x288   : > { %2163 = vrot.lane.b32.xlu1 %v5203_v21, %s6740_s18  ;;  %2161 = vrot.lane.b32.xlu0 %v5201_v51, %s6740_s18 }
 0x2d2   : > { %v2012_v19 = vpop.permute.xlu1 %2011  ;;  %v2010_v2 = vpop.permute.xlu0 %2009 }
 0x2d3   : > { %v5251_v62 = vsel %vm692_vm5, %v2010_v2, %v2012_v19  ;;  %v2014_v25 = vsel %vm692_vm5, %v2012_v19, %v2010_v2 }
 0x2d4   : > { %2027 = vrot.lane.b32.xlu1 %v5251_v62, %s6740_s18  ;;  %v5275_v3 = vsel %vm661_vm6, %v2014_v25, 0.0 }
 0x2d6   : > { %v2020_v57 = vpop.permute.xlu1 %2019  ;;  %v2018_v30 = vpop.permute.xlu0 %2017 }
 0x2d7   : > { %v5257_v29 = vsel %vm701_vm4, %v2018_v30, %v2020_v57  ;;  %v2022_v38 = vsel %vm701_vm4, %v2020_v57, %v2018_v30  ;;  %v2080_v30 = vstv %s2783_s11  ;;  %s5706_s11 = sld [smem:[#allocation13 + $0x1d]] }
 0x2d8   : > { %2035 = vrot.lane.b32.xlu1 %v5251_v62, %s6741_s17  ;;  %2057 = vrot.lane.b32.xlu0 %v5257_v29, %s6740_s18  ;;  %v5289_v52 = vsel %vm664_vm7, %v2022_v38, 0.0 }
 0x2da   : > { %v2132_v1 = vpop.permute.xlu1 %2131  ;;  %v2130_v47 = vpop.permute.xlu0 %2129 }
 0x2db   : > { %v5265_v53 = vsel %vm692_vm5, %v2130_v47, %v2132_v1  ;;  %v2134_v39 = vsel %vm692_vm5, %v2132_v1, %v2130_v47  ;;  %v2074_v47 = vstv %s2073_s22  ;;  %s5716_s22 = sld [smem:[#allocation13 + $0x1f]] }
 0x2dc   : > { %2065 = vrot.lane.b32.xlu0 %v5257_v29, %s6741_s17  ;;  %2147 = vrot.lane.b32.xlu1 %v5265_v53, %s6740_s18  ;;  %v5323_v61 = vsel %vm661_vm6, %v2134_v39, 0.0 }
 0x2de   : > { %v2140_v17 = vpop.permute.xlu1 %2139  ;;  %v2138_v35 = vpop.permute.xlu0 %2137 }
 0x2df   : > { %v5297_v42 = vsel %vm701_vm4, %v2138_v35, %v2140_v17  ;;  %v2142_v34 = vsel %vm701_vm4, %v2140_v17, %v2138_v35 }
 0x2e0   : > { %2025 = vrot.lane.b32.xlu0 %v5275_v3, %s6740_s18  ;;  %2155 = vrot.lane.b32.xlu1 %v5265_v53, %s6741_s17  ;;  %v5337_v41 = vsel %vm664_vm7, %v2142_v34, 0.0 }
 0x2e2   : > { %v2252_v15 = vpop.permute.xlu1 %2251  ;;  %v2250_v60 = vpop.permute.xlu0 %2249 }
 0x2e3   : > { %v5305_v20 = vsel %vm692_vm5, %v2250_v60, %v2252_v15  ;;  %v2254_v11 = vsel %vm692_vm5, %v2252_v15, %v2250_v60  ;;  %v2006_v15 = vstv %s2005_s2  ;;  %s5726_s2 = sld [smem:[#allocation13 + $0x20]] }
 0x2e4   : > { %2033 = vrot.lane.b32.xlu0 %v5275_v3, %s6741_s17  ;;  %2171 = vrot.lane.b32.xlu1 %v5203_v21, %s6741_s17  ;;  %v5351_v46 = vsel %vm661_vm6, %v2254_v11, 0.0  ;;  %v2086_v11 = vstv %s5433_s29  ;;  %s5755_s29 = sld [smem:[#allocation13 + $0x23]] }
 0x2e6   : > { %v2260_v56 = vpop.permute.xlu1 %2259  ;;  %v2258_v36 = vpop.permute.xlu0 %2257 }
 0x2e7   : > { %v2262_v37 = vsel %vm701_vm4, %v2260_v56, %v2258_v36  ;;  %v5369_v48 = vsel %vm701_vm4, %v2258_v36, %v2260_v56  ;;  %v2098_v56 = vstv %s5425_s24  ;;  %v2082_v36 = vmul.f32 %v2080_v30, %v5251_v62  ;;  %s5732_s24 = sld [smem:[#allocation13 + $0x22]] }
 0x2e8   : > { %2169 = vrot.lane.b32.xlu0 %v5201_v51, %s6741_s17  ;;  %2059 = vrot.lane.b32.xlu1 %v5289_v52, %s6740_s18  ;;  %v5373_v14 = vsel %vm664_vm7, %v2262_v37, 0.0 }
 0x2ea   : > { %v2372_v40 = vpop.permute.xlu1 %2371  ;;  %v2370_v28 = vpop.permute.xlu0 %2369 }
 0x2eb   : > { %v5359_v12 = vsel %vm692_vm5, %v2370_v28, %v2372_v40  ;;  %v2374_v27 = vsel %vm692_vm5, %v2372_v40, %v2370_v28 }
 0x2ec   : > { %2067 = vrot.lane.b32.xlu1 %v5289_v52, %s6741_s17  ;;  %2177 = vrot.lane.b32.xlu0 %v5297_v42, %s6740_s18  ;;  %v5391_v24 = vsel %vm661_vm6, %v2374_v27, 0.0 }
 0x2ee   : > { %v2044_v32 = vpop.permute.xlu1 %2043  ;;  %v2042_v22 = vpop.permute.xlu0 %2041 }
 0x2ef   : > { %v5309_v8 = vsel %vm710_vm8, %v2042_v22, %v2044_v32  ;;  %v5313_v26 = vsel %vm710_vm8, %v2044_v32, %v2042_v22  ;;  %v2081_v32 = vmul.f32 %v2080_v30, %v5275_v3 }
 0x2f0   : > { %2185 = vrot.lane.b32.xlu0 %v5297_v42, %s6741_s17  ;;  %2267 = vrot.lane.b32.xlu1 %v5305_v20, %s6740_s18  ;;  %v2047_v22 = vsel %vm3657_vm9, %v5313_v26, 0.0  ;;  %v2048_v39 = vsel %vm3663_vm10, %v5309_v8, 0.0 }
 0x2f2   : > { %v2380_v31 = vpop.permute.xlu1 %2379  ;;  %v2378_v4 = vpop.permute.xlu0 %2377 }
 0x2f3   : > { %v2382_v10 = vsel %vm701_vm4, %v2380_v31, %v2378_v4  ;;  %v5413_v49 = vsel %vm701_vm4, %v2378_v4, %v2380_v31 }
 0x2f4   : > { %2145 = vrot.lane.b32.xlu0 %v5323_v61, %s6740_s18  ;;  %2275 = vrot.lane.b32.xlu1 %v5305_v20, %s6741_s17  ;;  %v5405_v50 = vsel %vm664_vm7, %v2382_v10, 0.0 }
 0x2f6   : > { %v2052_v6 = vpop.permute.xlu1 %2051  ;;  %v2050_v18 = vpop.permute.xlu0 %2049 }
 0x2f7   : > { %v2053_v26 = vsel %vm719_vm11, %v2050_v18, %v2052_v6  ;;  %v2054_v8 = vsel %vm719_vm11, %v2052_v6, %v2050_v18 }
 0x2f8   : > { %2153 = vrot.lane.b32.xlu0 %v5323_v61, %s6741_s17  ;;  %2283 = vrot.lane.b32.xlu1 %v5215_v54, %s6740_s18 }
 0x2fa   : > { %v5421_v58 = vpop.permute.xlu1 %2163  ;;  %v5423_v33 = vpop.permute.xlu0 %2161 }
 0x2fc   : > { %2281 = vrot.lane.b32.xlu0 %v5213_v7, %s6740_s18  ;;  %2179 = vrot.lane.b32.xlu1 %v5337_v41, %s6740_s18 }
 0x300   : > { %2289 = vrot.lane.b32.xlu0 %v5213_v7, %s6741_s17  ;;  %2187 = vrot.lane.b32.xlu1 %v5337_v41, %s6741_s17 }
 0x304   : > { %2265 = vrot.lane.b32.xlu0 %v5351_v46, %s6740_s18  ;;  %2291 = vrot.lane.b32.xlu1 %v5215_v54, %s6741_s17 }
 0x308   : > { %2273 = vrot.lane.b32.xlu0 %v5351_v46, %s6741_s17  ;;  %2387 = vrot.lane.b32.xlu1 %v5359_v12, %s6740_s18 }
 0x30c   : > { %2297 = vrot.lane.b32.xlu0 %v5369_v48, %s6740_s18  ;;  %2299 = vrot.lane.b32.xlu1 %v5373_v14, %s6740_s18 }
 0x310   : > { %2305 = vrot.lane.b32.xlu0 %v5369_v48, %s6741_s17  ;;  %2307 = vrot.lane.b32.xlu1 %v5373_v14, %s6741_s17 }
 0x314   : > { %2401 = vrot.lane.b32.xlu0 %v5225_v44, %s6740_s18  ;;  %2395 = vrot.lane.b32.xlu1 %v5359_v12, %s6741_s17 }
 0x318   : > { %2385 = vrot.lane.b32.xlu0 %v5391_v24, %s6740_s18  ;;  %2403 = vrot.lane.b32.xlu1 %v5227_v0, %s6740_s18 }
 0x31c   : > { %2393 = vrot.lane.b32.xlu0 %v5391_v24, %s6741_s17  ;;  %2411 = vrot.lane.b32.xlu1 %v5227_v0, %s6741_s17 }
 0x320   : > { %2409 = vrot.lane.b32.xlu0 %v5225_v44, %s6741_s17  ;;  %2419 = vrot.lane.b32.xlu1 %v5405_v50, %s6740_s18 }
 0x324   : > { %2427 = vrot.lane.b32.xlu1 %v5405_v50, %s6741_s17  ;;  %2417 = vrot.lane.b32.xlu0 %v5413_v49, %s6740_s18  ;;  %s5696_s18 = sld [smem:[#allocation13 + $0x1b]] }
 0x328   : > { %2425 = vrot.lane.b32.xlu0 %v5413_v49, %s6741_s17  ;;  %s5704_s17 = sld [smem:[#allocation13 + $0x1e]] }
 0x346   : > { %v2028_v16 = vpop.permute.xlu1 %2027 }
 0x34a   : > { %v2036_v23 = vpop.permute.xlu1 %2035  ;;  %v2058_v19 = vpop.permute.xlu0 %2057 }
 0x34e   : > { %v5429_v2 = vpop.permute.xlu1 %2147  ;;  %v5431_v57 = vpop.permute.xlu0 %2065 }
 0x352   : > { %v5435_v1 = vpop.permute.xlu1 %2155  ;;  %v2026_v25 = vpop.permute.xlu0 %2025 }
 0x353   : > { %v2029_v17 = vsel %vm710_vm8, %v2026_v25, %v2028_v16  ;;  %v2030_v35 = vsel %vm710_vm8, %v2028_v16, %v2026_v25  ;;  %v2093_v25 = vmul.f32 %v2092_v59, %v2047_v22 }
 0x354   : > { %v2031_v60 = vsel %vm3657_vm9, %v2030_v35, 0.0  ;;  %v2032_v38 = vsel %vm3663_vm10, %v2029_v17, 0.0  ;;  %v2094_v17 = vmul.f32 %v2092_v59, %v2048_v39  ;;  %v2100_v35 = vmul.f32 %v2098_v56, %v5191_v5 }
 0x355   : > { %v2075_v40 = vmul.f32 %v2074_v47, %v2031_v60  ;;  %v2076_v28 = vmul.f32 %v2074_v47, %v2032_v38  ;;  %v2099_v60 = vmul.f32 %v2098_v56, %v5189_v43  ;;  %v2056_v5 = vsel %vm3790_vm13, %v2054_v8, 0.0 }
 0x356   : > { %v5459_v34 = vpop.permute.xlu1 %2171  ;;  %v2034_v37 = vpop.permute.xlu0 %2033  ;;  %v2110_v59 = vstv %s5448_s1 }
 0x357   : > { %v2077_v27 = vadd.f32 %v2075_v40, %v2006_v15  ;;  %v2078_v31 = vadd.f32 %v2076_v28, %v2006_v15  ;;  %v2037_v62 = vsel %vm719_vm11, %v2034_v37, %v2036_v23  ;;  %v2038_v3 = vsel %vm719_vm11, %v2036_v23, %v2034_v37 }
 0x358   : > { %v2039_v4 = vsel %vm3784_vm12, %v2037_v62, 0.0  ;;  %v2040_v10 = vsel %vm3790_vm13, %v2038_v3, 0.0  ;;  %v2104_v28 = vstv %s5441_s20  ;;  %v2116_v3 = vstv %s5466_s19  ;;  %s6745_s19 = sld [smem:[#allocation165_spill]] }
 0x359   : > { %v2083_v16 = vadd.f32 %v2081_v32, %v2077_v27  ;;  %v2084_v30 = vadd.f32 %v2082_v36, %v2078_v31  ;;  %v2087_v47 = vmul.f32 %v2086_v11, %v2039_v4  ;;  %v2088_v23 = vmul.f32 %v2086_v11, %v2040_v10 }
 0x35a   : > { %v2060_v15 = vpop.permute.xlu1 %2059  ;;  %v5478_v6 = vpop.permute.xlu0 %2169  ;;  %v2055_v32 = vsel %vm3784_vm12, %v2053_v26, 0.0  ;;  %v2106_v27 = vmul.f32 %v2104_v28, %v2056_v5 }
 0x35b   : > { %v2089_v18 = vadd.f32 %v2087_v47, %v2083_v16  ;;  %v2090_v38 = vadd.f32 %v2088_v23, %v2084_v30  ;;  %v2061_v40 = vsel %vm710_vm8, %v2058_v19, %v2060_v15  ;;  %v2062_v36 = vsel %vm710_vm8, %v2060_v15, %v2058_v19 }
 0x35c   : > { %v2063_v22 = vsel %vm3657_vm9, %v2062_v36, 0.0  ;;  %v2064_v19 = vsel %vm3663_vm10, %v2061_v40, 0.0  ;;  %v2105_v37 = vmul.f32 %v2104_v28, %v2055_v32  ;;  %v2194_v32 = vstv %s5500_s8 }
 0x35d   : > { %v2095_v43 = vadd.f32 %v2093_v25, %v2089_v18  ;;  %v2096_v56 = vadd.f32 %v2094_v17, %v2090_v38  ;;  %v2111_v26 = vmul.f32 %v2110_v59, %v2063_v22  ;;  %v2112_v8 = vmul.f32 %v2110_v59, %v2064_v19 }
 0x35e   : > { %v2068_v39 = vpop.permute.xlu1 %2067  ;;  %v5498_v11 = vpop.permute.xlu0 %2177  ;;  %v2117_v25 = vmul.f32 %v2116_v3, %v5257_v29  ;;  %v2118_v17 = vmul.f32 %v2116_v3, %v5289_v52  ;;  %v2200_v38 = vstv %s5492_s15  ;;  %v2165_v29 = vsel %vm710_vm8, %v5423_v33, %v5421_v58 }
 0x35f   : > { %v2101_v31 = vadd.f32 %v2099_v60, %v2095_v43  ;;  %v2102_v62 = vadd.f32 %v2100_v35, %v2096_v56  ;;  %v2069_v16 = vsel %vm719_vm11, %v5431_v57, %v2068_v39  ;;  %v2070_v30 = vsel %vm719_vm11, %v2068_v39, %v5431_v57 }
 0x360   : > { %v2122_v60 = vstv %s5490_s23  ;;  %v2071_v18 = vsel %vm3784_vm12, %v2069_v16, 0.0  ;;  %v2072_v57 = vsel %vm3790_vm13, %v2070_v30, 0.0  ;;  %v2166_v52 = vsel %vm710_vm8, %v5421_v58, %v5423_v33 }
 0x361   : > { %v2107_v4 = vadd.f32 %v2105_v37, %v2101_v31  ;;  %v2108_v10 = vadd.f32 %v2106_v27, %v2102_v62  ;;  %v2218_v59 = vstv %s5502_s28  ;;  %v2123_v43 = vmul.f32 %v2122_v60, %v2071_v18 }
 0x362   : > { %v5513_v47 = vpop.permute.xlu1 %2267  ;;  %v5515_v23 = vpop.permute.xlu0 %2185  ;;  %v2124_v56 = vmul.f32 %v2122_v60, %v2072_v57  ;;  %v2202_v39 = vmul.f32 %v2200_v38, %v5265_v53  ;;  %v2212_v37 = vstv %s5505_s6  ;;  %v2167_v53 = vsel %vm3657_vm9, %v2166_v52, 0.0 }
 0x363   : > { %v2113_v35 = vadd.f32 %v2111_v26, %v2107_v4  ;;  %v2114_v15 = vadd.f32 %v2112_v8, %v2108_v10  ;;  %v2201_v26 = vmul.f32 %v2200_v38, %v5323_v61  ;;  %v2206_v4 = vstv %s5517_s4 }
 0x364   : > { %v2219_v52 = vmul.f32 %v2218_v59, %v5201_v51 }
 0x365   : > { %v2119_v40 = vadd.f32 %v2117_v25, %v2113_v35  ;;  %v2120_v36 = vadd.f32 %v2118_v17, %v2114_v15  ;;  %v2173_v17 = vsel %vm719_vm11, %v5478_v6, %v5459_v34  ;;  %v2174_v35 = vsel %vm719_vm11, %v5459_v34, %v5478_v6 }
 0x366   : > { %v5537_v28 = vpop.permute.xlu1 %2275  ;;  %v2146_v5 = vpop.permute.xlu0 %2145  ;;  %v2175_v51 = vsel %vm3784_vm12, %v2173_v17, 0.0 }
 0x367   : > { %v2149_v22 = vsel %vm710_vm8, %v2146_v5, %v5429_v2  ;;  %v2150_v19 = vsel %vm710_vm8, %v5429_v2, %v2146_v5  ;;  %v2125_v27 = vadd.f32 %v2123_v43, %v2119_v40  ;;  %v2126_v31 = vadd.f32 %v2124_v56, %v2120_v36 }
 0x368   : > { %v2151_v58 = vsel %vm3657_vm9, %v2150_v19, 0.0  ;;  %v2152_v33 = vsel %vm3663_vm10, %v2149_v22, 0.0  ;;  %v2168_v2 = vsel %vm3663_vm10, %v2165_v29, 0.0  ;;  %v2236_v40 = vstv %s5527_s27 }
 0x369   : > { %v2195_v62 = vmul.f32 %v2194_v32, %v2151_v58  ;;  %v2196_v3 = vmul.f32 %v2194_v32, %v2152_v33  ;;  %v2213_v36 = vmul.f32 %v2212_v37, %v2167_v53  ;;  %v2214_v29 = vmul.f32 %v2212_v37, %v2168_v2 }
 0x36a   : > { %v5562_v8 = vpop.permute.xlu1 %2283  ;;  %v2154_v10 = vpop.permute.xlu0 %2153  ;;  %v2224_v22 = vstv %s5549_s3  ;;  %v2176_v19 = vsel %vm3790_vm13, %v2174_v35, 0.0  ;;  %v2320_v37 = vstv %s5555_s26  ;;  %v2237_v58 = vmul.f32 %v2236_v40, %v5297_v42 }
 0x36b   : > { %v2197_v16 = vadd.f32 %v2195_v62, %v2125_v27  ;;  %v2198_v30 = vadd.f32 %v2196_v3, %v2126_v31  ;;  %v2157_v25 = vsel %vm719_vm11, %v2154_v10, %v5435_v1  ;;  %v2158_v61 = vsel %vm719_vm11, %v5435_v1, %v2154_v10 }
 0x36c   : > { %v2159_v15 = vsel %vm3784_vm12, %v2157_v25, 0.0  ;;  %v2160_v60 = vsel %vm3790_vm13, %v2158_v61, 0.0  ;;  %v2230_v31 = vstv %s5565_s5  ;;  %v2226_v53 = vmul.f32 %v2224_v22, %v2176_v19 }
 0x36d   : > { %v2204_v18 = vadd.f32 %v2202_v39, %v2198_v30  ;;  %v2203_v57 = vadd.f32 %v2201_v26, %v2197_v16  ;;  %v2207_v1 = vmul.f32 %v2206_v4, %v2159_v15  ;;  %v2208_v38 = vmul.f32 %v2206_v4, %v2160_v60 }
 0x36e   : > { %v2180_v32 = vpop.permute.xlu1 %2179  ;;  %v2282_v34 = vpop.permute.xlu0 %2281  ;;  %v2220_v39 = vmul.f32 %v2218_v59, %v5203_v21  ;;  %v2225_v26 = vmul.f32 %v2224_v22, %v2175_v51  ;;  %v2321_v42 = vmul.f32 %v2320_v37, %v5351_v46  ;;  %v2322_v10 = vmul.f32 %v2320_v37, %v5305_v20 }
 0x36f   : > { %v2209_v6 = vadd.f32 %v2207_v1, %v2203_v57  ;;  %v2210_v5 = vadd.f32 %v2208_v38, %v2204_v18  ;;  %v2181_v43 = vsel %vm710_vm8, %v5498_v11, %v2180_v32  ;;  %v2182_v56 = vsel %vm710_vm8, %v2180_v32, %v5498_v11 }
 0x370   : > { %v2238_v11 = vmul.f32 %v2236_v40, %v5337_v41  ;;  %v2183_v62 = vsel %vm3657_vm9, %v2182_v56, 0.0  ;;  %v2184_v3 = vsel %vm3663_vm10, %v2181_v43, 0.0  ;;  %v2332_v35 = vstv %s5587_s16 }
 0x371   : > { %v2215_v33 = vadd.f32 %v2213_v36, %v2209_v6  ;;  %v2216_v27 = vadd.f32 %v2214_v29, %v2210_v5  ;;  %v2231_v61 = vmul.f32 %v2230_v31, %v2183_v62  ;;  %v2232_v17 = vmul.f32 %v2230_v31, %v2184_v3 }
 0x372   : > { %v2188_v21 = vpop.permute.xlu1 %2187  ;;  %v2290_v59 = vpop.permute.xlu0 %2289  ;;  %v2242_v15 = vstv %s5589_s25  ;;  %v2285_v1 = vsel %vm710_vm8, %v2282_v34, %v5562_v8  ;;  %v2286_v38 = vsel %vm710_vm8, %v5562_v8, %v2282_v34  ;;  %v2314_v40 = vstv %s5603_s7 }
 0x373   : > { %v2221_v2 = vadd.f32 %v2219_v52, %v2215_v33  ;;  %v2222_v4 = vadd.f32 %v2220_v39, %v2216_v27  ;;  %v2189_v41 = vsel %vm719_vm11, %v5515_v23, %v2188_v21  ;;  %v2190_v16 = vsel %vm719_vm11, %v2188_v21, %v5515_v23 }
 0x374   : > { %v2191_v46 = vsel %vm3784_vm12, %v2189_v41, 0.0  ;;  %v2192_v20 = vsel %vm3790_vm13, %v2190_v16, 0.0  ;;  %v2326_v52 = vstv %s5605_s14  ;;  %v2287_v56 = vsel %vm3657_vm9, %v2286_v38, 0.0 }
 0x375   : > { %v2227_v30 = vadd.f32 %v2225_v26, %v2221_v2  ;;  %v2228_v25 = vadd.f32 %v2226_v53, %v2222_v4  ;;  %v2243_v5 = vmul.f32 %v2242_v15, %v2191_v46  ;;  %v2244_v43 = vmul.f32 %v2242_v15, %v2192_v20 }
 0x376   : > { %v2292_v60 = vpop.permute.xlu1 %2291  ;;  %v2266_v18 = vpop.permute.xlu0 %2265  ;;  %v2288_v8 = vsel %vm3663_vm10, %v2285_v1, 0.0  ;;  %v2338_v2 = vstv %s5631_s10  ;;  %v2350_v38 = vstv %s5657_s21 }
 0x377   : > { %v2233_v23 = vadd.f32 %v2231_v61, %v2227_v30  ;;  %v2234_v57 = vadd.f32 %v2232_v17, %v2228_v25  ;;  %v2269_v36 = vsel %vm710_vm8, %v2266_v18, %v5513_v47  ;;  %v2270_v29 = vsel %vm710_vm8, %v5513_v47, %v2266_v18 }
 0x378   : > { %v2271_v34 = vsel %vm3657_vm9, %v2270_v29, 0.0  ;;  %v2272_v22 = vsel %vm3663_vm10, %v2269_v36, 0.0  ;;  %v2293_v33 = vsel %vm719_vm11, %v2290_v59, %v2292_v60  ;;  %v2294_v27 = vsel %vm719_vm11, %v2292_v60, %v2290_v59 }
 0x379   : > { %v2239_v32 = vadd.f32 %v2237_v58, %v2233_v23  ;;  %v2240_v6 = vadd.f32 %v2238_v11, %v2234_v57  ;;  %v2315_v37 = vmul.f32 %v2314_v40, %v2271_v34  ;;  %v2316_v58 = vmul.f32 %v2314_v40, %v2272_v22 }
 0x37a   : > { %v5655_v51 = vpop.permute.xlu1 %2387  ;;  %v2274_v47 = vpop.permute.xlu0 %2273  ;;  %v2344_v59 = vstv %s5629_s12  ;;  %v2333_v25 = vmul.f32 %v2332_v35, %v2287_v56  ;;  %v2334_v61 = vmul.f32 %v2332_v35, %v2288_v8  ;;  %v2295_v17 = vsel %vm3784_vm12, %v2293_v33, 0.0 }
 0x37b   : > { %v2245_v19 = vadd.f32 %v2243_v5, %v2239_v32  ;;  %v2246_v39 = vadd.f32 %v2244_v43, %v2240_v6  ;;  %v2277_v11 = vsel %vm719_vm11, %v2274_v47, %v5537_v28  ;;  %v2278_v31 = vsel %vm719_vm11, %v5537_v28, %v2274_v47 }
 0x37c   : > { %v2279_v21 = vsel %vm3784_vm12, %v2277_v11, 0.0  ;;  %v2280_v26 = vsel %vm3790_vm13, %v2278_v31, 0.0  ;;  %v2296_v15 = vsel %vm3790_vm13, %v2294_v27, 0.0  ;;  %v2340_v1 = vmul.f32 %v2338_v2, %v5215_v54 }
 0x37d   : > { %v2317_v62 = vadd.f32 %v2315_v37, %v2245_v19  ;;  %v2318_v3 = vadd.f32 %v2316_v58, %v2246_v39  ;;  %v2327_v30 = vmul.f32 %v2326_v52, %v2279_v21  ;;  %v2328_v28 = vmul.f32 %v2326_v52, %v2280_v26 }
 0x37e   : > { %v2300_v53 = vpop.permute.xlu1 %2299  ;;  %v2298_v4 = vpop.permute.xlu0 %2297  ;;  %v2345_v40 = vmul.f32 %v2344_v59, %v2295_v17  ;;  %v2346_v36 = vmul.f32 %v2344_v59, %v2296_v15  ;;  %v2356_v5 = vstv %s5673_s30  ;;  %v2440_v43 = vstv %s5675_s13 }
 0x37f   : > { %v2324_v41 = vadd.f32 %v2322_v10, %v2318_v3  ;;  %v2323_v16 = vadd.f32 %v2321_v42, %v2317_v62  ;;  %v2301_v60 = vsel %vm710_vm8, %v2298_v4, %v2300_v53  ;;  %v2302_v42 = vsel %vm710_vm8, %v2300_v53, %v2298_v4 }
 0x380   : > { %v2339_v10 = vmul.f32 %v2338_v2, %v5213_v7  ;;  %v2303_v29 = vsel %vm3657_vm9, %v2302_v42, 0.0  ;;  %v2304_v52 = vsel %vm3663_vm10, %v2301_v60, 0.0  ;;  %v2362_v39 = vstv %s5683_s9 }
 0x381   : > { %v2329_v46 = vadd.f32 %v2327_v30, %v2323_v16  ;;  %v2330_v20 = vadd.f32 %v2328_v28, %v2324_v41  ;;  %v2351_v47 = vmul.f32 %v2350_v38, %v2303_v29  ;;  %v2352_v19 = vmul.f32 %v2350_v38, %v2304_v52 }
 0x382   : > { %v2308_v35 = vpop.permute.xlu1 %2307  ;;  %v2306_v18 = vpop.permute.xlu0 %2305  ;;  %v2357_v33 = vmul.f32 %v2356_v5, %v5369_v48  ;;  %v2358_v27 = vmul.f32 %v2356_v5, %v5373_v14  ;;  %v2442_v62 = vmul.f32 %v2440_v43, %v5359_v12  ;;  %v2441_v4 = vmul.f32 %v2440_v43, %v5391_v24 }
 0x383   : > { %v2335_v23 = vadd.f32 %v2333_v25, %v2329_v46  ;;  %v2336_v57 = vadd.f32 %v2334_v61, %v2330_v20  ;;  %v2309_v6 = vsel %vm719_vm11, %v2306_v18, %v2308_v35  ;;  %v2310_v54 = vsel %vm719_vm11, %v2308_v35, %v2306_v18 }
 0x384   : > { %v2311_v37 = vsel %vm3784_vm12, %v2309_v6, 0.0  ;;  %v2312_v58 = vsel %vm3790_vm13, %v2310_v54, 0.0  ;;  %v2434_v41 = vstv %s5696_s18  ;;  %v2452_v24 = vstv %s5704_s17 }
 0x385   : > { %v2342_v7 = vadd.f32 %v2340_v1, %v2336_v57  ;;  %v2341_v32 = vadd.f32 %v2339_v10, %v2335_v23  ;;  %v2363_v53 = vmul.f32 %v2362_v39, %v2311_v37  ;;  %v2364_v2 = vmul.f32 %v2362_v39, %v2312_v58 }
 0x386   : > { %v2396_v56 = vpop.permute.xlu1 %2395  ;;  %v2402_v8 = vpop.permute.xlu0 %2401  ;;  %v2446_v17 = vstv %s5706_s11  ;;  %v2470_v58 = vstv %s5740_s0 }
 0x387   : > { %v2348_v34 = vadd.f32 %v2346_v36, %v2342_v7  ;;  %v2347_v22 = vadd.f32 %v2345_v40, %v2341_v32  ;;  %v2458_v36 = vstv %s5716_s22 }
 0x388   : > { %v2459_v39 = vmul.f32 %v2458_v36, %v5225_v44  ;;  %v2460_v37 = vmul.f32 %v2458_v36, %v5227_v0 }
 0x389   : > { %v2353_v11 = vadd.f32 %v2351_v47, %v2347_v22  ;;  %v2354_v31 = vadd.f32 %v2352_v19, %v2348_v34  ;;  %v2476_v19 = vstv %s5732_s24 }
 0x38a   : > { %v2404_v3 = vpop.permute.xlu1 %2403  ;;  %v2386_v21 = vpop.permute.xlu0 %2385  ;;  %v2477_v13 = vmul.f32 %v2476_v19, %v5413_v49  ;;  %v2478_v9 = vmul.f32 %v2476_v19, %v5405_v50 }
 0x38b   : > { %v2360_v26 = vadd.f32 %v2358_v27, %v2354_v31  ;;  %v2359_v59 = vadd.f32 %v2357_v33, %v2353_v11  ;;  %v2389_v48 = vsel %vm710_vm8, %v2386_v21, %v5655_v51  ;;  %v2390_v12 = vsel %vm710_vm8, %v5655_v51, %v2386_v21 }
 0x38c   : > { %v2405_v30 = vsel %vm710_vm8, %v2402_v8, %v2404_v3  ;;  %v2406_v28 = vsel %vm710_vm8, %v2404_v3, %v2402_v8  ;;  %v2391_v25 = vsel %vm3657_vm9, %v2390_v12, 0.0  ;;  %v2392_v61 = vsel %vm3663_vm10, %v2389_v48, 0.0 }
 0x38d   : > { %v2365_v14 = vadd.f32 %v2363_v53, %v2359_v59  ;;  %v2366_v16 = vadd.f32 %v2364_v2, %v2360_v26  ;;  %v2435_v46 = vmul.f32 %v2434_v41, %v2391_v25  ;;  %v2436_v20 = vmul.f32 %v2434_v41, %v2392_v61 }
 0x38e   : > { %v2412_v51 = vpop.permute.xlu1 %2411  ;;  %v2394_v15 = vpop.permute.xlu0 %2393  ;;  %v2407_v10 = vsel %vm3657_vm9, %v2406_v28, 0.0  ;;  %v2408_v35 = vsel %vm3663_vm10, %v2405_v30, 0.0  ;;  %v2482_v41 = vstv %s5755_s29 }
 0x38f   : > { %v2397_v60 = vsel %vm719_vm11, %v2394_v15, %v2396_v56  ;;  %v2398_v42 = vsel %vm719_vm11, %v2396_v56, %v2394_v15  ;;  %v2437_v57 = vadd.f32 %v2435_v46, %v2365_v14  ;;  %v2438_v1 = vadd.f32 %v2436_v20, %v2366_v16 }
 0x390   : > { %v2399_v18 = vsel %vm3784_vm12, %v2397_v60, 0.0  ;;  %v2400_v23 = vsel %vm3790_vm13, %v2398_v42, 0.0  ;;  %v2453_v54 = vmul.f32 %v2452_v24, %v2407_v10  ;;  %v2454_v5 = vmul.f32 %v2452_v24, %v2408_v35 }
 0x391   : > { %v2447_v38 = vmul.f32 %v2446_v17, %v2399_v18  ;;  %v2448_v40 = vmul.f32 %v2446_v17, %v2400_v23  ;;  %v2444_v52 = vadd.f32 %v2442_v62, %v2438_v1  ;;  %v2443_v7 = vadd.f32 %v2441_v4, %v2437_v57  ;;  %v6743_v23 = vld [vmem:[#allocation19_spill] sm:$0xff] }
 0x392   : > { %v2410_v29 = vpop.permute.xlu0 %2409  ;;  %v2420_v43 = vpop.permute.xlu1 %2419  ;;  %v2464_v56 = vstv %s5726_s2 }
 0x393   : > { %v2413_v32 = vsel %vm719_vm11, %v2410_v29, %v2412_v51  ;;  %v2414_v6 = vsel %vm719_vm11, %v2412_v51, %v2410_v29  ;;  %v2449_v8 = vadd.f32 %v2447_v38, %v2443_v7  ;;  %v2450_v34 = vadd.f32 %v2448_v40, %v2444_v52 }
 0x394   : > { %v2415_v22 = vsel %vm3784_vm12, %v2413_v32, 0.0  ;;  %v2416_v47 = vsel %vm3790_vm13, %v2414_v6, 0.0 }
 0x395   : > { %v2455_v27 = vadd.f32 %v2453_v54, %v2449_v8  ;;  %v2456_v11 = vadd.f32 %v2454_v5, %v2450_v34  ;;  %v2465_v3 = vmul.f32 %v2464_v56, %v2415_v22  ;;  %v2466_v21 = vmul.f32 %v2464_v56, %v2416_v47 }
 0x396   : > { %v2418_v33 = vpop.permute.xlu0 %2417  ;;  %v2428_v4 = vpop.permute.xlu1 %2427 }
 0x397   : > { %v2421_v31 = vsel %vm710_vm8, %v2418_v33, %v2420_v43  ;;  %v2422_v62 = vsel %vm710_vm8, %v2420_v43, %v2418_v33  ;;  %v2462_v0 = vadd.f32 %v2460_v37, %v2456_v11  ;;  %v2461_v59 = vadd.f32 %v2459_v39, %v2455_v27 }
 0x398   : > { %v2423_v26 = vsel %vm3657_vm9, %v2422_v62, 0.0  ;;  %v2424_v44 = vsel %vm3663_vm10, %v2421_v31, 0.0 }
 0x399   : > { %v2471_v53 = vmul.f32 %v2470_v58, %v2423_v26  ;;  %v2472_v2 = vmul.f32 %v2470_v58, %v2424_v44  ;;  %v2467_v12 = vadd.f32 %v2465_v3, %v2461_v59  ;;  %v2468_v14 = vadd.f32 %v2466_v21, %v2462_v0 }
 0x39a   : > { %v2426_v48 = vpop.permute.xlu0 %2425 }
 0x39b   : > { %v2429_v16 = vsel %vm719_vm11, %v2426_v48, %v2428_v4  ;;  %v2430_v30 = vsel %vm719_vm11, %v2428_v4, %v2426_v48  ;;  %v2473_v25 = vadd.f32 %v2471_v53, %v2467_v12  ;;  %v2474_v61 = vadd.f32 %v2472_v2, %v2468_v14 }
 0x39c   : > { %v2431_v28 = vsel %vm3784_vm12, %v2429_v16, 0.0  ;;  %v2432_v24 = vsel %vm3790_vm13, %v2430_v30, 0.0 }
 0x39d   : > { %v2483_v51 = vmul.f32 %v2482_v41, %v2431_v28  ;;  %v2484_v17 = vmul.f32 %v2482_v41, %v2432_v24  ;;  %v2480_v15 = vadd.f32 %v2478_v9, %v2474_v61  ;;  %v2479_v46 = vadd.f32 %v2477_v13, %v2473_v25 }
 0x39f   : > { %v2485_v20 = vadd.f32 %v2483_v51, %v2479_v46  ;;  %v2486_v60 = vadd.f32 %v2484_v17, %v2480_v15 }
 0x3a1   : > { %v2818_v63 = vmul.f32 -1.442695, %v2485_v20  ;;  %v2819_v42 = vmul.f32 -1.442695, %v2486_v60 }
 0x3a3   : > { %2891 = vpow2.f32 %v2818_v63 }
 0x3a4   : > { %2893 = vpow2.f32 %v2819_v42 }
 0x3ad   : > { %v2892_v49 = vpop.eup %2891 }
 0x3ae   : > { %v2894_v50 = vpop.eup %2893  ;;  %v2493_v10 = vadd.f32 1.0, %v2892_v49 }
 0x3af   : > { %v2494_v45 = vadd.f32 1.0, %v2894_v50 }
 0x3b0   : > { %2895 = vrcp.f32 %v2493_v10 }
 0x3b1   : > { %2897 = vrcp.f32 %v2494_v45 }
 0x3ba   : > { %v2896_v55 = vpop.eup %2895 }
 0x3bb   : > { %v2898_v35 = vpop.eup %2897 }
 0x3bc   : > { %v2501_v18 = vcombine.low %v2896_v55, %v2898_v35 }
 0x3be   : > { %v2508_v57 = vrot.slane %v2501_v18, %v6743_v23 }
 0x3c0   : > { %v2515_v1 = vrot.slane %v2508_v57, %v6743_v23 }
 0x3c2   : > { %2521 = vst.msk [vmem:[%s6745_s19] sm:$0x3] %vm3130_vm3, %v2515_v1 }
 0x3c3 PF: > { %s6746_s23 = sld [smem:[#allocation17_spill]]  ;;  %s6748_s24 = sld [smem:[#allocation18_spill]] }
 0x3c9   : > { %s19_s25 = sadd.s32 1, %s6746_s23   ;;  %s6747_s23 = sld [smem:[#allocation16_spill]] }
 0x3ca   : > { %p16_p11 = scmp.ge.s32.totalorder %s19_s25, 4  }
 0x3cc   :  { %18 = sbr.rel (!%p16_p11) target bundleno = 11 (0xb), region = 114 }
 0x3d3   :  { %2533 = vsyncpa [#allocation10], 1 }
 0x3d4   :  { %2535 = vsyncpa [#allocation10 + $0x1], 1 }
 0x3d5   :  { %2536 = vsyncpa [#allocation12], 1 }

</bundles_post_ra>
